<compile_context>
chip_gen: v7x
topology: tpu7x:2x2x1
jax: 0.10.0
libtpu: 0.0.40
codegen_flags: <defaults>
</compile_context>

<pallas_src>
import functools

import jax
import jax.numpy as jnp
from jax.experimental import pallas as pl
from jax.experimental.pallas import tpu as pltpu


# ---------------------------------------------------------------------------
# Kernel
# ---------------------------------------------------------------------------
def _layer_norm(x, gamma, beta, eps=1e-5):
    mu = jnp.mean(x, axis=-1, keepdims=True)
    var = jnp.mean((x - mu) ** 2, axis=-1, keepdims=True)
    return (x - mu) * jax.lax.rsqrt(var + eps) * gamma + beta


def transformer_block_kernel(
    v_ref, k_ref, q_ref, bias_ref,            # (Bt,Lk,E),(Bt,Lk,E),(Bt,Lq,E),(Lq,Lk)
    wv_ref, wk_ref, wq_ref,                    # block-diagonal (E,E) projections (pre-T)
    wo_ref, bo_ref,                            # fc_out: wo.T (E,E), bias (1,E)
    g1_ref, b1_ref, g2_ref, b2_ref,            # layernorm params (1,E), f32
    w1_ref, fb1_ref, w2_ref, fb2_ref,          # FFN: w1.T (E,hid), b1, w2.T (hid,E), b2
    out_ref,                                   # output (Bt, Lq, E)
    ctx_ref,                                   # VMEM scratch (Bt, Lq, E) f32
    *, heads: int,
):
    Bt, Lq, E = q_ref.shape
    Lk = k_ref.shape[1]
    hd = E // heads

    wv = wv_ref[...]
    wk = wk_ref[...]
    wq = wq_ref[...]                           # 1/sqrt(E) already folded in
    wo = wo_ref[...]
    w1 = w1_ref[...]
    w2 = w2_ref[...]
    cd = wq.dtype                              # MXU operand dtype

    bias = bias_ref[...].astype(jnp.float32)   # (Lq, Lk): 0 / -1e20

    # Flatten the batch tile so every E-wide matmul has Bt*L LHS rows.
    v2 = v_ref[...].reshape(Bt * Lk, E)
    k2 = k_ref[...].reshape(Bt * Lk, E)
    q2 = q_ref[...].reshape(Bt * Lq, E)        # original dtype (residual precision)

    # --- Q/K/V projections: single lane-dense matmuls (block-diag weights) ---
    qp = jnp.dot(q2.astype(cd), wq, preferred_element_type=jnp.float32)   # (Bt*Lq, E)
    kp = jnp.dot(k2.astype(cd), wk, preferred_element_type=jnp.float32)   # (Bt*Lk, E)
    vp = jnp.dot(v2.astype(cd), wv, preferred_element_type=jnp.float32)   # (Bt*Lk, E)

    qp3 = qp.astype(cd).reshape(Bt, Lq, E)
    kp3 = kp.astype(cd).reshape(Bt, Lk, E)
    vp3 = vp.astype(cd).reshape(Bt, Lk, E)

    # --- per-head attention (static unroll; heads is small and static) ---
    # Contexts are written straight into the VMEM scratch: no concat, fewer live vregs.
    for h in range(heads):
        sl = slice(h * hd, (h + 1) * hd)
        energy = jnp.einsum("bqd,bkd->bqk", qp3[..., sl], kp3[..., sl],
                            preferred_element_type=jnp.float32)           # (Bt,Lq,Lk)
        energy = energy + bias                 # -1e20 absorbs the finite energies
        m = jnp.max(energy, axis=-1, keepdims=True)
        p = jnp.exp(energy - m)
        attn = p / jnp.sum(p, axis=-1, keepdims=True)                     # exact recip
        ctx_ref[:, :, sl] = jnp.einsum("bqk,bkd->bqd", attn.astype(cd), vp3[..., sl],
                                       preferred_element_type=jnp.float32)

    ctx = ctx_ref[...].reshape(Bt * Lq, E)

    # --- fc_out + residual + norm1 (dropout == identity in eval mode) ---
    attn_out = jnp.dot(ctx.astype(cd), wo,
                       preferred_element_type=jnp.float32) + bo_ref[0]
    x1 = _layer_norm(attn_out + q2.astype(jnp.float32), g1_ref[0], b1_ref[0])

    # --- feed-forward: Linear -> ReLU -> Linear ---
    h1 = jnp.maximum(
        jnp.dot(x1.astype(cd), w1, preferred_element_type=jnp.float32) + fb1_ref[0],
        0.0)
    ff = jnp.dot(h1.astype(cd), w2, preferred_element_type=jnp.float32) + fb2_ref[0]

    # --- residual + norm2 (dropout == identity) ---
    out = _layer_norm(ff + x1, g2_ref[0], b2_ref[0])
    out_ref[...] = out.reshape(Bt, Lq, E).astype(out_ref.dtype)


# ---------------------------------------------------------------------------
# Wrapper
# ---------------------------------------------------------------------------
def _pick_batch_tile(n, rows_per_batch, target_rows=128, max_rows=512):
    """Largest divisor of n whose row count stays <= max_rows, stopping once the
    MXU-friendly target (>=128 rows) is reached."""
    best = 1
    for d in range(1, n + 1):
        if n % d != 0:
            continue
        if d * rows_per_batch > max(max_rows, rows_per_batch):
            break
        best = d
        if d * rows_per_batch >= target_rows:
            break
    return best


def transformer_block(value, key, query, mask2d, params, *, heads,
                      compute_dtype=jnp.bfloat16, batch_tile=None):
    """value/key/query: (N, L, E); mask2d: (Lq, Lk), nonzero == attend.

    compute_dtype: MXU operand dtype (bf16 default; MXU is bf16-native on
    v5e/v6e/v7x).  Accumulation, softmax stats and LayerNorm stay float32.
    """
    N, Lq, E = query.shape
    Lk = key.shape[1]
    hidden = params["w1"].shape[0]
    assert E % heads == 0
    out_dtype = query.dtype
    cd = jnp.dtype(compute_dtype)

    Bt = batch_tile if batch_tile is not None else _pick_batch_tile(N, Lq)
    assert N % Bt == 0, f"batch {N} must be divisible by batch tile {Bt}"
    grid = (N // Bt,)

    # ---- host-side weight prep (once, outside the kernel) ----
    inv_sqrt_e = 1.0 / float(E) ** 0.5
    eye = jnp.eye(heads, dtype=jnp.float32)
    wq_bd = (jnp.kron(eye, params["wq"].T) * inv_sqrt_e).astype(cd)  # scale folded in
    wk_bd = jnp.kron(eye, params["wk"].T).astype(cd)
    wv_bd = jnp.kron(eye, params["wv"].T).astype(cd)
    wo_t = params["wo"].T.astype(cd)                                 # (E, E)
    w1_t = params["w1"].T.astype(cd)                                 # (E, hidden)
    w2_t = params["w2"].T.astype(cd)                                 # (hidden, E)

    # additive mask bias: 0 where attend, -1e20 where masked
    bias = jnp.where(mask2d == 0, -1e20, 0.0).astype(cd)

    v_c = value.astype(cd)
    k_c = key.astype(cd)
    q_c = query  # kept in original dtype: residual add uses full precision

    args = (
        v_c, k_c, q_c, bias,
        wv_bd, wk_bd, wq_bd,
        wo_t, params["bo"].reshape(1, -1).astype(jnp.float32),
        params["gamma1"].reshape(1, -1).astype(jnp.float32),
        params["beta1"].reshape(1, -1).astype(jnp.float32),
        params["gamma2"].reshape(1, -1).astype(jnp.float32),
        params["beta2"].reshape(1, -1).astype(jnp.float32),
        w1_t, params["b1"].reshape(1, -1).astype(jnp.float32),
        w2_t, params["b2"].reshape(1, -1).astype(jnp.float32),
    )

    const_shapes = [
        (Lq, Lk),                                   # mask bias
        (E, E), (E, E), (E, E),                     # wv, wk, wq (block-diag)
        (E, E), (1, E),                             # wo, bo
        (1, E), (1, E), (1, E), (1, E),             # gamma1, beta1, gamma2, beta2
        (E, hidden), (1, hidden),                   # w1, b1
        (hidden, E), (1, E),                        # w2, b2
    ]

    # ---- explicit VMEM budget (default scoped limit is only 16/32 MiB) ----
    cdb = cd.itemsize
    qdb = jnp.dtype(query.dtype).itemsize
    odb = jnp.dtype(out_dtype).itemsize
    weight_b = (4 * E * E + 2 * E * hidden) * cdb + (6 * E + hidden) * 4 + Lq * Lk * cdb
    act_b = 2 * (2 * Bt * Lk * E * cdb + Bt * Lq * E * (qdb + odb))   # double-buffered
    scratch_b = Bt * Lq * E * 4
    inter_b = Bt * Lq * (4 * Lk + hidden + 8 * E) * 4 + 3 * Bt * Lk * E * 4
    est = 2 * weight_b + act_b + scratch_b + 2 * inter_b
    vmem_limit = int(min(64 * 2**20, max(32 * 2**20, est)))          # valid on v5e/v6e/v7x

    kernel = functools.partial(transformer_block_kernel, heads=heads)

    def call(single_buffer_consts):
        def const_spec(shape):
            nd = len(shape)
            imap = (lambda *gi, _nd=nd: (0,) * _nd)
            if single_buffer_consts:
                # Constant block index across the grid -> no point double-buffering.
                return pl.BlockSpec(shape, imap, pipeline_mode=pl.Buffered(1))
            return pl.BlockSpec(shape, imap)

        in_specs = [
            pl.BlockSpec((Bt, Lk, E), lambda n: (n, 0, 0)),   # value
            pl.BlockSpec((Bt, Lk, E), lambda n: (n, 0, 0)),   # key
            pl.BlockSpec((Bt, Lq, E), lambda n: (n, 0, 0)),   # query
        ] + [const_spec(s) for s in const_shapes]

        return pl.pallas_call(
            kernel,
            out_shape=jax.ShapeDtypeStruct((N, Lq, E), out_dtype),
            grid=grid,
            in_specs=in_specs,
            out_specs=pl.BlockSpec((Bt, Lq, E), lambda n: (n, 0, 0)),
            scratch_shapes=[pltpu.VMEM((Bt, Lq, E), jnp.float32)],
            compiler_params=pltpu.CompilerParams(
                dimension_semantics=("parallel",),
                vmem_limit_bytes=vmem_limit),
        )(*args)

    try:
        return call(True)
    except Exception:
        # Fallback for Pallas versions that reject single-buffered (Buffered(1)) blocks.
        return call(False)


# ---------------------------------------------------------------------------
# Pure-JAX reference (mirrors the PyTorch forward exactly)
# ---------------------------------------------------------------------------
def transformer_block_ref(value, key, query, mask4d, params, *, heads):
    N, Lq, E = query.shape
    hd = E // heads

    def proj(x, w):  # nn.Linear(hd, hd, bias=False) applied to last dim
        return jnp.einsum("nlhd,ed->nlhe", x.reshape(N, -1, heads, hd), w)

    v = proj(value, params["wv"])
    k = proj(key, params["wk"])
    q = proj(query, params["wq"])

    energy = jnp.einsum("nqhd,nkhd->nhqk", q, k)
    energy = jnp.where(mask4d == 0, -1e20, energy)
    attn = jax.nn.softmax(energy / jnp.sqrt(jnp.float32(E)), axis=3)
    out = jnp.einsum("nhql,nlhd->nqhd", attn, v).reshape(N, Lq, E)
    attn_out = out @ params["wo"].T + params["bo"]

    def ln(x, g, b, eps=1e-5):
        mu = jnp.mean(x, axis=-1, keepdims=True)
        var = jnp.mean((x - mu) ** 2, axis=-1, keepdims=True)
        return (x - mu) / jnp.sqrt(var + eps) * g + b

    x1 = ln(attn_out + query, params["gamma1"], params["beta1"])
    ff = jnp.maximum(x1 @ params["w1"].T + params["b1"], 0.0) @ params["w2"].T + params["b2"]
    return ln(ff + x1, params["gamma2"], params["beta2"])


# ---------------------------------------------------------------------------
if __name__ == "__main__":
    # Small config: embed=32, heads=4 (head_dim=8), seq=8, batch=2, expansion=4.
    N, L, E, H, FE = 2, 8, 32, 4, 4
    hd = E // H
    hidden = FE * E

    root = jax.random.PRNGKey(0)
    ks = jax.random.split(root, 16)

    params = {
        "wv": 0.1 * jax.random.normal(ks[0], (hd, hd), jnp.float32),
        "wk": 0.1 * jax.random.normal(ks[1], (hd, hd), jnp.float32),
        "wq": 0.1 * jax.random.normal(ks[2], (hd, hd), jnp.float32),
        "wo": 0.1 * jax.random.normal(ks[3], (E, E), jnp.float32),
        "bo": 0.1 * jax.random.normal(ks[4], (E,), jnp.float32),
        "gamma1": 1.0 + 0.05 * jax.random.normal(ks[5], (E,), jnp.float32),
        "beta1": 0.05 * jax.random.normal(ks[6], (E,), jnp.float32),
        "gamma2": 1.0 + 0.05 * jax.random.normal(ks[7], (E,), jnp.float32),
        "beta2": 0.05 * jax.random.normal(ks[8], (E,), jnp.float32),
        "w1": 0.1 * jax.random.normal(ks[9], (hidden, E), jnp.float32),
        "b1": 0.1 * jax.random.normal(ks[10], (hidden,), jnp.float32),
        "w2": 0.1 * jax.random.normal(ks[11], (E, hidden), jnp.float32),
        "b2": 0.1 * jax.random.normal(ks[12], (E,), jnp.float32),
    }

    value = jax.random.normal(ks[13], (N, L, E), jnp.float32)
    key = jax.random.normal(ks[14], (N, L, E), jnp.float32)
    query = jax.random.normal(ks[15], (N, L, E), jnp.float32)

    # Causal mask (nonzero == attend). Kernel takes the (L, L) mask; the
    # reference uses the torch-style broadcast (N, H, L, L) version.
    mask2d = jnp.tril(jnp.ones((L, L), jnp.float32))
    mask4d = jnp.broadcast_to(mask2d, (N, H, L, L))

    ref = transformer_block_ref(value, key, query, mask4d, params, heads=H)

    # f32 MXU-operand path: exact softmax reciprocal -> tight tolerance.
    out_f32 = transformer_block(value, key, query, mask2d, params, heads=H,
                                compute_dtype=jnp.float32)
    out_f32 = jax.block_until_ready(out_f32)
    assert out_f32.shape == (N, L, E)
    err = jnp.max(jnp.abs(out_f32 - ref))
    assert jnp.allclose(out_f32, ref, rtol=1e-3, atol=1e-3), f"f32 max abs err {err}"

    # bf16 MXU-operand path (default on all TPU generations); accumulation,
    # softmax stats, LayerNorm and the query residual remain f32.
    out_bf16 = transformer_block(value, key, query, mask2d, params, heads=H)
    out_bf16 = jax.block_until_ready(out_bf16)
    err_bf16 = jnp.max(jnp.abs(out_bf16 - ref))
    assert jnp.allclose(out_bf16, ref, rtol=1e-1, atol=1e-1), (
        f"bf16 max abs err {err_bf16}")

    print("KERNEL_OK")
</pallas_src>

<mosaic_0001>
module attributes {stable_mosaic.version = 11 : i64} {
  func.func @transformer_block_kernel(%arg0: i32, %arg1: memref<2x8x32xf32, #tpu.memory_space<vmem>>, %arg2: memref<2x8x32xf32, #tpu.memory_space<vmem>>, %arg3: memref<2x8x32xf32, #tpu.memory_space<vmem>>, %arg4: memref<8x8xf32, #tpu.memory_space<vmem>>, %arg5: memref<32x32xf32, #tpu.memory_space<vmem>>, %arg6: memref<32x32xf32, #tpu.memory_space<vmem>>, %arg7: memref<32x32xf32, #tpu.memory_space<vmem>>, %arg8: memref<32x32xf32, #tpu.memory_space<vmem>>, %arg9: memref<1x32xf32, #tpu.memory_space<vmem>>, %arg10: memref<1x32xf32, #tpu.memory_space<vmem>>, %arg11: memref<1x32xf32, #tpu.memory_space<vmem>>, %arg12: memref<1x32xf32, #tpu.memory_space<vmem>>, %arg13: memref<1x32xf32, #tpu.memory_space<vmem>>, %arg14: memref<32x128xf32, #tpu.memory_space<vmem>>, %arg15: memref<1x128xf32, #tpu.memory_space<vmem>>, %arg16: memref<128x32xf32, #tpu.memory_space<vmem>>, %arg17: memref<1x32xf32, #tpu.memory_space<vmem>>, %arg18: memref<2x8x32xf32, #tpu.memory_space<vmem>>, %arg19: memref<2x8x32xf32, #tpu.memory_space<vmem>>) attributes {dimension_semantics = [#tpu.dimension_semantics<parallel>], iteration_bounds = array<i64: 1>, scalar_prefetch = 0 : i64, scratch_operands = 1 : i64, tpu.core_type = #tpu.core_type<tc>, window_params = [{transform_indices = @transform_0, window_bounds = array<i64: 2, 8, 32>}, {transform_indices = @transform_1, window_bounds = array<i64: 2, 8, 32>}, {transform_indices = @transform_2, window_bounds = array<i64: 2, 8, 32>}, {pipeline_mode = #tpu.pipeline_mode<synchronous>, transform_indices = @transform_3, window_bounds = array<i64: 8, 8>}, {pipeline_mode = #tpu.pipeline_mode<synchronous>, transform_indices = @transform_4, window_bounds = array<i64: 32, 32>}, {pipeline_mode = #tpu.pipeline_mode<synchronous>, transform_indices = @transform_5, window_bounds = array<i64: 32, 32>}, {pipeline_mode = #tpu.pipeline_mode<synchronous>, transform_indices = @transform_6, window_bounds = array<i64: 32, 32>}, {pipeline_mode = #tpu.pipeline_mode<synchronous>, transform_indices = @transform_7, window_bounds = array<i64: 32, 32>}, {pipeline_mode = #tpu.pipeline_mode<synchronous>, transform_indices = @transform_8, window_bounds = array<i64: 1, 32>}, {pipeline_mode = #tpu.pipeline_mode<synchronous>, transform_indices = @transform_9, window_bounds = array<i64: 1, 32>}, {pipeline_mode = #tpu.pipeline_mode<synchronous>, transform_indices = @transform_10, window_bounds = array<i64: 1, 32>}, {pipeline_mode = #tpu.pipeline_mode<synchronous>, transform_indices = @transform_11, window_bounds = array<i64: 1, 32>}, {pipeline_mode = #tpu.pipeline_mode<synchronous>, transform_indices = @transform_12, window_bounds = array<i64: 1, 32>}, {pipeline_mode = #tpu.pipeline_mode<synchronous>, transform_indices = @transform_13, window_bounds = array<i64: 32, 128>}, {pipeline_mode = #tpu.pipeline_mode<synchronous>, transform_indices = @transform_14, window_bounds = array<i64: 1, 128>}, {pipeline_mode = #tpu.pipeline_mode<synchronous>, transform_indices = @transform_15, window_bounds = array<i64: 128, 32>}, {pipeline_mode = #tpu.pipeline_mode<synchronous>, transform_indices = @transform_16, window_bounds = array<i64: 1, 32>}, {transform_indices = @transform_17, window_bounds = array<i64: 2, 8, 32>}]} {
    %c0 = arith.constant 0 : index
    %c0_0 = arith.constant 0 : index
    %0 = vector.load %arg5[%c0, %c0_0] : memref<32x32xf32, #tpu.memory_space<vmem>>, vector<32x32xf32>
    %c0_1 = arith.constant 0 : index
    %c0_2 = arith.constant 0 : index
    %1 = vector.load %arg6[%c0_1, %c0_2] : memref<32x32xf32, #tpu.memory_space<vmem>>, vector<32x32xf32>
    %c0_3 = arith.constant 0 : index
    %c0_4 = arith.constant 0 : index
    %2 = vector.load %arg7[%c0_3, %c0_4] : memref<32x32xf32, #tpu.memory_space<vmem>>, vector<32x32xf32>
    %c0_5 = arith.constant 0 : index
    %c0_6 = arith.constant 0 : index
    %3 = vector.load %arg8[%c0_5, %c0_6] : memref<32x32xf32, #tpu.memory_space<vmem>>, vector<32x32xf32>
    %c0_7 = arith.constant 0 : index
    %c0_8 = arith.constant 0 : index
    %4 = vector.load %arg14[%c0_7, %c0_8] : memref<32x128xf32, #tpu.memory_space<vmem>>, vector<32x128xf32>
    %c0_9 = arith.constant 0 : index
    %c0_10 = arith.constant 0 : index
    %5 = vector.load %arg16[%c0_9, %c0_10] : memref<128x32xf32, #tpu.memory_space<vmem>>, vector<128x32xf32>
    %c0_11 = arith.constant 0 : index
    %c0_12 = arith.constant 0 : index
    %6 = vector.load %arg4[%c0_11, %c0_12] : memref<8x8xf32, #tpu.memory_space<vmem>>, vector<8x8xf32>
    %c0_13 = arith.constant 0 : index
    %c0_14 = arith.constant 0 : index
    %c0_15 = arith.constant 0 : index
    %7 = vector.load %arg1[%c0_13, %c0_14, %c0_15] : memref<2x8x32xf32, #tpu.memory_space<vmem>>, vector<2x8x32xf32>
    %8 = vector.shape_cast %7 : vector<2x8x32xf32> to vector<16x32xf32>
    %c0_16 = arith.constant 0 : index
    %c0_17 = arith.constant 0 : index
    %c0_18 = arith.constant 0 : index
    %9 = vector.load %arg2[%c0_16, %c0_17, %c0_18] : memref<2x8x32xf32, #tpu.memory_space<vmem>>, vector<2x8x32xf32>
    %10 = vector.shape_cast %9 : vector<2x8x32xf32> to vector<16x32xf32>
    %c0_19 = arith.constant 0 : index
    %c0_20 = arith.constant 0 : index
    %c0_21 = arith.constant 0 : index
    %11 = vector.load %arg3[%c0_19, %c0_20, %c0_21] : memref<2x8x32xf32, #tpu.memory_space<vmem>>, vector<2x8x32xf32>
    %12 = vector.shape_cast %11 : vector<2x8x32xf32> to vector<16x32xf32>
    %cst = arith.constant dense<0.000000e+00> : vector<16x32xf32>
    %13 = tpu.matmul %12, %2, %cst {dimension_numbers = #tpu.dot_dimension_numbers<[1], [0], [0], [1], [0, 0, 1, 1], [], []>} : vector<16x32xf32>, vector<32x32xf32>, vector<16x32xf32> -> vector<16x32xf32>
    %cst_22 = arith.constant dense<0.000000e+00> : vector<16x32xf32>
    %14 = tpu.matmul %10, %1, %cst_22 {dimension_numbers = #tpu.dot_dimension_numbers<[1], [0], [0], [1], [0, 0, 1, 1], [], []>} : vector<16x32xf32>, vector<32x32xf32>, vector<16x32xf32> -> vector<16x32xf32>
    %cst_23 = arith.constant dense<0.000000e+00> : vector<16x32xf32>
    %15 = tpu.matmul %8, %0, %cst_23 {dimension_numbers = #tpu.dot_dimension_numbers<[1], [0], [0], [1], [0, 0, 1, 1], [], []>} : vector<16x32xf32>, vector<32x32xf32>, vector<16x32xf32> -> vector<16x32xf32>
    %16 = vector.shape_cast %13 : vector<16x32xf32> to vector<2x8x32xf32>
    %17 = vector.shape_cast %14 : vector<16x32xf32> to vector<2x8x32xf32>
    %18 = vector.shape_cast %15 : vector<16x32xf32> to vector<2x8x32xf32>
    %19 = vector.extract_strided_slice %16 {offsets = [0, 0, 0], sizes = [2, 8, 8], strides = [1, 1, 1]} : vector<2x8x32xf32> to vector<2x8x8xf32>
    %20 = vector.extract_strided_slice %17 {offsets = [0, 0, 0], sizes = [2, 8, 8], strides = [1, 1, 1]} : vector<2x8x32xf32> to vector<2x8x8xf32>
    "tpu.trace_start"() <{level = 10 : i32, message = "bqd,bkd->bqk"}> : () -> ()
    %cst_24 = arith.constant dense<0.000000e+00> : vector<2x8x8xf32>
    %21 = tpu.matmul %19, %20, %cst_24 {dimension_numbers = #tpu.dot_dimension_numbers<[2], [2], [1], [1], [0, 0, 0, 1, 1, 1], [0], [0]>} : vector<2x8x8xf32>, vector<2x8x8xf32>, vector<2x8x8xf32> -> vector<2x8x8xf32>
    "tpu.trace_stop"() : () -> ()
    %22 = vector.shape_cast %6 : vector<8x8xf32> to vector<1x8x8xf32>
    %23 = vector.broadcast %22 : vector<1x8x8xf32> to vector<2x8x8xf32>
    %24 = arith.addf %21, %23 : vector<2x8x8xf32>
    %cst_25 = arith.constant dense<0xFF800000> : vector<2x8xf32>
    %25 = vector.multi_reduction <maximumf>, %24, %cst_25 [2] : vector<2x8x8xf32> to vector<2x8xf32>
    %26 = vector.shape_cast %25 : vector<2x8xf32> to vector<2x8x1xf32>
    %27 = vector.broadcast %26 : vector<2x8x1xf32> to vector<2x8x8xf32>
    %28 = arith.subf %24, %27 : vector<2x8x8xf32>
    %29 = math.exp %28 : vector<2x8x8xf32>
    %cst_26 = arith.constant dense<0.000000e+00> : vector<2x8xf32>
    %30 = vector.multi_reduction <add>, %29, %cst_26 [2] : vector<2x8x8xf32> to vector<2x8xf32>
    %31 = vector.shape_cast %30 : vector<2x8xf32> to vector<2x8x1xf32>
    %32 = vector.broadcast %31 : vector<2x8x1xf32> to vector<2x8x8xf32>
    %33 = arith.divf %29, %32 : vector<2x8x8xf32>
    %34 = vector.extract_strided_slice %18 {offsets = [0, 0, 0], sizes = [2, 8, 8], strides = [1, 1, 1]} : vector<2x8x32xf32> to vector<2x8x8xf32>
    "tpu.trace_start"() <{level = 10 : i32, message = "bqk,bkd->bqd"}> : () -> ()
    %cst_27 = arith.constant dense<0.000000e+00> : vector<2x8x8xf32>
    %35 = tpu.matmul %33, %34, %cst_27 {dimension_numbers = #tpu.dot_dimension_numbers<[2], [1], [1], [2], [0, 0, 0, 1, 1, 2], [0], [0]>} : vector<2x8x8xf32>, vector<2x8x8xf32>, vector<2x8x8xf32> -> vector<2x8x8xf32>
    "tpu.trace_stop"() : () -> ()
    %c0_28 = arith.constant 0 : index
    %c0_29 = arith.constant 0 : index
    %c0_30 = arith.constant 0 : index
    %36 = vector.load %arg19[%c0_28, %c0_29, %c0_30] : memref<2x8x32xf32, #tpu.memory_space<vmem>>, vector<2x8x8xf32>
    tpu.vector_store %arg19[%c0_28, %c0_29, %c0_30], %35 {strides = array<i32>} : memref<2x8x32xf32, #tpu.memory_space<vmem>>, vector<2x8x8xf32>,
    %37 = vector.extract_strided_slice %16 {offsets = [0, 0, 8], sizes = [2, 8, 8], strides = [1, 1, 1]} : vector<2x8x32xf32> to vector<2x8x8xf32>
    %38 = vector.extract_strided_slice %17 {offsets = [0, 0, 8], sizes = [2, 8, 8], strides = [1, 1, 1]} : vector<2x8x32xf32> to vector<2x8x8xf32>
    "tpu.trace_start"() <{level = 10 : i32, message = "bqd,bkd->bqk"}> : () -> ()
    %cst_31 = arith.constant dense<0.000000e+00> : vector<2x8x8xf32>
    %39 = tpu.matmul %37, %38, %cst_31 {dimension_numbers = #tpu.dot_dimension_numbers<[2], [2], [1], [1], [0, 0, 0, 1, 1, 1], [0], [0]>} : vector<2x8x8xf32>, vector<2x8x8xf32>, vector<2x8x8xf32> -> vector<2x8x8xf32>
    "tpu.trace_stop"() : () -> ()
    %40 = vector.shape_cast %6 : vector<8x8xf32> to vector<1x8x8xf32>
    %41 = vector.broadcast %40 : vector<1x8x8xf32> to vector<2x8x8xf32>
    %42 = arith.addf %39, %41 : vector<2x8x8xf32>
    %cst_32 = arith.constant dense<0xFF800000> : vector<2x8xf32>
    %43 = vector.multi_reduction <maximumf>, %42, %cst_32 [2] : vector<2x8x8xf32> to vector<2x8xf32>
    %44 = vector.shape_cast %43 : vector<2x8xf32> to vector<2x8x1xf32>
    %45 = vector.broadcast %44 : vector<2x8x1xf32> to vector<2x8x8xf32>
    %46 = arith.subf %42, %45 : vector<2x8x8xf32>
    %47 = math.exp %46 : vector<2x8x8xf32>
    %cst_33 = arith.constant dense<0.000000e+00> : vector<2x8xf32>
    %48 = vector.multi_reduction <add>, %47, %cst_33 [2] : vector<2x8x8xf32> to vector<2x8xf32>
    %49 = vector.shape_cast %48 : vector<2x8xf32> to vector<2x8x1xf32>
    %50 = vector.broadcast %49 : vector<2x8x1xf32> to vector<2x8x8xf32>
    %51 = arith.divf %47, %50 : vector<2x8x8xf32>
    %52 = vector.extract_strided_slice %18 {offsets = [0, 0, 8], sizes = [2, 8, 8], strides = [1, 1, 1]} : vector<2x8x32xf32> to vector<2x8x8xf32>
    "tpu.trace_start"() <{level = 10 : i32, message = "bqk,bkd->bqd"}> : () -> ()
    %cst_34 = arith.constant dense<0.000000e+00> : vector<2x8x8xf32>
    %53 = tpu.matmul %51, %52, %cst_34 {dimension_numbers = #tpu.dot_dimension_numbers<[2], [1], [1], [2], [0, 0, 0, 1, 1, 2], [0], [0]>} : vector<2x8x8xf32>, vector<2x8x8xf32>, vector<2x8x8xf32> -> vector<2x8x8xf32>
    "tpu.trace_stop"() : () -> ()
    %c0_35 = arith.constant 0 : index
    %c0_36 = arith.constant 0 : index
    %c8 = arith.constant 8 : index
    %54 = vector.load %arg19[%c0_35, %c0_36, %c8] : memref<2x8x32xf32, #tpu.memory_space<vmem>>, vector<2x8x8xf32>
    tpu.vector_store %arg19[%c0_35, %c0_36, %c8], %53 {strides = array<i32>} : memref<2x8x32xf32, #tpu.memory_space<vmem>>, vector<2x8x8xf32>,
    %55 = vector.extract_strided_slice %16 {offsets = [0, 0, 16], sizes = [2, 8, 8], strides = [1, 1, 1]} : vector<2x8x32xf32> to vector<2x8x8xf32>
    %56 = vector.extract_strided_slice %17 {offsets = [0, 0, 16], sizes = [2, 8, 8], strides = [1, 1, 1]} : vector<2x8x32xf32> to vector<2x8x8xf32>
    "tpu.trace_start"() <{level = 10 : i32, message = "bqd,bkd->bqk"}> : () -> ()
    %cst_37 = arith.constant dense<0.000000e+00> : vector<2x8x8xf32>
    %57 = tpu.matmul %55, %56, %cst_37 {dimension_numbers = #tpu.dot_dimension_numbers<[2], [2], [1], [1], [0, 0, 0, 1, 1, 1], [0], [0]>} : vector<2x8x8xf32>, vector<2x8x8xf32>, vector<2x8x8xf32> -> vector<2x8x8xf32>
    "tpu.trace_stop"() : () -> ()
    %58 = vector.shape_cast %6 : vector<8x8xf32> to vector<1x8x8xf32>
    %59 = vector.broadcast %58 : vector<1x8x8xf32> to vector<2x8x8xf32>
    %60 = arith.addf %57, %59 : vector<2x8x8xf32>
    %cst_38 = arith.constant dense<0xFF800000> : vector<2x8xf32>
    %61 = vector.multi_reduction <maximumf>, %60, %cst_38 [2] : vector<2x8x8xf32> to vector<2x8xf32>
    %62 = vector.shape_cast %61 : vector<2x8xf32> to vector<2x8x1xf32>
    %63 = vector.broadcast %62 : vector<2x8x1xf32> to vector<2x8x8xf32>
    %64 = arith.subf %60, %63 : vector<2x8x8xf32>
    %65 = math.exp %64 : vector<2x8x8xf32>
    %cst_39 = arith.constant dense<0.000000e+00> : vector<2x8xf32>
    %66 = vector.multi_reduction <add>, %65, %cst_39 [2] : vector<2x8x8xf32> to vector<2x8xf32>
    %67 = vector.shape_cast %66 : vector<2x8xf32> to vector<2x8x1xf32>
    %68 = vector.broadcast %67 : vector<2x8x1xf32> to vector<2x8x8xf32>
    %69 = arith.divf %65, %68 : vector<2x8x8xf32>
    %70 = vector.extract_strided_slice %18 {offsets = [0, 0, 16], sizes = [2, 8, 8], strides = [1, 1, 1]} : vector<2x8x32xf32> to vector<2x8x8xf32>
    "tpu.trace_start"() <{level = 10 : i32, message = "bqk,bkd->bqd"}> : () -> ()
    %cst_40 = arith.constant dense<0.000000e+00> : vector<2x8x8xf32>
    %71 = tpu.matmul %69, %70, %cst_40 {dimension_numbers = #tpu.dot_dimension_numbers<[2], [1], [1], [2], [0, 0, 0, 1, 1, 2], [0], [0]>} : vector<2x8x8xf32>, vector<2x8x8xf32>, vector<2x8x8xf32> -> vector<2x8x8xf32>
    "tpu.trace_stop"() : () -> ()
    %c0_41 = arith.constant 0 : index
    %c0_42 = arith.constant 0 : index
    %c16 = arith.constant 16 : index
    %72 = vector.load %arg19[%c0_41, %c0_42, %c16] : memref<2x8x32xf32, #tpu.memory_space<vmem>>, vector<2x8x8xf32>
    tpu.vector_store %arg19[%c0_41, %c0_42, %c16], %71 {strides = array<i32>} : memref<2x8x32xf32, #tpu.memory_space<vmem>>, vector<2x8x8xf32>,
    %73 = vector.extract_strided_slice %16 {offsets = [0, 0, 24], sizes = [2, 8, 8], strides = [1, 1, 1]} : vector<2x8x32xf32> to vector<2x8x8xf32>
    %74 = vector.extract_strided_slice %17 {offsets = [0, 0, 24], sizes = [2, 8, 8], strides = [1, 1, 1]} : vector<2x8x32xf32> to vector<2x8x8xf32>
    "tpu.trace_start"() <{level = 10 : i32, message = "bqd,bkd->bqk"}> : () -> ()
    %cst_43 = arith.constant dense<0.000000e+00> : vector<2x8x8xf32>
    %75 = tpu.matmul %73, %74, %cst_43 {dimension_numbers = #tpu.dot_dimension_numbers<[2], [2], [1], [1], [0, 0, 0, 1, 1, 1], [0], [0]>} : vector<2x8x8xf32>, vector<2x8x8xf32>, vector<2x8x8xf32> -> vector<2x8x8xf32>
    "tpu.trace_stop"() : () -> ()
    %76 = vector.shape_cast %6 : vector<8x8xf32> to vector<1x8x8xf32>
    %77 = vector.broadcast %76 : vector<1x8x8xf32> to vector<2x8x8xf32>
    %78 = arith.addf %75, %77 : vector<2x8x8xf32>
    %cst_44 = arith.constant dense<0xFF800000> : vector<2x8xf32>
    %79 = vector.multi_reduction <maximumf>, %78, %cst_44 [2] : vector<2x8x8xf32> to vector<2x8xf32>
    %80 = vector.shape_cast %79 : vector<2x8xf32> to vector<2x8x1xf32>
    %81 = vector.broadcast %80 : vector<2x8x1xf32> to vector<2x8x8xf32>
    %82 = arith.subf %78, %81 : vector<2x8x8xf32>
    %83 = math.exp %82 : vector<2x8x8xf32>
    %cst_45 = arith.constant dense<0.000000e+00> : vector<2x8xf32>
    %84 = vector.multi_reduction <add>, %83, %cst_45 [2] : vector<2x8x8xf32> to vector<2x8xf32>
    %85 = vector.shape_cast %84 : vector<2x8xf32> to vector<2x8x1xf32>
    %86 = vector.broadcast %85 : vector<2x8x1xf32> to vector<2x8x8xf32>
    %87 = arith.divf %83, %86 : vector<2x8x8xf32>
    %88 = vector.extract_strided_slice %18 {offsets = [0, 0, 24], sizes = [2, 8, 8], strides = [1, 1, 1]} : vector<2x8x32xf32> to vector<2x8x8xf32>
    "tpu.trace_start"() <{level = 10 : i32, message = "bqk,bkd->bqd"}> : () -> ()
    %cst_46 = arith.constant dense<0.000000e+00> : vector<2x8x8xf32>
    %89 = tpu.matmul %87, %88, %cst_46 {dimension_numbers = #tpu.dot_dimension_numbers<[2], [1], [1], [2], [0, 0, 0, 1, 1, 2], [0], [0]>} : vector<2x8x8xf32>, vector<2x8x8xf32>, vector<2x8x8xf32> -> vector<2x8x8xf32>
    "tpu.trace_stop"() : () -> ()
    %c0_47 = arith.constant 0 : index
    %c0_48 = arith.constant 0 : index
    %c24 = arith.constant 24 : index
    %90 = vector.load %arg19[%c0_47, %c0_48, %c24] : memref<2x8x32xf32, #tpu.memory_space<vmem>>, vector<2x8x8xf32>
    tpu.vector_store %arg19[%c0_47, %c0_48, %c24], %89 {strides = array<i32>} : memref<2x8x32xf32, #tpu.memory_space<vmem>>, vector<2x8x8xf32>,
    %c0_49 = arith.constant 0 : index
    %c0_50 = arith.constant 0 : index
    %c0_51 = arith.constant 0 : index
    %91 = vector.load %arg19[%c0_49, %c0_50, %c0_51] : memref<2x8x32xf32, #tpu.memory_space<vmem>>, vector<2x8x32xf32>
    %92 = vector.shape_cast %91 : vector<2x8x32xf32> to vector<16x32xf32>
    %cst_52 = arith.constant dense<0.000000e+00> : vector<16x32xf32>
    %93 = tpu.matmul %92, %3, %cst_52 {dimension_numbers = #tpu.dot_dimension_numbers<[1], [0], [0], [1], [0, 0, 1, 1], [], []>} : vector<16x32xf32>, vector<32x32xf32>, vector<16x32xf32> -> vector<16x32xf32>
    %c0_53 = arith.constant 0 : index
    %c0_54 = arith.constant 0 : index
    %94 = vector.load %arg9[%c0_53, %c0_54] : memref<1x32xf32, #tpu.memory_space<vmem>>, vector<1x32xf32>
    %95 = vector.shape_cast %94 : vector<1x32xf32> to vector<32xf32>
    %96 = vector.shape_cast %95 : vector<32xf32> to vector<1x32xf32>
    %97 = vector.broadcast %96 : vector<1x32xf32> to vector<16x32xf32>
    %98 = arith.addf %93, %97 : vector<16x32xf32>
    %99 = arith.addf %98, %12 : vector<16x32xf32>
    %c0_55 = arith.constant 0 : index
    %c0_56 = arith.constant 0 : index
    %100 = vector.load %arg10[%c0_55, %c0_56] : memref<1x32xf32, #tpu.memory_space<vmem>>, vector<1x32xf32>
    %101 = vector.shape_cast %100 : vector<1x32xf32> to vector<32xf32>
    %c0_57 = arith.constant 0 : index
    %c0_58 = arith.constant 0 : index
    %102 = vector.load %arg11[%c0_57, %c0_58] : memref<1x32xf32, #tpu.memory_space<vmem>>, vector<1x32xf32>
    %103 = vector.shape_cast %102 : vector<1x32xf32> to vector<32xf32>
    %cst_59 = arith.constant dense<0.000000e+00> : vector<16xf32>
    %104 = vector.multi_reduction <add>, %99, %cst_59 [1] : vector<16x32xf32> to vector<16xf32>
    %105 = vector.shape_cast %104 : vector<16xf32> to vector<16x1xf32>
    %cst_60 = arith.constant 3.200000e+01 : f32
    %106 = vector.broadcast %cst_60 : f32 to vector<16x1xf32>
    %107 = arith.divf %105, %106 : vector<16x1xf32>
    %108 = vector.broadcast %107 : vector<16x1xf32> to vector<16x32xf32>
    %109 = arith.subf %99, %108 : vector<16x32xf32>
    %110 = arith.mulf %109, %109 : vector<16x32xf32>
    %cst_61 = arith.constant dense<0.000000e+00> : vector<16xf32>
    %111 = vector.multi_reduction <add>, %110, %cst_61 [1] : vector<16x32xf32> to vector<16xf32>
    %112 = vector.shape_cast %111 : vector<16xf32> to vector<16x1xf32>
    %cst_62 = arith.constant 3.200000e+01 : f32
    %113 = vector.broadcast %cst_62 : f32 to vector<16x1xf32>
    %114 = arith.divf %112, %113 : vector<16x1xf32>
    %115 = vector.broadcast %107 : vector<16x1xf32> to vector<16x32xf32>
    %116 = arith.subf %99, %115 : vector<16x32xf32>
    %cst_63 = arith.constant 9.99999974E-6 : f32
    %117 = vector.broadcast %cst_63 : f32 to vector<16x1xf32>
    %118 = arith.addf %114, %117 : vector<16x1xf32>
    %119 = math.rsqrt %118 : vector<16x1xf32>
    %120 = vector.broadcast %119 : vector<16x1xf32> to vector<16x32xf32>
    %121 = arith.mulf %116, %120 : vector<16x32xf32>
    %122 = vector.shape_cast %101 : vector<32xf32> to vector<1x32xf32>
    %123 = vector.broadcast %122 : vector<1x32xf32> to vector<16x32xf32>
    %124 = arith.mulf %121, %123 : vector<16x32xf32>
    %125 = vector.shape_cast %103 : vector<32xf32> to vector<1x32xf32>
    %126 = vector.broadcast %125 : vector<1x32xf32> to vector<16x32xf32>
    %127 = arith.addf %124, %126 : vector<16x32xf32>
    %cst_64 = arith.constant dense<0.000000e+00> : vector<16x128xf32>
    %128 = tpu.matmul %127, %4, %cst_64 {dimension_numbers = #tpu.dot_dimension_numbers<[1], [0], [0], [1], [0, 0, 1, 1], [], []>} : vector<16x32xf32>, vector<32x128xf32>, vector<16x128xf32> -> vector<16x128xf32>
    %c0_65 = arith.constant 0 : index
    %c0_66 = arith.constant 0 : index
    %129 = vector.load %arg15[%c0_65, %c0_66] : memref<1x128xf32, #tpu.memory_space<vmem>>, vector<1x128xf32>
    %130 = vector.shape_cast %129 : vector<1x128xf32> to vector<128xf32>
    %131 = vector.shape_cast %130 : vector<128xf32> to vector<1x128xf32>
    %132 = vector.broadcast %131 : vector<1x128xf32> to vector<16x128xf32>
    %133 = arith.addf %128, %132 : vector<16x128xf32>
    %cst_67 = arith.constant 0.000000e+00 : f32
    %134 = vector.broadcast %cst_67 : f32 to vector<16x128xf32>
    %135 = arith.maximumf %133, %134 : vector<16x128xf32>
    %cst_68 = arith.constant dense<0.000000e+00> : vector<16x32xf32>
    %136 = tpu.matmul %135, %5, %cst_68 {dimension_numbers = #tpu.dot_dimension_numbers<[1], [0], [0], [1], [0, 0, 1, 1], [], []>} : vector<16x128xf32>, vector<128x32xf32>, vector<16x32xf32> -> vector<16x32xf32>
    %c0_69 = arith.constant 0 : index
    %c0_70 = arith.constant 0 : index
    %137 = vector.load %arg17[%c0_69, %c0_70] : memref<1x32xf32, #tpu.memory_space<vmem>>, vector<1x32xf32>
    %138 = vector.shape_cast %137 : vector<1x32xf32> to vector<32xf32>
    %139 = vector.shape_cast %138 : vector<32xf32> to vector<1x32xf32>
    %140 = vector.broadcast %139 : vector<1x32xf32> to vector<16x32xf32>
    %141 = arith.addf %136, %140 : vector<16x32xf32>
    %142 = arith.addf %141, %127 : vector<16x32xf32>
    %c0_71 = arith.constant 0 : index
    %c0_72 = arith.constant 0 : index
    %143 = vector.load %arg12[%c0_71, %c0_72] : memref<1x32xf32, #tpu.memory_space<vmem>>, vector<1x32xf32>
    %144 = vector.shape_cast %143 : vector<1x32xf32> to vector<32xf32>
    %c0_73 = arith.constant 0 : index
    %c0_74 = arith.constant 0 : index
    %145 = vector.load %arg13[%c0_73, %c0_74] : memref<1x32xf32, #tpu.memory_space<vmem>>, vector<1x32xf32>
    %146 = vector.shape_cast %145 : vector<1x32xf32> to vector<32xf32>
    %cst_75 = arith.constant dense<0.000000e+00> : vector<16xf32>
    %147 = vector.multi_reduction <add>, %142, %cst_75 [1] : vector<16x32xf32> to vector<16xf32>
    %148 = vector.shape_cast %147 : vector<16xf32> to vector<16x1xf32>
    %cst_76 = arith.constant 3.200000e+01 : f32
    %149 = vector.broadcast %cst_76 : f32 to vector<16x1xf32>
    %150 = arith.divf %148, %149 : vector<16x1xf32>
    %151 = vector.broadcast %150 : vector<16x1xf32> to vector<16x32xf32>
    %152 = arith.subf %142, %151 : vector<16x32xf32>
    %153 = arith.mulf %152, %152 : vector<16x32xf32>
    %cst_77 = arith.constant dense<0.000000e+00> : vector<16xf32>
    %154 = vector.multi_reduction <add>, %153, %cst_77 [1] : vector<16x32xf32> to vector<16xf32>
    %155 = vector.shape_cast %154 : vector<16xf32> to vector<16x1xf32>
    %cst_78 = arith.constant 3.200000e+01 : f32
    %156 = vector.broadcast %cst_78 : f32 to vector<16x1xf32>
    %157 = arith.divf %155, %156 : vector<16x1xf32>
    %158 = vector.broadcast %150 : vector<16x1xf32> to vector<16x32xf32>
    %159 = arith.subf %142, %158 : vector<16x32xf32>
    %cst_79 = arith.constant 9.99999974E-6 : f32
    %160 = vector.broadcast %cst_79 : f32 to vector<16x1xf32>
    %161 = arith.addf %157, %160 : vector<16x1xf32>
    %162 = math.rsqrt %161 : vector<16x1xf32>
    %163 = vector.broadcast %162 : vector<16x1xf32> to vector<16x32xf32>
    %164 = arith.mulf %159, %163 : vector<16x32xf32>
    %165 = vector.shape_cast %144 : vector<32xf32> to vector<1x32xf32>
    %166 = vector.broadcast %165 : vector<1x32xf32> to vector<16x32xf32>
    %167 = arith.mulf %164, %166 : vector<16x32xf32>
    %168 = vector.shape_cast %146 : vector<32xf32> to vector<1x32xf32>
    %169 = vector.broadcast %168 : vector<1x32xf32> to vector<16x32xf32>
    %170 = arith.addf %167, %169 : vector<16x32xf32>
    %171 = vector.shape_cast %170 : vector<16x32xf32> to vector<2x8x32xf32>
    %c0_80 = arith.constant 0 : index
    %c0_81 = arith.constant 0 : index
    %c0_82 = arith.constant 0 : index
    %172 = vector.load %arg18[%c0_80, %c0_81, %c0_82] : memref<2x8x32xf32, #tpu.memory_space<vmem>>, vector<2x8x32xf32>
    tpu.vector_store %arg18[%c0_80, %c0_81, %c0_82], %171 {strides = array<i32>} : memref<2x8x32xf32, #tpu.memory_space<vmem>>, vector<2x8x32xf32>,
    return
  }
  func.func @transform_0(%arg0: i32) -> (i32, i32, i32) {
    %c0_i32 = arith.constant 0 : i32
    %c0_i32_0 = arith.constant 0 : i32
    %c0_i32_1 = arith.constant 0 : i32
    return %arg0, %c0_i32, %c0_i32_0 : i32, i32, i32
  }
  func.func @transform_1(%arg0: i32) -> (i32, i32, i32) {
    %c0_i32 = arith.constant 0 : i32
    %c0_i32_0 = arith.constant 0 : i32
    %c0_i32_1 = arith.constant 0 : i32
    return %arg0, %c0_i32, %c0_i32_0 : i32, i32, i32
  }
  func.func @transform_2(%arg0: i32) -> (i32, i32, i32) {
    %c0_i32 = arith.constant 0 : i32
    %c0_i32_0 = arith.constant 0 : i32
    %c0_i32_1 = arith.constant 0 : i32
    return %arg0, %c0_i32, %c0_i32_0 : i32, i32, i32
  }
  func.func @transform_3(%arg0: i32) -> (i32, i32) {
    %c0_i32 = arith.constant 0 : i32
    %c0_i32_0 = arith.constant 0 : i32
    %c0_i32_1 = arith.constant 0 : i32
    return %c0_i32, %c0_i32_0 : i32, i32
  }
  func.func @transform_4(%arg0: i32) -> (i32, i32) {
    %c0_i32 = arith.constant 0 : i32
    %c0_i32_0 = arith.constant 0 : i32
    %c0_i32_1 = arith.constant 0 : i32
    return %c0_i32, %c0_i32_0 : i32, i32
  }
  func.func @transform_5(%arg0: i32) -> (i32, i32) {
    %c0_i32 = arith.constant 0 : i32
    %c0_i32_0 = arith.constant 0 : i32
    %c0_i32_1 = arith.constant 0 : i32
    return %c0_i32, %c0_i32_0 : i32, i32
  }
  func.func @transform_6(%arg0: i32) -> (i32, i32) {
    %c0_i32 = arith.constant 0 : i32
    %c0_i32_0 = arith.constant 0 : i32
    %c0_i32_1 = arith.constant 0 : i32
    return %c0_i32, %c0_i32_0 : i32, i32
  }
  func.func @transform_7(%arg0: i32) -> (i32, i32) {
    %c0_i32 = arith.constant 0 : i32
    %c0_i32_0 = arith.constant 0 : i32
    %c0_i32_1 = arith.constant 0 : i32
    return %c0_i32, %c0_i32_0 : i32, i32
  }
  func.func @transform_8(%arg0: i32) -> (i32, i32) {
    %c0_i32 = arith.constant 0 : i32
    %c0_i32_0 = arith.constant 0 : i32
    %c0_i32_1 = arith.constant 0 : i32
    return %c0_i32, %c0_i32_0 : i32, i32
  }
  func.func @transform_9(%arg0: i32) -> (i32, i32) {
    %c0_i32 = arith.constant 0 : i32
    %c0_i32_0 = arith.constant 0 : i32
    %c0_i32_1 = arith.constant 0 : i32
    return %c0_i32, %c0_i32_0 : i32, i32
  }
  func.func @transform_10(%arg0: i32) -> (i32, i32) {
    %c0_i32 = arith.constant 0 : i32
    %c0_i32_0 = arith.constant 0 : i32
    %c0_i32_1 = arith.constant 0 : i32
    return %c0_i32, %c0_i32_0 : i32, i32
  }
  func.func @transform_11(%arg0: i32) -> (i32, i32) {
    %c0_i32 = arith.constant 0 : i32
    %c0_i32_0 = arith.constant 0 : i32
    %c0_i32_1 = arith.constant 0 : i32
    return %c0_i32, %c0_i32_0 : i32, i32
  }
  func.func @transform_12(%arg0: i32) -> (i32, i32) {
    %c0_i32 = arith.constant 0 : i32
    %c0_i32_0 = arith.constant 0 : i32
    %c0_i32_1 = arith.constant 0 : i32
    return %c0_i32, %c0_i32_0 : i32, i32
  }
  func.func @transform_13(%arg0: i32) -> (i32, i32) {
    %c0_i32 = arith.constant 0 : i32
    %c0_i32_0 = arith.constant 0 : i32
    %c0_i32_1 = arith.constant 0 : i32
    return %c0_i32, %c0_i32_0 : i32, i32
  }
  func.func @transform_14(%arg0: i32) -> (i32, i32) {
    %c0_i32 = arith.constant 0 : i32
    %c0_i32_0 = arith.constant 0 : i32
    %c0_i32_1 = arith.constant 0 : i32
    return %c0_i32, %c0_i32_0 : i32, i32
  }
  func.func @transform_15(%arg0: i32) -> (i32, i32) {
    %c0_i32 = arith.constant 0 : i32
    %c0_i32_0 = arith.constant 0 : i32
    %c0_i32_1 = arith.constant 0 : i32
    return %c0_i32, %c0_i32_0 : i32, i32
  }
  func.func @transform_16(%arg0: i32) -> (i32, i32) {
    %c0_i32 = arith.constant 0 : i32
    %c0_i32_0 = arith.constant 0 : i32
    %c0_i32_1 = arith.constant 0 : i32
    return %c0_i32, %c0_i32_0 : i32, i32
  }
  func.func @transform_17(%arg0: i32) -> (i32, i32, i32) {
    %c0_i32 = arith.constant 0 : i32
    %c0_i32_0 = arith.constant 0 : i32
    %c0_i32_1 = arith.constant 0 : i32
    return %arg0, %c0_i32, %c0_i32_0 : i32, i32, i32
  }
}

module attributes {stable_mosaic.version = 11 : i64} {
  func.func @transformer_block_kernel(%arg0: i32, %arg1: memref<2x8x32xf32, #tpu.memory_space<vmem>>, %arg2: memref<2x8x32xf32, #tpu.memory_space<vmem>>, %arg3: memref<2x8x32xf32, #tpu.memory_space<vmem>>, %arg4: memref<8x8xf32, #tpu.memory_space<vmem>>, %arg5: memref<32x32xf32, #tpu.memory_space<vmem>>, %arg6: memref<32x32xf32, #tpu.memory_space<vmem>>, %arg7: memref<32x32xf32, #tpu.memory_space<vmem>>, %arg8: memref<32x32xf32, #tpu.memory_space<vmem>>, %arg9: memref<1x32xf32, #tpu.memory_space<vmem>>, %arg10: memref<1x32xf32, #tpu.memory_space<vmem>>, %arg11: memref<1x32xf32, #tpu.memory_space<vmem>>, %arg12: memref<1x32xf32, #tpu.memory_space<vmem>>, %arg13: memref<1x32xf32, #tpu.memory_space<vmem>>, %arg14: memref<32x128xf32, #tpu.memory_space<vmem>>, %arg15: memref<1x128xf32, #tpu.memory_space<vmem>>, %arg16: memref<128x32xf32, #tpu.memory_space<vmem>>, %arg17: memref<1x32xf32, #tpu.memory_space<vmem>>, %arg18: memref<2x8x32xf32, #tpu.memory_space<vmem>>, %arg19: memref<2x8x32xf32, #tpu.memory_space<vmem>>) attributes {dimension_semantics = [#tpu.dimension_semantics<parallel>], iteration_bounds = array<i64: 1>, scalar_prefetch = 0 : i64, scratch_operands = 1 : i64, tpu.core_type = #tpu.core_type<tc>, window_params = [{transform_indices = @transform_0, window_bounds = array<i64: 2, 8, 32>}, {transform_indices = @transform_1, window_bounds = array<i64: 2, 8, 32>}, {transform_indices = @transform_2, window_bounds = array<i64: 2, 8, 32>}, {pipeline_mode = #tpu.pipeline_mode<synchronous>, transform_indices = @transform_3, window_bounds = array<i64: 8, 8>}, {pipeline_mode = #tpu.pipeline_mode<synchronous>, transform_indices = @transform_4, window_bounds = array<i64: 32, 32>}, {pipeline_mode = #tpu.pipeline_mode<synchronous>, transform_indices = @transform_5, window_bounds = array<i64: 32, 32>}, {pipeline_mode = #tpu.pipeline_mode<synchronous>, transform_indices = @transform_6, window_bounds = array<i64: 32, 32>}, {pipeline_mode = #tpu.pipeline_mode<synchronous>, transform_indices = @transform_7, window_bounds = array<i64: 32, 32>}, {pipeline_mode = #tpu.pipeline_mode<synchronous>, transform_indices = @transform_8, window_bounds = array<i64: 1, 32>}, {pipeline_mode = #tpu.pipeline_mode<synchronous>, transform_indices = @transform_9, window_bounds = array<i64: 1, 32>}, {pipeline_mode = #tpu.pipeline_mode<synchronous>, transform_indices = @transform_10, window_bounds = array<i64: 1, 32>}, {pipeline_mode = #tpu.pipeline_mode<synchronous>, transform_indices = @transform_11, window_bounds = array<i64: 1, 32>}, {pipeline_mode = #tpu.pipeline_mode<synchronous>, transform_indices = @transform_12, window_bounds = array<i64: 1, 32>}, {pipeline_mode = #tpu.pipeline_mode<synchronous>, transform_indices = @transform_13, window_bounds = array<i64: 32, 128>}, {pipeline_mode = #tpu.pipeline_mode<synchronous>, transform_indices = @transform_14, window_bounds = array<i64: 1, 128>}, {pipeline_mode = #tpu.pipeline_mode<synchronous>, transform_indices = @transform_15, window_bounds = array<i64: 128, 32>}, {pipeline_mode = #tpu.pipeline_mode<synchronous>, transform_indices = @transform_16, window_bounds = array<i64: 1, 32>}, {transform_indices = @transform_17, window_bounds = array<i64: 2, 8, 32>}]} {
    %c0 = arith.constant 0 : index
    %c0_0 = arith.constant 0 : index
    %0 = vector.load %arg5[%c0, %c0_0] : memref<32x32xf32, #tpu.memory_space<vmem>>, vector<32x32xf32>
    %c0_1 = arith.constant 0 : index
    %c0_2 = arith.constant 0 : index
    %1 = vector.load %arg6[%c0_1, %c0_2] : memref<32x32xf32, #tpu.memory_space<vmem>>, vector<32x32xf32>
    %c0_3 = arith.constant 0 : index
    %c0_4 = arith.constant 0 : index
    %2 = vector.load %arg7[%c0_3, %c0_4] : memref<32x32xf32, #tpu.memory_space<vmem>>, vector<32x32xf32>
    %c0_5 = arith.constant 0 : index
    %c0_6 = arith.constant 0 : index
    %3 = vector.load %arg8[%c0_5, %c0_6] : memref<32x32xf32, #tpu.memory_space<vmem>>, vector<32x32xf32>
    %c0_7 = arith.constant 0 : index
    %c0_8 = arith.constant 0 : index
    %4 = vector.load %arg14[%c0_7, %c0_8] : memref<32x128xf32, #tpu.memory_space<vmem>>, vector<32x128xf32>
    %c0_9 = arith.constant 0 : index
    %c0_10 = arith.constant 0 : index
    %5 = vector.load %arg16[%c0_9, %c0_10] : memref<128x32xf32, #tpu.memory_space<vmem>>, vector<128x32xf32>
    %c0_11 = arith.constant 0 : index
    %c0_12 = arith.constant 0 : index
    %6 = vector.load %arg4[%c0_11, %c0_12] : memref<8x8xf32, #tpu.memory_space<vmem>>, vector<8x8xf32>
    %c0_13 = arith.constant 0 : index
    %c0_14 = arith.constant 0 : index
    %c0_15 = arith.constant 0 : index
    %7 = vector.load %arg1[%c0_13, %c0_14, %c0_15] : memref<2x8x32xf32, #tpu.memory_space<vmem>>, vector<2x8x32xf32>
    %8 = vector.shape_cast %7 : vector<2x8x32xf32> to vector<16x32xf32>
    %c0_16 = arith.constant 0 : index
    %c0_17 = arith.constant 0 : index
    %c0_18 = arith.constant 0 : index
    %9 = vector.load %arg2[%c0_16, %c0_17, %c0_18] : memref<2x8x32xf32, #tpu.memory_space<vmem>>, vector<2x8x32xf32>
    %10 = vector.shape_cast %9 : vector<2x8x32xf32> to vector<16x32xf32>
    %c0_19 = arith.constant 0 : index
    %c0_20 = arith.constant 0 : index
    %c0_21 = arith.constant 0 : index
    %11 = vector.load %arg3[%c0_19, %c0_20, %c0_21] : memref<2x8x32xf32, #tpu.memory_space<vmem>>, vector<2x8x32xf32>
    %12 = vector.shape_cast %11 : vector<2x8x32xf32> to vector<16x32xf32>
    %cst = arith.constant dense<0.000000e+00> : vector<16x32xf32>
    %13 = tpu.matmul %12, %2, %cst {dimension_numbers = #tpu.dot_dimension_numbers<[1], [0], [0], [1], [0, 0, 1, 1], [], []>} : vector<16x32xf32>, vector<32x32xf32>, vector<16x32xf32> -> vector<16x32xf32>
    %cst_22 = arith.constant dense<0.000000e+00> : vector<16x32xf32>
    %14 = tpu.matmul %10, %1, %cst_22 {dimension_numbers = #tpu.dot_dimension_numbers<[1], [0], [0], [1], [0, 0, 1, 1], [], []>} : vector<16x32xf32>, vector<32x32xf32>, vector<16x32xf32> -> vector<16x32xf32>
    %cst_23 = arith.constant dense<0.000000e+00> : vector<16x32xf32>
    %15 = tpu.matmul %8, %0, %cst_23 {dimension_numbers = #tpu.dot_dimension_numbers<[1], [0], [0], [1], [0, 0, 1, 1], [], []>} : vector<16x32xf32>, vector<32x32xf32>, vector<16x32xf32> -> vector<16x32xf32>
    %16 = vector.shape_cast %13 : vector<16x32xf32> to vector<2x8x32xf32>
    %17 = vector.shape_cast %14 : vector<16x32xf32> to vector<2x8x32xf32>
    %18 = vector.shape_cast %15 : vector<16x32xf32> to vector<2x8x32xf32>
    %19 = vector.extract_strided_slice %16 {offsets = [0, 0, 0], sizes = [2, 8, 8], strides = [1, 1, 1]} : vector<2x8x32xf32> to vector<2x8x8xf32>
    %20 = vector.extract_strided_slice %17 {offsets = [0, 0, 0], sizes = [2, 8, 8], strides = [1, 1, 1]} : vector<2x8x32xf32> to vector<2x8x8xf32>
    "tpu.trace_start"() <{level = 10 : i32, message = "bqd,bkd->bqk"}> : () -> ()
    %cst_24 = arith.constant dense<0.000000e+00> : vector<2x8x8xf32>
    %21 = tpu.matmul %19, %20, %cst_24 {dimension_numbers = #tpu.dot_dimension_numbers<[2], [2], [1], [1], [0, 0, 0, 1, 1, 1], [0], [0]>} : vector<2x8x8xf32>, vector<2x8x8xf32>, vector<2x8x8xf32> -> vector<2x8x8xf32>
    "tpu.trace_stop"() : () -> ()
    %22 = vector.shape_cast %6 : vector<8x8xf32> to vector<1x8x8xf32>
    %23 = vector.broadcast %22 : vector<1x8x8xf32> to vector<2x8x8xf32>
    %24 = arith.addf %21, %23 : vector<2x8x8xf32>
    %cst_25 = arith.constant dense<0xFF800000> : vector<2x8xf32>
    %25 = vector.multi_reduction <maximumf>, %24, %cst_25 [2] : vector<2x8x8xf32> to vector<2x8xf32>
    %26 = vector.shape_cast %25 : vector<2x8xf32> to vector<2x8x1xf32>
    %27 = vector.broadcast %26 : vector<2x8x1xf32> to vector<2x8x8xf32>
    %28 = arith.subf %24, %27 : vector<2x8x8xf32>
    %29 = math.exp %28 : vector<2x8x8xf32>
    %cst_26 = arith.constant dense<0.000000e+00> : vector<2x8xf32>
    %30 = vector.multi_reduction <add>, %29, %cst_26 [2] : vector<2x8x8xf32> to vector<2x8xf32>
    %31 = vector.shape_cast %30 : vector<2x8xf32> to vector<2x8x1xf32>
    %32 = vector.broadcast %31 : vector<2x8x1xf32> to vector<2x8x8xf32>
    %33 = arith.divf %29, %32 : vector<2x8x8xf32>
    %34 = vector.extract_strided_slice %18 {offsets = [0, 0, 0], sizes = [2, 8, 8], strides = [1, 1, 1]} : vector<2x8x32xf32> to vector<2x8x8xf32>
    "tpu.trace_start"() <{level = 10 : i32, message = "bqk,bkd->bqd"}> : () -> ()
    %cst_27 = arith.constant dense<0.000000e+00> : vector<2x8x8xf32>
    %35 = tpu.matmul %33, %34, %cst_27 {dimension_numbers = #tpu.dot_dimension_numbers<[2], [1], [1], [2], [0, 0, 0, 1, 1, 2], [0], [0]>} : vector<2x8x8xf32>, vector<2x8x8xf32>, vector<2x8x8xf32> -> vector<2x8x8xf32>
    "tpu.trace_stop"() : () -> ()
    %c0_28 = arith.constant 0 : index
    %c0_29 = arith.constant 0 : index
    %c0_30 = arith.constant 0 : index
    %36 = vector.load %arg19[%c0_28, %c0_29, %c0_30] : memref<2x8x32xf32, #tpu.memory_space<vmem>>, vector<2x8x8xf32>
    tpu.vector_store %arg19[%c0_28, %c0_29, %c0_30], %35 {strides = array<i32>} : memref<2x8x32xf32, #tpu.memory_space<vmem>>, vector<2x8x8xf32>,
    %37 = vector.extract_strided_slice %16 {offsets = [0, 0, 8], sizes = [2, 8, 8], strides = [1, 1, 1]} : vector<2x8x32xf32> to vector<2x8x8xf32>
    %38 = vector.extract_strided_slice %17 {offsets = [0, 0, 8], sizes = [2, 8, 8], strides = [1, 1, 1]} : vector<2x8x32xf32> to vector<2x8x8xf32>
    "tpu.trace_start"() <{level = 10 : i32, message = "bqd,bkd->bqk"}> : () -> ()
    %cst_31 = arith.constant dense<0.000000e+00> : vector<2x8x8xf32>
    %39 = tpu.matmul %37, %38, %cst_31 {dimension_numbers = #tpu.dot_dimension_numbers<[2], [2], [1], [1], [0, 0, 0, 1, 1, 1], [0], [0]>} : vector<2x8x8xf32>, vector<2x8x8xf32>, vector<2x8x8xf32> -> vector<2x8x8xf32>
    "tpu.trace_stop"() : () -> ()
    %40 = vector.shape_cast %6 : vector<8x8xf32> to vector<1x8x8xf32>
    %41 = vector.broadcast %40 : vector<1x8x8xf32> to vector<2x8x8xf32>
    %42 = arith.addf %39, %41 : vector<2x8x8xf32>
    %cst_32 = arith.constant dense<0xFF800000> : vector<2x8xf32>
    %43 = vector.multi_reduction <maximumf>, %42, %cst_32 [2] : vector<2x8x8xf32> to vector<2x8xf32>
    %44 = vector.shape_cast %43 : vector<2x8xf32> to vector<2x8x1xf32>
    %45 = vector.broadcast %44 : vector<2x8x1xf32> to vector<2x8x8xf32>
    %46 = arith.subf %42, %45 : vector<2x8x8xf32>
    %47 = math.exp %46 : vector<2x8x8xf32>
    %cst_33 = arith.constant dense<0.000000e+00> : vector<2x8xf32>
    %48 = vector.multi_reduction <add>, %47, %cst_33 [2] : vector<2x8x8xf32> to vector<2x8xf32>
    %49 = vector.shape_cast %48 : vector<2x8xf32> to vector<2x8x1xf32>
    %50 = vector.broadcast %49 : vector<2x8x1xf32> to vector<2x8x8xf32>
    %51 = arith.divf %47, %50 : vector<2x8x8xf32>
    %52 = vector.extract_strided_slice %18 {offsets = [0, 0, 8], sizes = [2, 8, 8], strides = [1, 1, 1]} : vector<2x8x32xf32> to vector<2x8x8xf32>
    "tpu.trace_start"() <{level = 10 : i32, message = "bqk,bkd->bqd"}> : () -> ()
    %cst_34 = arith.constant dense<0.000000e+00> : vector<2x8x8xf32>
    %53 = tpu.matmul %51, %52, %cst_34 {dimension_numbers = #tpu.dot_dimension_numbers<[2], [1], [1], [2], [0, 0, 0, 1, 1, 2], [0], [0]>} : vector<2x8x8xf32>, vector<2x8x8xf32>, vector<2x8x8xf32> -> vector<2x8x8xf32>
    "tpu.trace_stop"() : () -> ()
    %c0_35 = arith.constant 0 : index
    %c0_36 = arith.constant 0 : index
    %c8 = arith.constant 8 : index
    %54 = vector.load %arg19[%c0_35, %c0_36, %c8] : memref<2x8x32xf32, #tpu.memory_space<vmem>>, vector<2x8x8xf32>
    tpu.vector_store %arg19[%c0_35, %c0_36, %c8], %53 {strides = array<i32>} : memref<2x8x32xf32, #tpu.memory_space<vmem>>, vector<2x8x8xf32>,
    %55 = vector.extract_strided_slice %16 {offsets = [0, 0, 16], sizes = [2, 8, 8], strides = [1, 1, 1]} : vector<2x8x32xf32> to vector<2x8x8xf32>
    %56 = vector.extract_strided_slice %17 {offsets = [0, 0, 16], sizes = [2, 8, 8], strides = [1, 1, 1]} : vector<2x8x32xf32> to vector<2x8x8xf32>
    "tpu.trace_start"() <{level = 10 : i32, message = "bqd,bkd->bqk"}> : () -> ()
    %cst_37 = arith.constant dense<0.000000e+00> : vector<2x8x8xf32>
    %57 = tpu.matmul %55, %56, %cst_37 {dimension_numbers = #tpu.dot_dimension_numbers<[2], [2], [1], [1], [0, 0, 0, 1, 1, 1], [0], [0]>} : vector<2x8x8xf32>, vector<2x8x8xf32>, vector<2x8x8xf32> -> vector<2x8x8xf32>
    "tpu.trace_stop"() : () -> ()
    %58 = vector.shape_cast %6 : vector<8x8xf32> to vector<1x8x8xf32>
    %59 = vector.broadcast %58 : vector<1x8x8xf32> to vector<2x8x8xf32>
    %60 = arith.addf %57, %59 : vector<2x8x8xf32>
    %cst_38 = arith.constant dense<0xFF800000> : vector<2x8xf32>
    %61 = vector.multi_reduction <maximumf>, %60, %cst_38 [2] : vector<2x8x8xf32> to vector<2x8xf32>
    %62 = vector.shape_cast %61 : vector<2x8xf32> to vector<2x8x1xf32>
    %63 = vector.broadcast %62 : vector<2x8x1xf32> to vector<2x8x8xf32>
    %64 = arith.subf %60, %63 : vector<2x8x8xf32>
    %65 = math.exp %64 : vector<2x8x8xf32>
    %cst_39 = arith.constant dense<0.000000e+00> : vector<2x8xf32>
    %66 = vector.multi_reduction <add>, %65, %cst_39 [2] : vector<2x8x8xf32> to vector<2x8xf32>
    %67 = vector.shape_cast %66 : vector<2x8xf32> to vector<2x8x1xf32>
    %68 = vector.broadcast %67 : vector<2x8x1xf32> to vector<2x8x8xf32>
    %69 = arith.divf %65, %68 : vector<2x8x8xf32>
    %70 = vector.extract_strided_slice %18 {offsets = [0, 0, 16], sizes = [2, 8, 8], strides = [1, 1, 1]} : vector<2x8x32xf32> to vector<2x8x8xf32>
    "tpu.trace_start"() <{level = 10 : i32, message = "bqk,bkd->bqd"}> : () -> ()
    %cst_40 = arith.constant dense<0.000000e+00> : vector<2x8x8xf32>
    %71 = tpu.matmul %69, %70, %cst_40 {dimension_numbers = #tpu.dot_dimension_numbers<[2], [1], [1], [2], [0, 0, 0, 1, 1, 2], [0], [0]>} : vector<2x8x8xf32>, vector<2x8x8xf32>, vector<2x8x8xf32> -> vector<2x8x8xf32>
    "tpu.trace_stop"() : () -> ()
    %c0_41 = arith.constant 0 : index
    %c0_42 = arith.constant 0 : index
    %c16 = arith.constant 16 : index
    %72 = vector.load %arg19[%c0_41, %c0_42, %c16] : memref<2x8x32xf32, #tpu.memory_space<vmem>>, vector<2x8x8xf32>
    tpu.vector_store %arg19[%c0_41, %c0_42, %c16], %71 {strides = array<i32>} : memref<2x8x32xf32, #tpu.memory_space<vmem>>, vector<2x8x8xf32>,
    %73 = vector.extract_strided_slice %16 {offsets = [0, 0, 24], sizes = [2, 8, 8], strides = [1, 1, 1]} : vector<2x8x32xf32> to vector<2x8x8xf32>
    %74 = vector.extract_strided_slice %17 {offsets = [0, 0, 24], sizes = [2, 8, 8], strides = [1, 1, 1]} : vector<2x8x32xf32> to vector<2x8x8xf32>
    "tpu.trace_start"() <{level = 10 : i32, message = "bqd,bkd->bqk"}> : () -> ()
    %cst_43 = arith.constant dense<0.000000e+00> : vector<2x8x8xf32>
    %75 = tpu.matmul %73, %74, %cst_43 {dimension_numbers = #tpu.dot_dimension_numbers<[2], [2], [1], [1], [0, 0, 0, 1, 1, 1], [0], [0]>} : vector<2x8x8xf32>, vector<2x8x8xf32>, vector<2x8x8xf32> -> vector<2x8x8xf32>
    "tpu.trace_stop"() : () -> ()
    %76 = vector.shape_cast %6 : vector<8x8xf32> to vector<1x8x8xf32>
    %77 = vector.broadcast %76 : vector<1x8x8xf32> to vector<2x8x8xf32>
    %78 = arith.addf %75, %77 : vector<2x8x8xf32>
    %cst_44 = arith.constant dense<0xFF800000> : vector<2x8xf32>
    %79 = vector.multi_reduction <maximumf>, %78, %cst_44 [2] : vector<2x8x8xf32> to vector<2x8xf32>
    %80 = vector.shape_cast %79 : vector<2x8xf32> to vector<2x8x1xf32>
    %81 = vector.broadcast %80 : vector<2x8x1xf32> to vector<2x8x8xf32>
    %82 = arith.subf %78, %81 : vector<2x8x8xf32>
    %83 = math.exp %82 : vector<2x8x8xf32>
    %cst_45 = arith.constant dense<0.000000e+00> : vector<2x8xf32>
    %84 = vector.multi_reduction <add>, %83, %cst_45 [2] : vector<2x8x8xf32> to vector<2x8xf32>
    %85 = vector.shape_cast %84 : vector<2x8xf32> to vector<2x8x1xf32>
    %86 = vector.broadcast %85 : vector<2x8x1xf32> to vector<2x8x8xf32>
    %87 = arith.divf %83, %86 : vector<2x8x8xf32>
    %88 = vector.extract_strided_slice %18 {offsets = [0, 0, 24], sizes = [2, 8, 8], strides = [1, 1, 1]} : vector<2x8x32xf32> to vector<2x8x8xf32>
    "tpu.trace_start"() <{level = 10 : i32, message = "bqk,bkd->bqd"}> : () -> ()
    %cst_46 = arith.constant dense<0.000000e+00> : vector<2x8x8xf32>
    %89 = tpu.matmul %87, %88, %cst_46 {dimension_numbers = #tpu.dot_dimension_numbers<[2], [1], [1], [2], [0, 0, 0, 1, 1, 2], [0], [0]>} : vector<2x8x8xf32>, vector<2x8x8xf32>, vector<2x8x8xf32> -> vector<2x8x8xf32>
    "tpu.trace_stop"() : () -> ()
    %c0_47 = arith.constant 0 : index
    %c0_48 = arith.constant 0 : index
    %c24 = arith.constant 24 : index
    %90 = vector.load %arg19[%c0_47, %c0_48, %c24] : memref<2x8x32xf32, #tpu.memory_space<vmem>>, vector<2x8x8xf32>
    tpu.vector_store %arg19[%c0_47, %c0_48, %c24], %89 {strides = array<i32>} : memref<2x8x32xf32, #tpu.memory_space<vmem>>, vector<2x8x8xf32>,
    %c0_49 = arith.constant 0 : index
    %c0_50 = arith.constant 0 : index
    %c0_51 = arith.constant 0 : index
    %91 = vector.load %arg19[%c0_49, %c0_50, %c0_51] : memref<2x8x32xf32, #tpu.memory_space<vmem>>, vector<2x8x32xf32>
    %92 = vector.shape_cast %91 : vector<2x8x32xf32> to vector<16x32xf32>
    %cst_52 = arith.constant dense<0.000000e+00> : vector<16x32xf32>
    %93 = tpu.matmul %92, %3, %cst_52 {dimension_numbers = #tpu.dot_dimension_numbers<[1], [0], [0], [1], [0, 0, 1, 1], [], []>} : vector<16x32xf32>, vector<32x32xf32>, vector<16x32xf32> -> vector<16x32xf32>
    %c0_53 = arith.constant 0 : index
    %c0_54 = arith.constant 0 : index
    %94 = vector.load %arg9[%c0_53, %c0_54] : memref<1x32xf32, #tpu.memory_space<vmem>>, vector<1x32xf32>
    %95 = vector.shape_cast %94 : vector<1x32xf32> to vector<32xf32>
    %96 = vector.shape_cast %95 : vector<32xf32> to vector<1x32xf32>
    %97 = vector.broadcast %96 : vector<1x32xf32> to vector<16x32xf32>
    %98 = arith.addf %93, %97 : vector<16x32xf32>
    %99 = arith.addf %98, %12 : vector<16x32xf32>
    %c0_55 = arith.constant 0 : index
    %c0_56 = arith.constant 0 : index
    %100 = vector.load %arg10[%c0_55, %c0_56] : memref<1x32xf32, #tpu.memory_space<vmem>>, vector<1x32xf32>
    %101 = vector.shape_cast %100 : vector<1x32xf32> to vector<32xf32>
    %c0_57 = arith.constant 0 : index
    %c0_58 = arith.constant 0 : index
    %102 = vector.load %arg11[%c0_57, %c0_58] : memref<1x32xf32, #tpu.memory_space<vmem>>, vector<1x32xf32>
    %103 = vector.shape_cast %102 : vector<1x32xf32> to vector<32xf32>
    %cst_59 = arith.constant dense<0.000000e+00> : vector<16xf32>
    %104 = vector.multi_reduction <add>, %99, %cst_59 [1] : vector<16x32xf32> to vector<16xf32>
    %105 = vector.shape_cast %104 : vector<16xf32> to vector<16x1xf32>
    %cst_60 = arith.constant 3.200000e+01 : f32
    %106 = vector.broadcast %cst_60 : f32 to vector<16x1xf32>
    %107 = arith.divf %105, %106 : vector<16x1xf32>
    %108 = vector.broadcast %107 : vector<16x1xf32> to vector<16x32xf32>
    %109 = arith.subf %99, %108 : vector<16x32xf32>
    %110 = arith.mulf %109, %109 : vector<16x32xf32>
    %cst_61 = arith.constant dense<0.000000e+00> : vector<16xf32>
    %111 = vector.multi_reduction <add>, %110, %cst_61 [1] : vector<16x32xf32> to vector<16xf32>
    %112 = vector.shape_cast %111 : vector<16xf32> to vector<16x1xf32>
    %cst_62 = arith.constant 3.200000e+01 : f32
    %113 = vector.broadcast %cst_62 : f32 to vector<16x1xf32>
    %114 = arith.divf %112, %113 : vector<16x1xf32>
    %115 = vector.broadcast %107 : vector<16x1xf32> to vector<16x32xf32>
    %116 = arith.subf %99, %115 : vector<16x32xf32>
    %cst_63 = arith.constant 9.99999974E-6 : f32
    %117 = vector.broadcast %cst_63 : f32 to vector<16x1xf32>
    %118 = arith.addf %114, %117 : vector<16x1xf32>
    %119 = math.rsqrt %118 : vector<16x1xf32>
    %120 = vector.broadcast %119 : vector<16x1xf32> to vector<16x32xf32>
    %121 = arith.mulf %116, %120 : vector<16x32xf32>
    %122 = vector.shape_cast %101 : vector<32xf32> to vector<1x32xf32>
    %123 = vector.broadcast %122 : vector<1x32xf32> to vector<16x32xf32>
    %124 = arith.mulf %121, %123 : vector<16x32xf32>
    %125 = vector.shape_cast %103 : vector<32xf32> to vector<1x32xf32>
    %126 = vector.broadcast %125 : vector<1x32xf32> to vector<16x32xf32>
    %127 = arith.addf %124, %126 : vector<16x32xf32>
    %cst_64 = arith.constant dense<0.000000e+00> : vector<16x128xf32>
    %128 = tpu.matmul %127, %4, %cst_64 {dimension_numbers = #tpu.dot_dimension_numbers<[1], [0], [0], [1], [0, 0, 1, 1], [], []>} : vector<16x32xf32>, vector<32x128xf32>, vector<16x128xf32> -> vector<16x128xf32>
    %c0_65 = arith.constant 0 : index
    %c0_66 = arith.constant 0 : index
    %129 = vector.load %arg15[%c0_65, %c0_66] : memref<1x128xf32, #tpu.memory_space<vmem>>, vector<1x128xf32>
    %130 = vector.shape_cast %129 : vector<1x128xf32> to vector<128xf32>
    %131 = vector.shape_cast %130 : vector<128xf32> to vector<1x128xf32>
    %132 = vector.broadcast %131 : vector<1x128xf32> to vector<16x128xf32>
    %133 = arith.addf %128, %132 : vector<16x128xf32>
    %cst_67 = arith.constant 0.000000e+00 : f32
    %134 = vector.broadcast %cst_67 : f32 to vector<16x128xf32>
    %135 = arith.maximumf %133, %134 : vector<16x128xf32>
    %cst_68 = arith.constant dense<0.000000e+00> : vector<16x32xf32>
    %136 = tpu.matmul %135, %5, %cst_68 {dimension_numbers = #tpu.dot_dimension_numbers<[1], [0], [0], [1], [0, 0, 1, 1], [], []>} : vector<16x128xf32>, vector<128x32xf32>, vector<16x32xf32> -> vector<16x32xf32>
    %c0_69 = arith.constant 0 : index
    %c0_70 = arith.constant 0 : index
    %137 = vector.load %arg17[%c0_69, %c0_70] : memref<1x32xf32, #tpu.memory_space<vmem>>, vector<1x32xf32>
    %138 = vector.shape_cast %137 : vector<1x32xf32> to vector<32xf32>
    %139 = vector.shape_cast %138 : vector<32xf32> to vector<1x32xf32>
    %140 = vector.broadcast %139 : vector<1x32xf32> to vector<16x32xf32>
    %141 = arith.addf %136, %140 : vector<16x32xf32>
    %142 = arith.addf %141, %127 : vector<16x32xf32>
    %c0_71 = arith.constant 0 : index
    %c0_72 = arith.constant 0 : index
    %143 = vector.load %arg12[%c0_71, %c0_72] : memref<1x32xf32, #tpu.memory_space<vmem>>, vector<1x32xf32>
    %144 = vector.shape_cast %143 : vector<1x32xf32> to vector<32xf32>
    %c0_73 = arith.constant 0 : index
    %c0_74 = arith.constant 0 : index
    %145 = vector.load %arg13[%c0_73, %c0_74] : memref<1x32xf32, #tpu.memory_space<vmem>>, vector<1x32xf32>
    %146 = vector.shape_cast %145 : vector<1x32xf32> to vector<32xf32>
    %cst_75 = arith.constant dense<0.000000e+00> : vector<16xf32>
    %147 = vector.multi_reduction <add>, %142, %cst_75 [1] : vector<16x32xf32> to vector<16xf32>
    %148 = vector.shape_cast %147 : vector<16xf32> to vector<16x1xf32>
    %cst_76 = arith.constant 3.200000e+01 : f32
    %149 = vector.broadcast %cst_76 : f32 to vector<16x1xf32>
    %150 = arith.divf %148, %149 : vector<16x1xf32>
    %151 = vector.broadcast %150 : vector<16x1xf32> to vector<16x32xf32>
    %152 = arith.subf %142, %151 : vector<16x32xf32>
    %153 = arith.mulf %152, %152 : vector<16x32xf32>
    %cst_77 = arith.constant dense<0.000000e+00> : vector<16xf32>
    %154 = vector.multi_reduction <add>, %153, %cst_77 [1] : vector<16x32xf32> to vector<16xf32>
    %155 = vector.shape_cast %154 : vector<16xf32> to vector<16x1xf32>
    %cst_78 = arith.constant 3.200000e+01 : f32
    %156 = vector.broadcast %cst_78 : f32 to vector<16x1xf32>
    %157 = arith.divf %155, %156 : vector<16x1xf32>
    %158 = vector.broadcast %150 : vector<16x1xf32> to vector<16x32xf32>
    %159 = arith.subf %142, %158 : vector<16x32xf32>
    %cst_79 = arith.constant 9.99999974E-6 : f32
    %160 = vector.broadcast %cst_79 : f32 to vector<16x1xf32>
    %161 = arith.addf %157, %160 : vector<16x1xf32>
    %162 = math.rsqrt %161 : vector<16x1xf32>
    %163 = vector.broadcast %162 : vector<16x1xf32> to vector<16x32xf32>
    %164 = arith.mulf %159, %163 : vector<16x32xf32>
    %165 = vector.shape_cast %144 : vector<32xf32> to vector<1x32xf32>
    %166 = vector.broadcast %165 : vector<1x32xf32> to vector<16x32xf32>
    %167 = arith.mulf %164, %166 : vector<16x32xf32>
    %168 = vector.shape_cast %146 : vector<32xf32> to vector<1x32xf32>
    %169 = vector.broadcast %168 : vector<1x32xf32> to vector<16x32xf32>
    %170 = arith.addf %167, %169 : vector<16x32xf32>
    %171 = vector.shape_cast %170 : vector<16x32xf32> to vector<2x8x32xf32>
    %c0_80 = arith.constant 0 : index
    %c0_81 = arith.constant 0 : index
    %c0_82 = arith.constant 0 : index
    %172 = vector.load %arg18[%c0_80, %c0_81, %c0_82] : memref<2x8x32xf32, #tpu.memory_space<vmem>>, vector<2x8x32xf32>
    tpu.vector_store %arg18[%c0_80, %c0_81, %c0_82], %171 {strides = array<i32>} : memref<2x8x32xf32, #tpu.memory_space<vmem>>, vector<2x8x32xf32>,
    return
  }
  func.func @transform_0(%arg0: i32) -> (i32, i32, i32) {
    %c0_i32 = arith.constant 0 : i32
    %c0_i32_0 = arith.constant 0 : i32
    %c0_i32_1 = arith.constant 0 : i32
    return %arg0, %c0_i32, %c0_i32_0 : i32, i32, i32
  }
  func.func @transform_1(%arg0: i32) -> (i32, i32, i32) {
    %c0_i32 = arith.constant 0 : i32
    %c0_i32_0 = arith.constant 0 : i32
    %c0_i32_1 = arith.constant 0 : i32
    return %arg0, %c0_i32, %c0_i32_0 : i32, i32, i32
  }
  func.func @transform_2(%arg0: i32) -> (i32, i32, i32) {
    %c0_i32 = arith.constant 0 : i32
    %c0_i32_0 = arith.constant 0 : i32
    %c0_i32_1 = arith.constant 0 : i32
    return %arg0, %c0_i32, %c0_i32_0 : i32, i32, i32
  }
  func.func @transform_3(%arg0: i32) -> (i32, i32) {
    %c0_i32 = arith.constant 0 : i32
    %c0_i32_0 = arith.constant 0 : i32
    %c0_i32_1 = arith.constant 0 : i32
    return %c0_i32, %c0_i32_0 : i32, i32
  }
  func.func @transform_4(%arg0: i32) -> (i32, i32) {
    %c0_i32 = arith.constant 0 : i32
    %c0_i32_0 = arith.constant 0 : i32
    %c0_i32_1 = arith.constant 0 : i32
    return %c0_i32, %c0_i32_0 : i32, i32
  }
  func.func @transform_5(%arg0: i32) -> (i32, i32) {
    %c0_i32 = arith.constant 0 : i32
    %c0_i32_0 = arith.constant 0 : i32
    %c0_i32_1 = arith.constant 0 : i32
    return %c0_i32, %c0_i32_0 : i32, i32
  }
  func.func @transform_6(%arg0: i32) -> (i32, i32) {
    %c0_i32 = arith.constant 0 : i32
    %c0_i32_0 = arith.constant 0 : i32
    %c0_i32_1 = arith.constant 0 : i32
    return %c0_i32, %c0_i32_0 : i32, i32
  }
  func.func @transform_7(%arg0: i32) -> (i32, i32) {
    %c0_i32 = arith.constant 0 : i32
    %c0_i32_0 = arith.constant 0 : i32
    %c0_i32_1 = arith.constant 0 : i32
    return %c0_i32, %c0_i32_0 : i32, i32
  }
  func.func @transform_8(%arg0: i32) -> (i32, i32) {
    %c0_i32 = arith.constant 0 : i32
    %c0_i32_0 = arith.constant 0 : i32
    %c0_i32_1 = arith.constant 0 : i32
    return %c0_i32, %c0_i32_0 : i32, i32
  }
  func.func @transform_9(%arg0: i32) -> (i32, i32) {
    %c0_i32 = arith.constant 0 : i32
    %c0_i32_0 = arith.constant 0 : i32
    %c0_i32_1 = arith.constant 0 : i32
    return %c0_i32, %c0_i32_0 : i32, i32
  }
  func.func @transform_10(%arg0: i32) -> (i32, i32) {
    %c0_i32 = arith.constant 0 : i32
    %c0_i32_0 = arith.constant 0 : i32
    %c0_i32_1 = arith.constant 0 : i32
    return %c0_i32, %c0_i32_0 : i32, i32
  }
  func.func @transform_11(%arg0: i32) -> (i32, i32) {
    %c0_i32 = arith.constant 0 : i32
    %c0_i32_0 = arith.constant 0 : i32
    %c0_i32_1 = arith.constant 0 : i32
    return %c0_i32, %c0_i32_0 : i32, i32
  }
  func.func @transform_12(%arg0: i32) -> (i32, i32) {
    %c0_i32 = arith.constant 0 : i32
    %c0_i32_0 = arith.constant 0 : i32
    %c0_i32_1 = arith.constant 0 : i32
    return %c0_i32, %c0_i32_0 : i32, i32
  }
  func.func @transform_13(%arg0: i32) -> (i32, i32) {
    %c0_i32 = arith.constant 0 : i32
    %c0_i32_0 = arith.constant 0 : i32
    %c0_i32_1 = arith.constant 0 : i32
    return %c0_i32, %c0_i32_0 : i32, i32
  }
  func.func @transform_14(%arg0: i32) -> (i32, i32) {
    %c0_i32 = arith.constant 0 : i32
    %c0_i32_0 = arith.constant 0 : i32
    %c0_i32_1 = arith.constant 0 : i32
    return %c0_i32, %c0_i32_0 : i32, i32
  }
  func.func @transform_15(%arg0: i32) -> (i32, i32) {
    %c0_i32 = arith.constant 0 : i32
    %c0_i32_0 = arith.constant 0 : i32
    %c0_i32_1 = arith.constant 0 : i32
    return %c0_i32, %c0_i32_0 : i32, i32
  }
  func.func @transform_16(%arg0: i32) -> (i32, i32) {
    %c0_i32 = arith.constant 0 : i32
    %c0_i32_0 = arith.constant 0 : i32
    %c0_i32_1 = arith.constant 0 : i32
    return %c0_i32, %c0_i32_0 : i32, i32
  }
  func.func @transform_17(%arg0: i32) -> (i32, i32, i32) {
    %c0_i32 = arith.constant 0 : i32
    %c0_i32_0 = arith.constant 0 : i32
    %c0_i32_1 = arith.constant 0 : i32
    return %arg0, %c0_i32, %c0_i32_0 : i32, i32, i32
  }
}

</mosaic_0001>

<bundles_post_ra>
// kernel: tpu_custom_call.1
= control target key start
LH: loop header
LB: loop body
LE: loop exit
PB: predicated region body
PF: predicated region fallthrough
CT: control target
= control target key end

     0   :  { %s3117_s0 = inlined_call_operand.hbm [shape: f32[2,8,32], index: 0, kind: input, shape index: {}]   ;;  %s3118_s1 = inlined_call_operand.hbm [shape: f32[2,8,32], index: 1, kind: input, shape index: {}]   ;;  %s3119_s2 = inlined_call_operand.hbm [shape: f32[2,8,32], index: 2, kind: input, shape index: {}]   ;;  %s3120_s3 = inlined_call_operand.vmem [shape: f32[8,8], index: 3, kind: input, shape index: {}]   ;;  %s3121_s4 = inlined_call_operand.vmem [shape: f32[32,32], index: 4, kind: input, shape index: {}]   ;;  %s3122_s5 = inlined_call_operand.vmem [shape: f32[32,32], index: 5, kind: input, shape index: {}]   ;;  %s3123_s6 = inlined_call_operand.vmem [shape: f32[32,32], index: 6, kind: input, shape index: {}]   ;;  %s3124_s7 = inlined_call_operand.vmem [shape: f32[32,32], index: 7, kind: input, shape index: {}]   ;;  %s3125_s8 = inlined_call_operand.vmem [shape: f32[1,32], index: 8, kind: input, shape index: {}]   ;;  %s3126_s9 = inlined_call_operand.vmem [shape: f32[1,32], index: 9, kind: input, shape index: {}]   ;;  %s3127_s10 = inlined_call_operand.vmem [shape: f32[1,32], index: 10, kind: input, shape index: {}]   ;;  %s3128_s11 = inlined_call_operand.vmem [shape: f32[1,32], index: 11, kind: input, shape index: {}]   ;;  %s3129_s12 = inlined_call_operand.vmem [shape: f32[1,32], index: 12, kind: input, shape index: {}]   ;;  %s3130_s13 = inlined_call_operand.vmem [shape: f32[32,128], index: 13, kind: input, shape index: {}]   ;;  %s3131_s14 = inlined_call_operand.vmem [shape: f32[1,128], index: 14, kind: input, shape index: {}]   ;;  %s3132_s15 = inlined_call_operand.vmem [shape: f32[128,32], index: 15, kind: input, shape index: {}]   ;;  %s3133_s16 = inlined_call_operand.vmem [shape: f32[1,32], index: 16, kind: input, shape index: {}]   ;;  %s3134_s17 = inlined_call_operand.hbm [shape: f32[2,8,32], index: 17, kind: output, shape index: {}]  }
   0x1   :  { %3138 = sst [smem:[#allocation13_spill]] %s3117_s0 }
   0x2   :  { %3139 = sst [smem:[#allocation14_spill]] %s3118_s1 }
   0x3   :  { %3140 = sst [smem:[#allocation15_spill]] %s3134_s17 }
   0x4   :  { %22 = vsyncpa [#allocation4], 0 }
   0x5   :  { %23 = vsyncpa [#allocation7], 0 }
   0x6   :  { %24 = vsyncpa [#allocation5], 0  ;;  %s2618_s24 = smov [#allocation6]   ;;  %s2619_s26 = smov [#allocation3]  }
   0x7   :  { %s42_s25 = sshll.u32 %s2618_s24, 4  ;;  %s30_s27 = sshll.u32 %s2619_s26, 4  ;;  %s43_s25 = int_to_ptr.vmem [resolvable:$true] %s42_s25  ;;  %s2721_s27 = int_to_ptr.vmem [resolvable:$true] %s30_s27 }
   0x8   :  { %s3141_s0 = sld [smem:[#allocation14_spill]] }
   0xe   :  { %s2524_s30 = scalar_lea.hbm %s3141_s0, 256 }
   0xf   :  { %p2525_p0 = scmp.ne.s32.totalorder %s3141_s0, %s2524_s30  ;;  %p2528_p1 = scmp.lt.u32.totalorder %s2524_s30, %s3141_s0 }
  0x11   :  { %p2530_p2 = pnand %p2528_p1, %p2525_p0 }
  0x13   :  { %2533 = shalt.err (!%p2530_p2)
}
  0x14   :  { %s2534_s21 = scalar_lea.vmem %s43_s25, 256  ;;  %p2539_p4 = scmp.lt.s32.totalorder %s43_s25, %s43_s25 }
  0x15   :  { %p2535_p3 = scmp.ne.s32.totalorder %s43_s25, %s2534_s21  ;;  %p2540_p5 = scmp.lt.s32.totalorder %s2534_s21, %s2534_s21 }
  0x17   :  { %p2541_p6 = por %p2540_p5, %p2539_p4 }
  0x19   :  { %p2542_p7 = pnand %p2541_p6, %p2535_p3 }
  0x1b   :  { %2545 = shalt.err (!%p2542_p7)
}
  0x1c   :  { %s2620_s22 = smov 128   ;;  %s2621_s23 = smov 8  }
  0x1d   :  { %48 = dma.hbm_to_vmem [thread:$0]  %s3141_s0, 256, %s43_s25, [#allocation7], %s2620_s22, %s2620_s22, %s2621_s23  }
  0x1e   :  { %s3142_s30 = sld [smem:[#allocation13_spill]] }
  0x24   :  { %s2546_s18 = scalar_lea.hbm %s3142_s30, 256 }
  0x25   :  { %p2547_p8 = scmp.ne.s32.totalorder %s3142_s30, %s2546_s18  ;;  %p2550_p9 = scmp.lt.u32.totalorder %s2546_s18, %s3142_s30 }
  0x27   :  { %p2552_p10 = pnand %p2550_p9, %p2547_p8 }
  0x29   :  { %2555 = shalt.err (!%p2552_p10)
}
  0x2a   :  { %s2556_s17 = scalar_lea.vmem %s2721_s27, 256  ;;  %p2561_p12 = scmp.lt.s32.totalorder %s2721_s27, %s2721_s27 }
  0x2b   :  { %p2557_p11 = scmp.ne.s32.totalorder %s2721_s27, %s2556_s17  ;;  %p2562_p13 = scmp.lt.s32.totalorder %s2556_s17, %s2556_s17 }
  0x2d   :  { %p2563_p0 = por %p2562_p13, %p2561_p12 }
  0x2f   :  { %p2564_p1 = pnand %p2563_p0, %p2557_p11 }
  0x31   :  { %2567 = shalt.err (!%p2564_p1)
}
  0x32   :  { %36 = dma.hbm_to_vmem [thread:$0]  %s3142_s30, 256, %s2721_s27, [#allocation4], %s2620_s22, %s2620_s22, %s2621_s23  }
  0x33   :  { %s2622_s24 = smov [#allocation8]   ;;  %s2568_s18 = scalar_lea.hbm %s3119_s2, 256 }
  0x34   :  { %s54_s26 = sshll.u32 %s2622_s24, 4  ;;  %p2569_p2 = scmp.ne.s32.totalorder %s3119_s2, %s2568_s18  ;;  %s55_s26 = int_to_ptr.vmem [resolvable:$true] %s54_s26 }
  0x35   :  { %p2572_p3 = scmp.lt.u32.totalorder %s2568_s18, %s3119_s2 }
  0x37   :  { %p2574_p4 = pnand %p2572_p3, %p2569_p2 }
  0x39   :  { %2577 = shalt.err (!%p2574_p4)
}
  0x3a   :  { %s2578_s21 = scalar_lea.vmem %s55_s26, 256  ;;  %p2583_p6 = scmp.lt.s32.totalorder %s55_s26, %s55_s26 }
  0x3b   :  { %p2579_p5 = scmp.ne.s32.totalorder %s55_s26, %s2578_s21  ;;  %p2584_p7 = scmp.lt.s32.totalorder %s2578_s21, %s2578_s21 }
  0x3d   :  { %p2585_p8 = por %p2584_p7, %p2583_p6 }
  0x3f   :  { %p2586_p9 = pnand %p2585_p8, %p2579_p5 }
  0x41   :  { %2589 = shalt.err (!%p2586_p9)
}
  0x42   :  { %60 = dma.hbm_to_vmem [thread:$0]  %s3119_s2, 256, %s55_s26, [#allocation7], %s2620_s22, %s2620_s22, %s2621_s23  }
  0x43   :  { %2612 = dma.done.wait [#allocation4], 256  }
  0x44   :  { %2613 = vsyncadd [#allocation4], 4294967040 }
  0x45   :  { %2614 = dma.done.wait [#allocation7], 512  }
  0x46   :  { %2615 = vsyncadd [#allocation7], 4294966784  ;;  %vm141_vm0 = vcmask 261120   ;;  %v106_v0 = vld [vmem:[%s3123_s6] sm:$0xff]  ;;  %v107_v1 = vld [vmem:[%s3123_s6 + $0x8] sm:$0xff]  ;;  %v2623_v24 = vmov 0.0  }
  0x47   :  { %v108_v2 = vld [vmem:[%s3123_s6 + $0x10] sm:$0xff]  ;;  %v2399_v3 = vpack.c.bf16 %v107_v1, %v106_v0  ;;  %v109_v4 = vld [vmem:[%s3123_s6 + $0x18] sm:$0xff]  ;;  %v102_v7 = vld [vmem:[%s3122_s5] sm:$0xff]  ;;  %2272 = vmatprep.subr.mxu0 %v2623_v24  ;;  %vm2624_vm1 = vmmov 0   ;;  %vm385_vm2 = vcmask 64512   ;;  %s2627_s17 = smov 104  }
  0x48   :  { %v2785_v5 = vld [vmem:[#allocation8] sm:$0xff]  ;;  %v2403_v6 = vpack.c.bf16 %v109_v4, %v108_v2  ;;  %v103_v8 = vld [vmem:[%s3122_s5 + $0x8] sm:$0xff]  ;;  %v105_v11 = vld [vmem:[%s3122_s5 + $0x18] sm:$0xff]  ;;  %2274 = vmatprep.mubr.msk.f32.mxu0 %vm2624_vm1, %v2623_v24  ;;  %s2628_s1 = smov 16   ;;  %vm1048_vm3 = vcmask 130112   ;;  %vm1389_vm4 = vcmask 195712  }
  0x49   :  { %2237 = vmatprep.mubr.msk.f32.mxu1 %vm141_vm0, %v2785_v5  ;;  %2400 = vmatprep.subr.bf16.mxu1 %v2399_v3  ;;  %v2407_v9 = vpack.c.bf16 %v103_v8, %v102_v7  ;;  %v104_v10 = vld [vmem:[%s3122_s5 + $0x10] sm:$0xff]  ;;  %v2801_v12 = vld [vmem:[#allocation8 + $0x8] sm:$0xff]  ;;  %v137_v14 = vld [vmem:[#allocation6] sm:$0xff]  ;;  %s2629_s28 = smov 24   ;;  %vm1730_vm5 = vcmask 261312   ;;  %s2630_s19 = smov [#allocation9]  }
  0x4a   :  { %2402 = vmatpush3.bf16.msra.mxu1 %v2399_v3  ;;  %v2411_v13 = vpack.c.bf16 %v105_v11, %v104_v10  ;;  %v98_v15 = vld [vmem:[%s3121_s4] sm:$0xff]  ;;  %v99_v16 = vld [vmem:[%s3121_s4 + $0x8] sm:$0xff]  ;;  %v100_v19 = vld [vmem:[%s3121_s4 + $0x10] sm:$0xff] }
  0x4b   :  { %2404 = vmatprep.subr.bf16.mxu1 %v2403_v6  ;;  %v2415_v17 = vpack.c.bf16 %v99_v16, %v98_v15  ;;  %v138_v18 = vld [vmem:[#allocation6 + $0x8] sm:$0xff]  ;;  %v101_v20 = vld [vmem:[%s3121_s4 + $0x18] sm:$0xff]  ;;  %v135_v22 = vld [vmem:[#allocation3] sm:$0xff]  ;;  %s2625_s4 = smov 120  }
  0x4c   :  { %v2419_v21 = vpack.c.bf16 %v101_v20, %v100_v19  ;;  %v136_v23 = vld [vmem:[#allocation3 + $0x8] sm:$0xff]  ;;  %v2864_v31 = vld [vmem:[%s3120_s3] sm:$0xff]  ;;  %s2626_s3 = smov 112  }
  0x4e   :  { %2406 = vmatpush3.bf16.msra.mxu1 %v2403_v6 }
  0x4f   :  { %2408 = vmatprep.subr.bf16.mxu1 %v2407_v9 }
  0x51   :  { %2238 = vmatmul.mubr.msk.f32.vlgmr.msra.gmra.mrb[0].mxu1 %vm141_vm0, %v2801_v12 }
  0x52   :  { %2410 = vmatpush3.bf16.msra.mxu1 %v2407_v9  ;;  %2248 = vmatprep.mubr.msk.f32.mxu1 %vm141_vm0, %v137_v14 }
  0x53   :  { %2412 = vmatprep.subr.bf16.mxu1 %v2411_v13 }
  0x56   :  { %2414 = vmatpush3.bf16.msra.mxu1 %v2411_v13 }
  0x57   :  { %2416 = vmatprep.subr.bf16.mxu1 %v2415_v17 }
  0x59   :  { %2249 = vmatmul.mubr.msk.f32.vlgmr.msra.gmra.mrb[2].mxu1 %vm141_vm0, %v138_v18 }
  0x5a   :  { %2418 = vmatpush3.bf16.msra.mxu1 %v2415_v17  ;;  %2259 = vmatprep.mubr.msk.f32.mxu1 %vm141_vm0, %v135_v22 }
  0x5b   :  { %2420 = vmatprep.subr.bf16.mxu1 %v2419_v21 }
  0x5e   :  { %2422 = vmatpush3.bf16.msra.mxu1 %v2419_v21 }
  0x5f   :  { %2262 = vmatprep.subr.mxu1 %v2623_v24 }
  0x61   :  { %2260 = vmatmul.mubr.msk.f32.vlgmr.msra.gmra.mrb[4].mxu1 %vm141_vm0, %v136_v23 }
  0x62   :  { %2264 = vmatprep.mubr.msk.f32.mxu1 %vm2624_vm1, %v2623_v24 }
 0x124   :  { %v2827_v25 = vpop.f32.mrb[0].mxu1 }
 0x125   :  { %v2829_v26 = vpop.f32.mrb[1].mxu1 }
 0x12c   :  { %v2831_v27 = vpop.f32.mrb[2].mxu1 }
 0x12d   :  { %788 = vrot.lane.b32.xlu1 %v2831_v27, %s2625_s4  ;;  %v2835_v28 = vpop.f32.mrb[3].mxu1 }
 0x12e   :  { %2263 = vmatpush3.xpose.msk.msra.mxu1 %vm385_vm2, %v2835_v28 }
 0x12f   :  { %2267 = vmatprep.subr.mxu1 %v2623_v24 }
 0x131   :  { %708 = vrot.lane.b32.xlu1 %v2829_v26, %s2625_s4  ;;  %2265 = vmatmul.mubr.msk.f32.vlgmr.msra.gmra.mrb[6].mxu1 %vm385_vm2, %v2829_v26 }
 0x132   :  { %2268 = vmatpush3.xpose.msk.msra.mxu1 %vm385_vm2, %v2831_v27  ;;  %2269 = vmatprep.mubr.msk.f32.mxu1 %vm2624_vm1, %v2623_v24 }
 0x133   :  { %2277 = vmatprep.subr.mxu1 %v2623_v24 }
 0x134   :  { %v2853_v29 = vpop.f32.mrb[4].mxu1 }
 0x135   :  { %2270 = vmatmul.mubr.msk.f32.vlgmr.msra.gmra.mrb[8].mxu1 %vm385_vm2, %v2827_v25  ;;  %v2855_v30 = vpop.f32.mrb[5].mxu1 }
 0x136   :  { %2279 = vmatprep.mubr.msk.f32.mxu1 %vm2624_vm1, %v2623_v24  ;;  %2278 = vmatpush3.msra.mxu1 %v2853_v29 }
 0x137   :  { %2273 = vmatpush3.msra.mxu0 %v2855_v30  ;;  %2287 = vmatprep.subr.mxu1 %v2623_v24 }
 0x138   :  { %2282 = vmatprep.subr.mxu0 %v2623_v24 }
 0x19f   :  { %v789_v50 = vpop.permute.xlu1 %788 }
 0x1a3   :  { %v709_v51 = vpop.permute.xlu1 %708 }
 0x204   :  { %v458_v32 = vpop.f32.mrb[6].mxu1 }
 0x205   :  { %v459_v33 = vadd.f32 %v458_v32, %v2864_v31  ;;  %v2266_v34 = vpop.f32.mrb[7].mxu1 }
 0x207   :  { %v538_v35 = vsel %vm385_vm2, %v459_v33, -inf }
 0x208   :  { %539 = vmax.xlane.f32.xlu0 %v538_v35  ;;  %v534_v36 = vpop.f32.mrb[8].mxu1 }
 0x209   :  { %v535_v37 = vadd.f32 %v534_v36, %v2864_v31  ;;  %v2271_v38 = vpop.f32.mrb[9].mxu1 }
 0x20b   :  { %v541_v39 = vsel %vm385_vm2, %v535_v37, -inf }
 0x20c   :  { %542 = vmax.xlane.f32.xlu0 %v541_v39 }
 0x222   :  { %710 = vrot.lane.b32.xlu0 %v2835_v28, %s2625_s4 }
 0x295   :  { %v540_v40 = vpop.xlane.xlu0 %539 }
 0x296   :  { %v544_v41 = vsub.f32 %v459_v33, %v540_v40 }
 0x298   :  { %v546_v42 = vmul.f32 1.442695, %v544_v41 }
 0x299   :  { %v543_v43 = vpop.xlane.xlu0 %542 }
 0x29a   :  { %2484 = vpow2.f32 %v546_v42  ;;  %v545_v44 = vsub.f32 %v535_v37, %v543_v43 }
 0x29c   :  { %v548_v45 = vmul.f32 1.442695, %v545_v44 }
 0x29d   :  { %v711_v56 = vpop.permute.xlu0 %710 }
 0x29e   :  { %2486 = vpow2.f32 %v548_v45 }
 0x2a4   :  { %v2485_v46 = vpop.eup %2484 }
 0x2a5   :  { %v550_v47 = vsel %vm385_vm2, %v2485_v46, 0.0 }
 0x2a6   :  { %551 = vadd.xlane.f32.xlu1 %v550_v47 }
 0x2a8   :  { %v2487_v48 = vpop.eup %2486 }
 0x2a9   :  { %v553_v49 = vsel %vm385_vm2, %v2487_v48, 0.0 }
 0x2aa   :  { %554 = vadd.xlane.f32.xlu1 %v553_v49 }
 0x2bb   :  { %786 = vrot.lane.b32.xlu1 %v2827_v25, %s2625_s4 }
 0x333   :  { %v552_v52 = vpop.xlane.xlu1 %551 }
 0x334   :  { %2488 = vrcp.f32 %v552_v52 }
 0x337   :  { %v555_v53 = vpop.xlane.xlu1 %554 }
 0x338   :  { %2490 = vrcp.f32 %v555_v53 }
 0x33b   :  { %v787_v59 = vpop.permute.xlu1 %786 }
 0x33e   :  { %v2489_v54 = vpop.eup %2488 }
 0x33f   :  { %v557_v55 = vmul.f32 %v2489_v54, %v2485_v46 }
 0x341   :  { %2275 = vmatmul.mubr.msk.f32.vlgmr.msra.gmra.mrb[0].mxu0 %vm385_vm2, %v557_v55 }
 0x342   :  { %v2491_v57 = vpop.eup %2490  ;;  %2283 = vmatpush3.xpose.msk.msra.mxu0 %vm385_vm2, %v711_v56  ;;  %2284 = vmatprep.mubr.msk.f32.mxu0 %vm2624_vm1, %v2623_v24 }
 0x343   :  { %v559_v58 = vmul.f32 %v2491_v57, %v2487_v48  ;;  %2292 = vmatprep.subr.mxu0 %v2623_v24 }
 0x345   :  { %2280 = vmatmul.mubr.msk.f32.vlgmr.msra.gmra.mrb[10].mxu1 %vm385_vm2, %v559_v58  ;;  %2285 = vmatmul.mubr.msk.f32.vlgmr.msra.gmra.mrb[2].mxu0 %vm385_vm2, %v709_v51 }
 0x346   :  { %2288 = vmatpush3.xpose.msk.msra.mxu1 %vm385_vm2, %v789_v50  ;;  %2289 = vmatprep.mubr.msk.f32.mxu1 %vm2624_vm1, %v2623_v24 }
 0x347   :  { %2297 = vmatprep.subr.mxu1 %v2623_v24  ;;  %2294 = vmatprep.mubr.msk.f32.mxu0 %vm2624_vm1, %v2623_v24 }
 0x349   :  { %2290 = vmatmul.mubr.msk.f32.vlgmr.msra.gmra.mrb[12].mxu1 %vm385_vm2, %v787_v59 }
 0x34a   :  { %2299 = vmatprep.mubr.msk.f32.mxu1 %vm2624_vm1, %v2623_v24 }
 0x414   :  { %v629_v60 = vpop.f32.mrb[0].mxu0 }
 0x415   :  { %706 = vst.msk [vmem:[#allocation2] sm:$0xff] %vm385_vm2, %v629_v60  ;;  %v2276_v61 = vpop.f32.mrb[1].mxu0 }
 0x418   :  { %v702_v62 = vpop.f32.mrb[10].mxu1  ;;  %v782_v63 = vpop.f32.mrb[2].mxu0 }
 0x419   :  { %707 = vst.msk [vmem:[#allocation2 + $0x8] sm:$0xff] %vm385_vm2, %v702_v62  ;;  %v783_v0 = vadd.f32 %v782_v63, %v2864_v31  ;;  %v2281_v1 = vpop.f32.mrb[11].mxu1  ;;  %v2286_v2 = vpop.f32.mrb[3].mxu0 }
 0x41b   :  { %v864_v3 = vsel %vm385_vm2, %v783_v0, -inf }
 0x41c   :  { %865 = vmax.xlane.f32.xlu0 %v864_v3  ;;  %v860_v4 = vpop.f32.mrb[12].mxu1 }
 0x41d   :  { %v861_v6 = vadd.f32 %v860_v4, %v2864_v31  ;;  %v2291_v7 = vpop.f32.mrb[13].mxu1 }
 0x41f   :  { %v867_v8 = vsel %vm385_vm2, %v861_v6, -inf }
 0x420   :  { %868 = vmax.xlane.f32.xlu1 %v867_v8 }
 0x431   :  { %964 = vrot.lane.b32.xlu1 %v2853_v29, %s2625_s4 }
 0x432   :  { %887 = vrot.lane.b32.xlu0 %v2855_v30, %s2625_s4  ;;  %s2095_s4 = sshll.u32 %s2630_s19, 4  ;;  %s2096_s4 = int_to_ptr.vmem [resolvable:$true] %s2095_s4 }
 0x433   :  { %s2590_s2 = scalar_lea.vmem %s2096_s4, 256  ;;  %p2595_p11 = scmp.lt.s32.totalorder %s2096_s4, %s2096_s4 }
 0x434   :  { %p2591_p10 = scmp.ne.s32.totalorder %s2096_s4, %s2590_s2  ;;  %p2596_p12 = scmp.lt.s32.totalorder %s2590_s2, %s2590_s2 }
 0x435   :  { %1053 = vrot.lane.b32.xlu1 %v2835_v28, %s2626_s3 }
 0x436   :  { %p2597_p13 = por %p2596_p12, %p2595_p11 }
 0x438   :  { %p2598_p0 = pnand %p2597_p13, %p2591_p10 }
 0x439   :  { %1131 = vrot.lane.b32.xlu1 %v2831_v27, %s2626_s3 }
 0x43d   :  { %1129 = vrot.lane.b32.xlu1 %v2827_v25, %s2626_s3 }
 0x4a9   :  { %v866_v9 = vpop.xlane.xlu0 %865 }
 0x4aa   :  { %v870_v10 = vsub.f32 %v783_v0, %v866_v9 }
 0x4ac   :  { %v872_v11 = vmul.f32 1.442695, %v870_v10 }
 0x4ad   :  { %v888_v13 = vpop.permute.xlu0 %887  ;;  %v869_v14 = vpop.xlane.xlu1 %868 }
 0x4ae   :  { %2492 = vpow2.f32 %v872_v11  ;;  %v871_v15 = vsub.f32 %v861_v6, %v869_v14  ;;  %2293 = vmatpush3.msra.mxu0 %v888_v13 }
 0x4af   :  { %2302 = vmatprep.subr.mxu0 %v2623_v24 }
 0x4b0   :  { %v874_v16 = vmul.f32 1.442695, %v871_v15 }
 0x4b1   :  { %v965_v17 = vpop.permute.xlu1 %964 }
 0x4b2   :  { %2494 = vpow2.f32 %v874_v16  ;;  %2298 = vmatpush3.msra.mxu1 %v965_v17 }
 0x4b3   :  { %2307 = vmatprep.subr.mxu1 %v2623_v24 }
 0x4b5   :  { %v1054_v32 = vpop.permute.xlu1 %1053 }
 0x4b8   :  { %v2493_v18 = vpop.eup %2492 }
 0x4b9   :  { %v876_v19 = vsel %vm385_vm2, %v2493_v18, 0.0  ;;  %v1132_v36 = vpop.permute.xlu1 %1131 }
 0x4ba   :  { %877 = vadd.xlane.f32.xlu0 %v876_v19 }
 0x4bc   :  { %v2495_v20 = vpop.eup %2494 }
 0x4bd   :  { %v879_v21 = vsel %vm385_vm2, %v2495_v20, 0.0  ;;  %v1130_v39 = vpop.permute.xlu1 %1129 }
 0x4be   :  { %880 = vadd.xlane.f32.xlu0 %v879_v21 }
 0x4d4   :  { %1051 = vrot.lane.b32.xlu0 %v2829_v26, %s2626_s3 }
 0x547   :  { %v878_v22 = vpop.xlane.xlu0 %877 }
 0x548   :  { %2496 = vrcp.f32 %v878_v22 }
 0x54b   :  { %v881_v23 = vpop.xlane.xlu0 %880 }
 0x54c   :  { %2498 = vrcp.f32 %v881_v23 }
 0x54f   :  { %v1052_v38 = vpop.permute.xlu0 %1051 }
 0x552   :  { %v2497_v33 = vpop.eup %2496 }
 0x553   :  { %v883_v34 = vmul.f32 %v2497_v33, %v2493_v18 }
 0x555   :  { %2295 = vmatmul.mubr.msk.f32.vlgmr.msra.gmra.mrb[4].mxu0 %vm385_vm2, %v883_v34 }
 0x556   :  { %v2499_v35 = vpop.eup %2498  ;;  %2303 = vmatpush3.xpose.msk.msra.mxu0 %vm385_vm2, %v1054_v32  ;;  %2304 = vmatprep.mubr.msk.f32.mxu0 %vm2624_vm1, %v2623_v24 }
 0x557   :  { %v885_v37 = vmul.f32 %v2499_v35, %v2495_v20  ;;  %2312 = vmatprep.subr.mxu0 %v2623_v24 }
 0x559   :  { %2300 = vmatmul.mubr.msk.f32.vlgmr.msra.gmra.mrb[14].mxu1 %vm385_vm2, %v885_v37  ;;  %2305 = vmatmul.mubr.msk.f32.vlgmr.msra.gmra.mrb[6].mxu0 %vm385_vm2, %v1052_v38 }
 0x55a   :  { %2308 = vmatpush3.xpose.msk.msra.mxu1 %vm385_vm2, %v1132_v36  ;;  %2309 = vmatprep.mubr.msk.f32.mxu1 %vm2624_vm1, %v2623_v24 }
 0x55b   :  { %2317 = vmatprep.subr.mxu1 %v2623_v24  ;;  %2314 = vmatprep.mubr.msk.f32.mxu0 %vm2624_vm1, %v2623_v24 }
 0x55d   :  { %2310 = vmatmul.mubr.msk.f32.vlgmr.msra.gmra.mrb[16].mxu1 %vm385_vm2, %v1130_v39 }
 0x55e   :  { %2319 = vmatprep.mubr.msk.f32.mxu1 %vm2624_vm1, %v2623_v24 }
 0x628   :  { %v2930_v40 = vpop.f32.mrb[4].mxu0 }
 0x629   :  { %v2296_v41 = vpop.f32.mrb[5].mxu0 }
 0x62c   :  { %v2932_v42 = vpop.f32.mrb[14].mxu1  ;;  %v1125_v43 = vpop.f32.mrb[6].mxu0 }
 0x62d   :  { %v1126_v44 = vadd.f32 %v1125_v43, %v2864_v31  ;;  %v2301_v45 = vpop.f32.mrb[15].mxu1  ;;  %v2306_v46 = vpop.f32.mrb[7].mxu0 }
 0x62f   :  { %v1207_v47 = vsel %vm385_vm2, %v1126_v44, -inf }
 0x630   :  { %1208 = vmax.xlane.f32.xlu0 %v1207_v47  ;;  %v1203_v48 = vpop.f32.mrb[16].mxu1  ;;  %v111_v47 = vld [vmem:[%s3124_s7 + $0x8] sm:$0xff] }
 0x631   :  { %v1204_v49 = vadd.f32 %v1203_v48, %v2864_v31  ;;  %v2311_v50 = vpop.f32.mrb[17].mxu1 }
 0x632   :  { %v113_v50 = vld [vmem:[%s3124_s7 + $0x18] sm:$0xff] }
 0x633   :  { %v1210_v51 = vsel %vm385_vm2, %v1204_v49, -inf }
 0x634   :  { %1211 = vmax.xlane.f32.xlu1 %v1210_v51 }
 0x645   :  { %1305 = vrot.lane.b32.xlu1 %v2853_v29, %s2626_s3 }
 0x646   :  { %1229 = vrot.lane.b32.xlu0 %v2855_v30, %s2626_s3 }
 0x649   :  { %1394 = vrot.lane.b32.xlu1 %v2835_v28, %s2627_s17 }
 0x64d   :  { %1472 = vrot.lane.b32.xlu1 %v2831_v27, %s2627_s17 }
 0x651   :  { %1470 = vrot.lane.b32.xlu1 %v2827_v25, %s2627_s17 }
 0x6bd   :  { %v1209_v52 = vpop.xlane.xlu0 %1208 }
 0x6be   :  { %v1213_v53 = vsub.f32 %v1126_v44, %v1209_v52 }
 0x6c0   :  { %v1215_v54 = vmul.f32 1.442695, %v1213_v53 }
 0x6c1   :  { %v1230_v55 = vpop.permute.xlu0 %1229  ;;  %v1212_v56 = vpop.xlane.xlu1 %1211 }
 0x6c2   :  { %2500 = vpow2.f32 %v1215_v54  ;;  %v1214_v57 = vsub.f32 %v1204_v49, %v1212_v56  ;;  %2313 = vmatpush3.msra.mxu0 %v1230_v55  ;;  %v112_v49 = vld [vmem:[%s3124_s7 + $0x10] sm:$0xff] }
 0x6c3   :  { %2322 = vmatprep.subr.mxu0 %v2623_v24  ;;  %v2427_v51 = vpack.c.bf16 %v113_v50, %v112_v49  ;;  %v2141_v49 = vld [vmem:[%s3126_s9] ss:$0 sm:$0xff] }
 0x6c4   :  { %v1217_v58 = vmul.f32 1.442695, %v1214_v57 }
 0x6c5   :  { %v1306_v59 = vpop.permute.xlu1 %1305 }
 0x6c6   :  { %2502 = vpow2.f32 %v1217_v58  ;;  %2318 = vmatpush3.msra.mxu1 %v1306_v59 }
 0x6c7   :  { %2327 = vmatprep.subr.mxu1 %v2623_v24 }
 0x6c9   :  { %v1395_v63 = vpop.permute.xlu1 %1394 }
 0x6cc   :  { %v2501_v27 = vpop.eup %2500 }
 0x6cd   :  { %v1219_v28 = vsel %vm385_vm2, %v2501_v27, 0.0  ;;  %v1473_v3 = vpop.permute.xlu1 %1472 }
 0x6ce   :  { %1220 = vadd.xlane.f32.xlu0 %v1219_v28 }
 0x6d0   :  { %v2503_v25 = vpop.eup %2502 }
 0x6d1   :  { %v1222_v60 = vsel %vm385_vm2, %v2503_v25, 0.0  ;;  %v1471_v6 = vpop.permute.xlu1 %1470 }
 0x6d2   :  { %1223 = vadd.xlane.f32.xlu0 %v1222_v60 }
 0x6e8   :  { %1392 = vrot.lane.b32.xlu0 %v2829_v26, %s2627_s17 }
 0x75b   :  { %v1221_v61 = vpop.xlane.xlu0 %1220 }
 0x75c   :  { %2504 = vrcp.f32 %v1221_v61 }
 0x75f   :  { %v1224_v62 = vpop.xlane.xlu0 %1223 }
 0x760   :  { %2506 = vrcp.f32 %v1224_v62 }
 0x763   :  { %v1393_v26 = vpop.permute.xlu0 %1392 }
 0x766   :  { %v2505_v0 = vpop.eup %2504 }
 0x767   :  { %v1226_v1 = vmul.f32 %v2505_v0, %v2501_v27  ;;  %v2138_v27 = vld [vmem:[%s3125_s8] ss:$0 sm:$0xff] }
 0x769   :  { %2315 = vmatmul.mubr.msk.f32.vlgmr.msra.gmra.mrb[8].mxu0 %vm385_vm2, %v1226_v1 }
 0x76a   :  { %v2507_v2 = vpop.eup %2506  ;;  %2323 = vmatpush3.xpose.msk.msra.mxu0 %vm385_vm2, %v1395_v63  ;;  %2324 = vmatprep.mubr.msk.f32.mxu0 %vm2624_vm1, %v2623_v24 }
 0x76b   :  { %v1228_v4 = vmul.f32 %v2507_v2, %v2503_v25  ;;  %2332 = vmatprep.subr.mxu0 %v2623_v24 }
 0x76d   :  { %2320 = vmatmul.mubr.msk.f32.vlgmr.msra.gmra.mrb[18].mxu1 %vm385_vm2, %v1228_v4  ;;  %2325 = vmatmul.mubr.msk.f32.vlgmr.msra.gmra.mrb[10].mxu0 %vm385_vm2, %v1393_v26 }
 0x76e   :  { %2328 = vmatpush3.xpose.msk.msra.mxu1 %vm385_vm2, %v1473_v3  ;;  %2329 = vmatprep.mubr.msk.f32.mxu1 %vm2624_vm1, %v2623_v24 }
 0x76f   :  { %2337 = vmatprep.subr.mxu1 %v2623_v24  ;;  %2334 = vmatprep.mubr.msk.f32.mxu0 %vm2624_vm1, %v2623_v24 }
 0x771   :  { %2330 = vmatmul.mubr.msk.f32.vlgmr.msra.gmra.mrb[20].mxu1 %vm385_vm2, %v1471_v6 }
 0x772   :  { %2339 = vmatprep.mubr.msk.f32.mxu1 %vm2624_vm1, %v2623_v24 }
 0x83c   :  { %v1301_v7 = vpop.f32.mrb[8].mxu0 }
 0x83d   :  { %v2316_v8 = vpop.f32.mrb[9].mxu0 }
 0x840   :  { %v1377_v9 = vpop.f32.mrb[18].mxu1  ;;  %v1466_v10 = vpop.f32.mrb[10].mxu0 }
 0x841   :  { %v1467_v11 = vadd.f32 %v1466_v10, %v2864_v31  ;;  %v2321_v13 = vpop.f32.mrb[19].mxu1  ;;  %v2326_v14 = vpop.f32.mrb[11].mxu0  ;;  %v114_v10 = vld [vmem:[%s3130_s13] sm:$0xff] }
 0x842   :  { %v116_v14 = vld [vmem:[%s3130_s13 + $0x10] sm:$0xff] }
 0x843   :  { %v1548_v15 = vsel %vm385_vm2, %v1467_v11, -inf }
 0x844   :  { %1549 = vmax.xlane.f32.xlu0 %v1548_v15  ;;  %v1544_v16 = vpop.f32.mrb[20].mxu1  ;;  %v117_v15 = vld [vmem:[%s3130_s13 + $0x18] sm:$0xff] }
 0x845   :  { %v1545_v17 = vadd.f32 %v1544_v16, %v2864_v31  ;;  %v2331_v18 = vpop.f32.mrb[21].mxu1  ;;  %v2435_v16 = vpack.c.bf16 %v117_v15, %v116_v14 }
 0x846   :  { %v119_v18 = vld [vmem:[%s3132_s15 + $0x8] sm:$0xff] }
 0x847   :  { %v1551_v19 = vsel %vm385_vm2, %v1545_v17, -inf }
 0x848   :  { %1552 = vmax.xlane.f32.xlu1 %v1551_v19  ;;  %v120_v19 = vld [vmem:[%s3132_s15 + $0x10] sm:$0xff] }
 0x859   :  { %1646 = vrot.lane.b32.xlu1 %v2853_v29, %s2627_s17 }
 0x85d   :  { %1042 = vrot.lane.b32.xlu1 %v2930_v40, %s2621_s23 }
 0x861   :  { %1044 = vrot.lane.b32.xlu1 %v2932_v42, %s2621_s23 }
 0x865   :  { %1385 = vrot.lane.b32.xlu1 %v1377_v9, %s2628_s1 }
 0x8d1   :  { %v1550_v24 = vpop.xlane.xlu0 %1549 }
 0x8d2   :  { %v1554_v20 = vsub.f32 %v1467_v11, %v1550_v24  ;;  %v115_v11 = vld [vmem:[%s3130_s13 + $0x8] sm:$0xff] }
 0x8d3   :  { %v2431_v13 = vpack.c.bf16 %v115_v11, %v114_v10 }
 0x8d4   :  { %v1556_v21 = vmul.f32 1.442695, %v1554_v20  ;;  %v121_v20 = vld [vmem:[%s3132_s15 + $0x18] sm:$0xff] }
 0x8d5   :  { %v1553_v22 = vpop.xlane.xlu1 %1552 }
 0x8d6   :  { %2508 = vpow2.f32 %v1556_v21  ;;  %v1555_v31 = vsub.f32 %v1545_v17, %v1553_v22  ;;  %v118_v17 = vld [vmem:[%s3132_s15] sm:$0xff]  ;;  %v2443_v21 = vpack.c.bf16 %v121_v20, %v120_v19 }
 0x8d7   :  { %v2439_v24 = vpack.c.bf16 %v119_v18, %v118_v17  ;;  %v122_v22 = vld [vmem:[%s3132_s15 + $0x20] sm:$0xff] }
 0x8d8   :  { %v1558_v23 = vmul.f32 1.442695, %v1555_v31  ;;  %v123_v31 = vld [vmem:[%s3132_s15 + $0x28] sm:$0xff] }
 0x8d9   :  { %v1647_v32 = vpop.permute.xlu1 %1646 }
 0x8da   :  { %2510 = vpow2.f32 %v1558_v23  ;;  %2338 = vmatpush3.msra.mxu1 %v1647_v32  ;;  %v2447_v23 = vpack.c.bf16 %v123_v31, %v122_v22  ;;  %v124_v32 = vld [vmem:[%s3132_s15 + $0x30] sm:$0xff] }
 0x8db   :  { %2432 = vmatprep.subr.bf16.mxu1 %v2431_v13 }
 0x8dd   :  { %v1043_v29 = vpop.permute.xlu1 %1042 }
 0x8de   :  { %1049 = vst.msk [vmem:[#allocation2] sm:$0xff] %vm1048_vm3, %v1043_v29  ;;  %v125_v29 = vld [vmem:[%s3132_s15 + $0x38] sm:$0xff] }
 0x8e0   :  { %v2509_v33 = vpop.eup %2508 }
 0x8e1   :  { %v1045_v34 = vpop.permute.xlu1 %1044  ;;  %v1560_v35 = vsel %vm385_vm2, %v2509_v33, 0.0 }
 0x8e2   :  { %1050 = vst.msk [vmem:[#allocation2 + $0x8] sm:$0xff] %vm1048_vm3, %v1045_v34  ;;  %1561 = vadd.xlane.f32.xlu0 %v1560_v35  ;;  %v126_v34 = vld [vmem:[%s3132_s15 + $0x40] sm:$0xff]  ;;  %v127_v35 = vld [vmem:[%s3132_s15 + $0x48] sm:$0xff] }
 0x8e4   :  { %v2511_v36 = vpop.eup %2510 }
 0x8e5   :  { %v1386_v37 = vpop.permute.xlu1 %1385  ;;  %v1563_v38 = vsel %vm385_vm2, %v2511_v36, 0.0 }
 0x8e6   :  { %1391 = vst.msk [vmem:[#allocation2 + $0x8] sm:$0xff] %vm1389_vm4, %v1386_v37  ;;  %1564 = vadd.xlane.f32.xlu0 %v1563_v38  ;;  %v128_v37 = vld [vmem:[%s3132_s15 + $0x50] sm:$0xff]  ;;  %v129_v38 = vld [vmem:[%s3132_s15 + $0x58] sm:$0xff] }
 0x8fc   :  { %1570 = vrot.lane.b32.xlu0 %v2855_v30, %s2627_s17  ;;  %v110_v30 = vld [vmem:[%s3124_s7] sm:$0xff] }
 0x8fd   :  { %v2423_v48 = vpack.c.bf16 %v111_v47, %v110_v30 }
 0x900   :  { %1383 = vrot.lane.b32.xlu0 %v1301_v7, %s2628_s1 }
 0x96f   :  { %v1562_v39 = vpop.xlane.xlu0 %1561 }
 0x970   :  { %2512 = vrcp.f32 %v1562_v39  ;;  %v2459_v39 = vpack.c.bf16 %v129_v38, %v128_v37 }
 0x973   :  { %v1565_v40 = vpop.xlane.xlu0 %1564 }
 0x974   :  { %2514 = vrcp.f32 %v1565_v40  ;;  %v130_v40 = vld [vmem:[%s3132_s15 + $0x60] sm:$0xff] }
 0x977   :  { %v1571_v41 = vpop.permute.xlu0 %1570 }
 0x978   :  { %2333 = vmatpush3.msra.mxu0 %v1571_v41  ;;  %v131_v41 = vld [vmem:[%s3132_s15 + $0x68] sm:$0xff] }
 0x979   :  { %2424 = vmatprep.subr.bf16.mxu0 %v2423_v48 }
 0x97a   :  { %v2513_v42 = vpop.eup %2512 }
 0x97b   :  { %v1567_v43 = vmul.f32 %v2513_v42, %v2509_v33  ;;  %v1384_v44 = vpop.permute.xlu0 %1383  ;;  %v2451_v33 = vpack.c.bf16 %v125_v29, %v124_v32  ;;  %v2463_v42 = vpack.c.bf16 %v131_v41, %v130_v40  ;;  %v2147_v32 = vld [vmem:[%s3128_s11] ss:$0 sm:$0xff] }
 0x97c   :  { %1390 = vst.msk [vmem:[#allocation2] sm:$0xff] %vm1389_vm4, %v1384_v44 }
 0x97d   :  { %2335 = vmatmul.mubr.msk.f32.vlgmr.msra.gmra.mrb[12].mxu0 %vm385_vm2, %v1567_v43 }
 0x97e   :  { %v2515_v45 = vpop.eup %2514  ;;  %2426 = vmatpush3.bf16.msra.mxu0 %v2423_v48 }
 0x97f   :  { %v1569_v46 = vmul.f32 %v2515_v45, %v2511_v36  ;;  %2428 = vmatprep.subr.bf16.mxu0 %v2427_v51  ;;  %v2455_v36 = vpack.c.bf16 %v127_v35, %v126_v34  ;;  %v2148_v35 = vld [vmem:[%s3129_s12] ss:$0 sm:$0xff] }
 0x981   :  { %2340 = vmatmul.mubr.msk.f32.vlgmr.msra.gmra.mrb[22].mxu1 %vm385_vm2, %v1569_v46 }
 0x982   :  { %2430 = vmatpush3.bf16.msra.mxu0 %v2427_v51  ;;  %2434 = vmatpush3.bf16.msra.mxu1 %v2431_v13  ;;  %v2142_v51 = vld [vmem:[%s3127_s10] ss:$0 sm:$0xff] }
 0x983   :  { %2436 = vmatprep.subr.bf16.mxu1 %v2435_v16  ;;  %2440 = vmatprep.subr.bf16.mxu0 %v2439_v24 }
 0x986   :  { %2438 = vmatpush3.bf16.msra.mxu1 %v2435_v16 }
 0xa50   :  { %v1642_v52 = vpop.f32.mrb[12].mxu0 }
 0xa51   :  { %1724 = vrot.lane.b32.xlu0 %v1642_v52, %s2629_s28  ;;  %v2336_v53 = vpop.f32.mrb[13].mxu0 }
 0xa54   :  { %v1718_v54 = vpop.f32.mrb[22].mxu1 }
 0xa55   :  { %1726 = vrot.lane.b32.xlu1 %v1718_v54, %s2629_s28  ;;  %v2341_v55 = vpop.f32.mrb[23].mxu1 }
 0xac3   :  { %v1725_v56 = vpop.permute.xlu0 %1724 }
 0xac4   :  { %1731 = vst.msk [vmem:[#allocation2] sm:$0xff] %vm1730_vm5, %v1725_v56 }
 0xac7   :  { %v1727_v57 = vpop.permute.xlu1 %1726 }
 0xac8   :  { %1732 = vst.msk [vmem:[#allocation2 + $0x8] sm:$0xff] %vm1730_vm5, %v1727_v57 }
 0xacb   :  { %v1733_v58 = vld [vmem:[#allocation2] sm:$0xff] }
 0xacc   :  { %2350 = vmatprep.mubr.msk.f32.mxu0 %vm141_vm0, %v1733_v58  ;;  %v132_v58 = vld [vmem:[%s3132_s15 + $0x70] sm:$0xff] }
 0xacf   :  { %v1734_v59 = vld [vmem:[#allocation2 + $0x8] sm:$0xff] }
 0xad0   :  { %2351 = vmatmul.mubr.msk.f32.vlgmr.msra.gmra.mrb[14].mxu0 %vm141_vm0, %v1734_v59  ;;  %v133_v59 = vld [vmem:[%s3132_s15 + $0x78] sm:$0xff] }
 0xad1   :  { %2442 = vmatpush3.bf16.msra.mxu0 %v2439_v24 }
 0xad2   :  { %2444 = vmatprep.subr.bf16.mxu0 %v2443_v21 }
 0xad5   :  { %2446 = vmatpush3.bf16.msra.mxu0 %v2443_v21 }
 0xad6   :  { %2448 = vmatprep.subr.bf16.mxu0 %v2447_v23 }
 0xad9   :  { %2450 = vmatpush3.bf16.msra.mxu0 %v2447_v23 }
 0xada   :  { %2452 = vmatprep.subr.bf16.mxu0 %v2451_v33 }
 0xadd   :  { %2454 = vmatpush3.bf16.msra.mxu0 %v2451_v33 }
 0xade   :  { %2456 = vmatprep.subr.bf16.mxu0 %v2455_v36 }
 0xae1   :  { %2458 = vmatpush3.bf16.msra.mxu0 %v2455_v36 }
 0xae2   :  { %2460 = vmatprep.subr.bf16.mxu0 %v2459_v39 }
 0xae5   :  { %2462 = vmatpush3.bf16.msra.mxu0 %v2459_v39 }
 0xae6   :  { %2464 = vmatprep.subr.bf16.mxu0 %v2463_v42 }
 0xae9   :  { %2466 = vmatpush3.bf16.msra.mxu0 %v2463_v42 }
 0xba3   :  { %v2352_v28 = vpop.f32.mrb[14].mxu0 }
 0xba4   :  { %v1820_v25 = vadd.f32 %v2352_v28, %v2138_v27  ;;  %v1814_v60 = vpop.f32.mrb[15].mxu0  ;;  %v2143_v28 = vld [vmem:[%s3131_s14] ss:$0 sm:$0xff] }
 0xba5   :  { %v1815_v61 = vadd.f32 %v2138_v27, %v1814_v60  ;;  %v2467_v27 = vpack.c.bf16 %v133_v59, %v132_v58 }
 0xba6   :  { %v1824_v62 = vadd.f32 %v1820_v25, %v2801_v12 }
 0xba7   :  { %v1823_v63 = vadd.f32 %v1815_v61, %v2785_v5  ;;  %2468 = vmatprep.subr.bf16.mxu0 %v2467_v27 }
 0xba8   :  { %v1830_v0 = vsel %vm141_vm0, %v1824_v62, 0.0  ;;  %2470 = vmatpush3.bf16.msra.mxu0 %v2467_v27 }
 0xba9   :  { %1831 = vadd.xlane.f32.xlu1 %v1830_v0  ;;  %v1827_v1 = vsel %vm141_vm0, %v1823_v63, 0.0 }
 0xbaa   :  { %1828 = vadd.xlane.f32.xlu0 %v1827_v1  ;;  %v2146_v1 = vld [vmem:[%s3133_s16] ss:$0 sm:$0xff] }
 0xc36   :  { %v1832_v2 = vpop.xlane.xlu1 %1831 }
 0xc37   :  { %v1835_v3 = vmul.f32 0.03125, %v1832_v2  ;;  %v1829_v4 = vpop.xlane.xlu0 %1828 }
 0xc38   :  { %v1834_v26 = vmul.f32 0.03125, %v1829_v4 }
 0xc39   :  { %v3009_v6 = vsub.f32 %v1824_v62, %v1835_v3 }
 0xc3a   :  { %v1836_v7 = vsub.f32 %v1823_v63, %v1834_v26 }
 0xc3b   :  { %v1839_v12 = vmul.f32 %v3009_v6, %v3009_v6 }
 0xc3c   :  { %v1838_v8 = vmul.f32 %v1836_v7, %v1836_v7 }
 0xc3d   :  { %v1843_v5 = vsel %vm141_vm0, %v1839_v12, 0.0 }
 0xc3e   :  { %v1840_v9 = vsel %vm141_vm0, %v1838_v8, 0.0 }
 0xc3f   :  { %1841 = vadd.xlane.f32.xlu0 %v1840_v9 }
 0xc43   :  { %1844 = vadd.xlane.f32.xlu0 %v1843_v5 }
 0xccc   :  { %v1842_v43 = vpop.xlane.xlu0 %1841 }
 0xccd   :  { %v1846_v44 = vmul.f32 0.03125, %v1842_v43 }
 0xccf   :  { %v1848_v45 = vadd.f32 1e-05, %v1846_v44 }
 0xcd0   :  { %v1845_v46 = vpop.xlane.xlu0 %1844 }
 0xcd1   :  { %2516 = vrsqrt.f32 %v1848_v45  ;;  %v1847_v30 = vmul.f32 0.03125, %v1845_v46 }
 0xcd3   :  { %v1849_v47 = vadd.f32 1e-05, %v1847_v30 }
 0xcd5   :  { %2518 = vrsqrt.f32 %v1849_v47 }
 0xcdb   :  { %v2517_v48 = vpop.eup %2516 }
 0xcdc   :  { %v1852_v50 = vmul.f32 %v2517_v48, %v1836_v7 }
 0xcde   :  { %v1860_v52 = vmul.f32 %v2141_v49, %v1852_v50 }
 0xcdf   :  { %v2519_v53 = vpop.eup %2518 }
 0xce0   :  { %v1853_v54 = vmul.f32 %v2519_v53, %v3009_v6  ;;  %v1868_v55 = vadd.f32 %v2142_v51, %v1860_v52 }
 0xce2   :  { %v1861_v56 = vmul.f32 %v2141_v49, %v1853_v54  ;;  %2361 = vmatprep.mubr.msk.f32.mxu1 %vm141_vm0, %v1868_v55 }
 0xce4   :  { %v1869_v57 = vadd.f32 %v2142_v51, %v1861_v56 }
 0xce6   :  { %2362 = vmatmul.mubr.msk.f32.vlgmr.msra.gmra.mrb[24].mxu1 %vm141_vm0, %v1869_v57 }
 0xdb9   :  { %v2363_v25 = vpop.f32.mrb[24].mxu1 }
 0xdba   :  { %v1955_v60 = vadd.f32 %v2363_v25, %v2143_v28  ;;  %v1949_v61 = vpop.f32.mrb[25].mxu1 }
 0xdbb   :  { %v1950_v62 = vadd.f32 %v2143_v28, %v1949_v61 }
 0xdbc   :  { %v1959_v0 = vmax.f32 %v1955_v60, 0.0 }
 0xdbd   :  { %v1958_v63 = vmax.f32 %v1950_v62, 0.0 }
 0xdbf   :  { %2396 = vmatprep.mubr.f32.mxu0 %v1958_v63 }
 0xdc0   :  { %2397 = vmatmul.mubr.f32.vlgmr.msra.gmra.mrb[16].mxu0 %v1959_v0 }
 0xe93   :  { %v2398_v2 = vpop.f32.mrb[16].mxu0 }
 0xe94   :  { %v2039_v3 = vadd.f32 %v2398_v2, %v2146_v1  ;;  %v2033_v4 = vpop.f32.mrb[17].mxu0 }
 0xe95   :  { %v2034_v26 = vadd.f32 %v2146_v1, %v2033_v4 }
 0xe96   :  { %v2043_v6 = vadd.f32 %v2039_v3, %v1869_v57 }
 0xe97   :  { %v2042_v7 = vadd.f32 %v2034_v26, %v1868_v55 }
 0xe98   :  { %v2049_v8 = vsel %vm141_vm0, %v2043_v6, 0.0 }
 0xe99   :  { %2050 = vadd.xlane.f32.xlu1 %v2049_v8  ;;  %v2046_v9 = vsel %vm141_vm0, %v2042_v7, 0.0 }
 0xe9a   :  { %2047 = vadd.xlane.f32.xlu0 %v2046_v9 }
 0xf26   :  { %v2051_v12 = vpop.xlane.xlu1 %2050 }
 0xf27   :  { %v2053_v5 = vmul.f32 0.03125, %v2051_v12  ;;  %v2048_v10 = vpop.xlane.xlu0 %2047 }
 0xf28   :  { %v2052_v11 = vmul.f32 0.03125, %v2048_v10 }
 0xf29   :  { %v2055_v13 = vsub.f32 %v2043_v6, %v2053_v5 }
 0xf2a   :  { %v2054_v14 = vsub.f32 %v2042_v7, %v2052_v11 }
 0xf2b   :  { %v2057_v15 = vmul.f32 %v2055_v13, %v2055_v13 }
 0xf2c   :  { %v2056_v16 = vmul.f32 %v2054_v14, %v2054_v14 }
 0xf2d   :  { %v2061_v17 = vsel %vm141_vm0, %v2057_v15, 0.0 }
 0xf2e   :  { %2062 = vadd.xlane.f32.xlu1 %v2061_v17  ;;  %v2058_v18 = vsel %vm141_vm0, %v2056_v16, 0.0 }
 0xf2f   :  { %2059 = vadd.xlane.f32.xlu0 %v2058_v18 }
 0xfbb   :  { %v2063_v19 = vpop.xlane.xlu1 %2062 }
 0xfbc   :  { %v2065_v24 = vmul.f32 0.03125, %v2063_v19  ;;  %v2060_v20 = vpop.xlane.xlu0 %2059 }
 0xfbd   :  { %v2064_v21 = vmul.f32 0.03125, %v2060_v20 }
 0xfbe   :  { %v2067_v22 = vadd.f32 1e-05, %v2065_v24 }
 0xfbf   :  { %v2066_v31 = vadd.f32 1e-05, %v2064_v21 }
 0xfc0   :  { %2520 = vrsqrt.f32 %v2067_v22 }
 0xfc1   :  { %2522 = vrsqrt.f32 %v2066_v31 }
 0xfca   :  { %v2521_v23 = vpop.eup %2520 }
 0xfcb   :  { %v2523_v29 = vpop.eup %2522  ;;  %v2071_v33 = vmul.f32 %v2521_v23, %v2055_v13 }
 0xfcc   :  { %v2070_v34 = vmul.f32 %v2523_v29, %v2054_v14 }
 0xfcd   :  { %v2079_v36 = vmul.f32 %v2147_v32, %v2071_v33 }
 0xfce   :  { %v2078_v37 = vmul.f32 %v2147_v32, %v2070_v34 }
 0xfcf   :  { %v2087_v38 = vadd.f32 %v2148_v35, %v2079_v36 }
 0xfd0   :  { %v2086_v39 = vadd.f32 %v2148_v35, %v2078_v37 }
 0xfd1   :  { %2089 = vst.msk [vmem:[#allocation9 + $0x8] sm:$0xff] %vm141_vm0, %v2087_v38 }
 0xfd2   :  { %2088 = vst.msk [vmem:[#allocation9] sm:$0xff] %vm141_vm0, %v2086_v39 }
 0xfd3   :  { %2601 = shalt.err (!%p2598_p0)
}
 0xfd4   :  { %s3143_s26 = sld [smem:[#allocation15_spill]] }
 0xfda   :  { %s2602_s3 = scalar_lea.hbm %s3143_s26, 256 }
 0xfdb   :  { %p2603_p1 = scmp.ne.s32.totalorder %s3143_s26, %s2602_s3  ;;  %p2606_p2 = scmp.lt.u32.totalorder %s2602_s3, %s3143_s26 }
 0xfdd   :  { %p2608_p3 = pnand %p2606_p2, %p2603_p1 }
 0xfdf   :  { %2611 = shalt.err (!%p2608_p3)
}
 0xfe0   :  { %2101 = dma.vmem_to_hbm [thread:$0]  %s2096_s4, 256, %s3143_s26, [#allocation5], %s2620_s22, %s2620_s22, %s2621_s23  }
 0xfe1   :  { %2616 = dma.done.wait [#allocation5], 256  }
 0xfe2   :  { %2617 = vsyncadd [#allocation5], 4294967040 }
 0xfe3   :  { %2105 = vsyncpa [#allocation4], 1 }
 0xfe4   :  { %2106 = vsyncpa [#allocation7], 1 }
 0xfe5   :  { %2107 = vsyncpa [#allocation5], 1 }

// kernel: tpu_custom_call.1
= control target key start
LH: loop header
LB: loop body
LE: loop exit
PB: predicated region body
PF: predicated region fallthrough
CT: control target
= control target key end

     0   :  { %s3117_s0 = inlined_call_operand.hbm [shape: f32[2,8,32], index: 0, kind: input, shape index: {}]   ;;  %s3118_s1 = inlined_call_operand.hbm [shape: f32[2,8,32], index: 1, kind: input, shape index: {}]   ;;  %s3119_s2 = inlined_call_operand.hbm [shape: f32[2,8,32], index: 2, kind: input, shape index: {}]   ;;  %s3120_s3 = inlined_call_operand.vmem [shape: f32[8,8], index: 3, kind: input, shape index: {}]   ;;  %s3121_s4 = inlined_call_operand.vmem [shape: f32[32,32], index: 4, kind: input, shape index: {}]   ;;  %s3122_s5 = inlined_call_operand.vmem [shape: f32[32,32], index: 5, kind: input, shape index: {}]   ;;  %s3123_s6 = inlined_call_operand.vmem [shape: f32[32,32], index: 6, kind: input, shape index: {}]   ;;  %s3124_s7 = inlined_call_operand.vmem [shape: f32[32,32], index: 7, kind: input, shape index: {}]   ;;  %s3125_s8 = inlined_call_operand.vmem [shape: f32[1,32], index: 8, kind: input, shape index: {}]   ;;  %s3126_s9 = inlined_call_operand.vmem [shape: f32[1,32], index: 9, kind: input, shape index: {}]   ;;  %s3127_s10 = inlined_call_operand.vmem [shape: f32[1,32], index: 10, kind: input, shape index: {}]   ;;  %s3128_s11 = inlined_call_operand.vmem [shape: f32[1,32], index: 11, kind: input, shape index: {}]   ;;  %s3129_s12 = inlined_call_operand.vmem [shape: f32[1,32], index: 12, kind: input, shape index: {}]   ;;  %s3130_s13 = inlined_call_operand.vmem [shape: f32[32,128], index: 13, kind: input, shape index: {}]   ;;  %s3131_s14 = inlined_call_operand.vmem [shape: f32[1,128], index: 14, kind: input, shape index: {}]   ;;  %s3132_s15 = inlined_call_operand.vmem [shape: f32[128,32], index: 15, kind: input, shape index: {}]   ;;  %s3133_s16 = inlined_call_operand.vmem [shape: f32[1,32], index: 16, kind: input, shape index: {}]   ;;  %s3134_s17 = inlined_call_operand.hbm [shape: f32[2,8,32], index: 17, kind: output, shape index: {}]  }
   0x1   :  { %3138 = sst [smem:[#allocation13_spill]] %s3117_s0 }
   0x2   :  { %3139 = sst [smem:[#allocation14_spill]] %s3118_s1 }
   0x3   :  { %3140 = sst [smem:[#allocation15_spill]] %s3134_s17 }
   0x4   :  { %22 = vsyncpa [#allocation4], 0 }
   0x5   :  { %23 = vsyncpa [#allocation7], 0 }
   0x6   :  { %24 = vsyncpa [#allocation5], 0  ;;  %s2618_s24 = smov [#allocation6]   ;;  %s2619_s26 = smov [#allocation3]  }
   0x7   :  { %s42_s25 = sshll.u32 %s2618_s24, 4  ;;  %s30_s27 = sshll.u32 %s2619_s26, 4  ;;  %s43_s25 = int_to_ptr.vmem [resolvable:$true] %s42_s25  ;;  %s2721_s27 = int_to_ptr.vmem [resolvable:$true] %s30_s27 }
   0x8   :  { %s3141_s0 = sld [smem:[#allocation14_spill]] }
   0xe   :  { %s2524_s30 = scalar_lea.hbm %s3141_s0, 256 }
   0xf   :  { %p2525_p0 = scmp.ne.s32.totalorder %s3141_s0, %s2524_s30  ;;  %p2528_p1 = scmp.lt.u32.totalorder %s2524_s30, %s3141_s0 }
  0x11   :  { %p2530_p2 = pnand %p2528_p1, %p2525_p0 }
  0x13   :  { %2533 = shalt.err (!%p2530_p2)
}
  0x14   :  { %s2534_s21 = scalar_lea.vmem %s43_s25, 256  ;;  %p2539_p4 = scmp.lt.s32.totalorder %s43_s25, %s43_s25 }
  0x15   :  { %p2535_p3 = scmp.ne.s32.totalorder %s43_s25, %s2534_s21  ;;  %p2540_p5 = scmp.lt.s32.totalorder %s2534_s21, %s2534_s21 }
  0x17   :  { %p2541_p6 = por %p2540_p5, %p2539_p4 }
  0x19   :  { %p2542_p7 = pnand %p2541_p6, %p2535_p3 }
  0x1b   :  { %2545 = shalt.err (!%p2542_p7)
}
  0x1c   :  { %s2620_s22 = smov 128   ;;  %s2621_s23 = smov 8  }
  0x1d   :  { %48 = dma.hbm_to_vmem [thread:$0]  %s3141_s0, 256, %s43_s25, [#allocation7], %s2620_s22, %s2620_s22, %s2621_s23  }
  0x1e   :  { %s3142_s30 = sld [smem:[#allocation13_spill]] }
  0x24   :  { %s2546_s18 = scalar_lea.hbm %s3142_s30, 256 }
  0x25   :  { %p2547_p8 = scmp.ne.s32.totalorder %s3142_s30, %s2546_s18  ;;  %p2550_p9 = scmp.lt.u32.totalorder %s2546_s18, %s3142_s30 }
  0x27   :  { %p2552_p10 = pnand %p2550_p9, %p2547_p8 }
  0x29   :  { %2555 = shalt.err (!%p2552_p10)
}
  0x2a   :  { %s2556_s17 = scalar_lea.vmem %s2721_s27, 256  ;;  %p2561_p12 = scmp.lt.s32.totalorder %s2721_s27, %s2721_s27 }
  0x2b   :  { %p2557_p11 = scmp.ne.s32.totalorder %s2721_s27, %s2556_s17  ;;  %p2562_p13 = scmp.lt.s32.totalorder %s2556_s17, %s2556_s17 }
  0x2d   :  { %p2563_p0 = por %p2562_p13, %p2561_p12 }
  0x2f   :  { %p2564_p1 = pnand %p2563_p0, %p2557_p11 }
  0x31   :  { %2567 = shalt.err (!%p2564_p1)
}
  0x32   :  { %36 = dma.hbm_to_vmem [thread:$0]  %s3142_s30, 256, %s2721_s27, [#allocation4], %s2620_s22, %s2620_s22, %s2621_s23  }
  0x33   :  { %s2622_s24 = smov [#allocation8]   ;;  %s2568_s18 = scalar_lea.hbm %s3119_s2, 256 }
  0x34   :  { %s54_s26 = sshll.u32 %s2622_s24, 4  ;;  %p2569_p2 = scmp.ne.s32.totalorder %s3119_s2, %s2568_s18  ;;  %s55_s26 = int_to_ptr.vmem [resolvable:$true] %s54_s26 }
  0x35   :  { %p2572_p3 = scmp.lt.u32.totalorder %s2568_s18, %s3119_s2 }
  0x37   :  { %p2574_p4 = pnand %p2572_p3, %p2569_p2 }
  0x39   :  { %2577 = shalt.err (!%p2574_p4)
}
  0x3a   :  { %s2578_s21 = scalar_lea.vmem %s55_s26, 256  ;;  %p2583_p6 = scmp.lt.s32.totalorder %s55_s26, %s55_s26 }
  0x3b   :  { %p2579_p5 = scmp.ne.s32.totalorder %s55_s26, %s2578_s21  ;;  %p2584_p7 = scmp.lt.s32.totalorder %s2578_s21, %s2578_s21 }
  0x3d   :  { %p2585_p8 = por %p2584_p7, %p2583_p6 }
  0x3f   :  { %p2586_p9 = pnand %p2585_p8, %p2579_p5 }
  0x41   :  { %2589 = shalt.err (!%p2586_p9)
}
  0x42   :  { %60 = dma.hbm_to_vmem [thread:$0]  %s3119_s2, 256, %s55_s26, [#allocation7], %s2620_s22, %s2620_s22, %s2621_s23  }
  0x43   :  { %2612 = dma.done.wait [#allocation4], 256  }
  0x44   :  { %2613 = vsyncadd [#allocation4], 4294967040 }
  0x45   :  { %2614 = dma.done.wait [#allocation7], 512  }
  0x46   :  { %2615 = vsyncadd [#allocation7], 4294966784  ;;  %vm141_vm0 = vcmask 261120   ;;  %v106_v0 = vld [vmem:[%s3123_s6] sm:$0xff]  ;;  %v107_v1 = vld [vmem:[%s3123_s6 + $0x8] sm:$0xff]  ;;  %v2623_v24 = vmov 0.0  }
  0x47   :  { %v108_v2 = vld [vmem:[%s3123_s6 + $0x10] sm:$0xff]  ;;  %v2399_v3 = vpack.c.bf16 %v107_v1, %v106_v0  ;;  %v109_v4 = vld [vmem:[%s3123_s6 + $0x18] sm:$0xff]  ;;  %v102_v7 = vld [vmem:[%s3122_s5] sm:$0xff]  ;;  %2272 = vmatprep.subr.mxu0 %v2623_v24  ;;  %vm2624_vm1 = vmmov 0   ;;  %vm385_vm2 = vcmask 64512   ;;  %s2627_s17 = smov 104  }
  0x48   :  { %v2785_v5 = vld [vmem:[#allocation8] sm:$0xff]  ;;  %v2403_v6 = vpack.c.bf16 %v109_v4, %v108_v2  ;;  %v103_v8 = vld [vmem:[%s3122_s5 + $0x8] sm:$0xff]  ;;  %v105_v11 = vld [vmem:[%s3122_s5 + $0x18] sm:$0xff]  ;;  %2274 = vmatprep.mubr.msk.f32.mxu0 %vm2624_vm1, %v2623_v24  ;;  %s2628_s1 = smov 16   ;;  %vm1048_vm3 = vcmask 130112   ;;  %vm1389_vm4 = vcmask 195712  }
  0x49   :  { %2237 = vmatprep.mubr.msk.f32.mxu1 %vm141_vm0, %v2785_v5  ;;  %2400 = vmatprep.subr.bf16.mxu1 %v2399_v3  ;;  %v2407_v9 = vpack.c.bf16 %v103_v8, %v102_v7  ;;  %v104_v10 = vld [vmem:[%s3122_s5 + $0x10] sm:$0xff]  ;;  %v2801_v12 = vld [vmem:[#allocation8 + $0x8] sm:$0xff]  ;;  %v137_v14 = vld [vmem:[#allocation6] sm:$0xff]  ;;  %s2629_s28 = smov 24   ;;  %vm1730_vm5 = vcmask 261312   ;;  %s2630_s19 = smov [#allocation9]  }
  0x4a   :  { %2402 = vmatpush3.bf16.msra.mxu1 %v2399_v3  ;;  %v2411_v13 = vpack.c.bf16 %v105_v11, %v104_v10  ;;  %v98_v15 = vld [vmem:[%s3121_s4] sm:$0xff]  ;;  %v99_v16 = vld [vmem:[%s3121_s4 + $0x8] sm:$0xff]  ;;  %v100_v19 = vld [vmem:[%s3121_s4 + $0x10] sm:$0xff] }
  0x4b   :  { %2404 = vmatprep.subr.bf16.mxu1 %v2403_v6  ;;  %v2415_v17 = vpack.c.bf16 %v99_v16, %v98_v15  ;;  %v138_v18 = vld [vmem:[#allocation6 + $0x8] sm:$0xff]  ;;  %v101_v20 = vld [vmem:[%s3121_s4 + $0x18] sm:$0xff]  ;;  %v135_v22 = vld [vmem:[#allocation3] sm:$0xff]  ;;  %s2625_s4 = smov 120  }
  0x4c   :  { %v2419_v21 = vpack.c.bf16 %v101_v20, %v100_v19  ;;  %v136_v23 = vld [vmem:[#allocation3 + $0x8] sm:$0xff]  ;;  %v2864_v31 = vld [vmem:[%s3120_s3] sm:$0xff]  ;;  %s2626_s3 = smov 112  }
  0x4e   :  { %2406 = vmatpush3.bf16.msra.mxu1 %v2403_v6 }
  0x4f   :  { %2408 = vmatprep.subr.bf16.mxu1 %v2407_v9 }
  0x51   :  { %2238 = vmatmul.mubr.msk.f32.vlgmr.msra.gmra.mrb[0].mxu1 %vm141_vm0, %v2801_v12 }
  0x52   :  { %2410 = vmatpush3.bf16.msra.mxu1 %v2407_v9  ;;  %2248 = vmatprep.mubr.msk.f32.mxu1 %vm141_vm0, %v137_v14 }
  0x53   :  { %2412 = vmatprep.subr.bf16.mxu1 %v2411_v13 }
  0x56   :  { %2414 = vmatpush3.bf16.msra.mxu1 %v2411_v13 }
  0x57   :  { %2416 = vmatprep.subr.bf16.mxu1 %v2415_v17 }
  0x59   :  { %2249 = vmatmul.mubr.msk.f32.vlgmr.msra.gmra.mrb[2].mxu1 %vm141_vm0, %v138_v18 }
  0x5a   :  { %2418 = vmatpush3.bf16.msra.mxu1 %v2415_v17  ;;  %2259 = vmatprep.mubr.msk.f32.mxu1 %vm141_vm0, %v135_v22 }
  0x5b   :  { %2420 = vmatprep.subr.bf16.mxu1 %v2419_v21 }
  0x5e   :  { %2422 = vmatpush3.bf16.msra.mxu1 %v2419_v21 }
  0x5f   :  { %2262 = vmatprep.subr.mxu1 %v2623_v24 }
  0x61   :  { %2260 = vmatmul.mubr.msk.f32.vlgmr.msra.gmra.mrb[4].mxu1 %vm141_vm0, %v136_v23 }
  0x62   :  { %2264 = vmatprep.mubr.msk.f32.mxu1 %vm2624_vm1, %v2623_v24 }
 0x124   :  { %v2827_v25 = vpop.f32.mrb[0].mxu1 }
 0x125   :  { %v2829_v26 = vpop.f32.mrb[1].mxu1 }
 0x12c   :  { %v2831_v27 = vpop.f32.mrb[2].mxu1 }
 0x12d   :  { %788 = vrot.lane.b32.xlu1 %v2831_v27, %s2625_s4  ;;  %v2835_v28 = vpop.f32.mrb[3].mxu1 }
 0x12e   :  { %2263 = vmatpush3.xpose.msk.msra.mxu1 %vm385_vm2, %v2835_v28 }
 0x12f   :  { %2267 = vmatprep.subr.mxu1 %v2623_v24 }
 0x131   :  { %708 = vrot.lane.b32.xlu1 %v2829_v26, %s2625_s4  ;;  %2265 = vmatmul.mubr.msk.f32.vlgmr.msra.gmra.mrb[6].mxu1 %vm385_vm2, %v2829_v26 }
 0x132   :  { %2268 = vmatpush3.xpose.msk.msra.mxu1 %vm385_vm2, %v2831_v27  ;;  %2269 = vmatprep.mubr.msk.f32.mxu1 %vm2624_vm1, %v2623_v24 }
 0x133   :  { %2277 = vmatprep.subr.mxu1 %v2623_v24 }
 0x134   :  { %v2853_v29 = vpop.f32.mrb[4].mxu1 }
 0x135   :  { %2270 = vmatmul.mubr.msk.f32.vlgmr.msra.gmra.mrb[8].mxu1 %vm385_vm2, %v2827_v25  ;;  %v2855_v30 = vpop.f32.mrb[5].mxu1 }
 0x136   :  { %2279 = vmatprep.mubr.msk.f32.mxu1 %vm2624_vm1, %v2623_v24  ;;  %2278 = vmatpush3.msra.mxu1 %v2853_v29 }
 0x137   :  { %2273 = vmatpush3.msra.mxu0 %v2855_v30  ;;  %2287 = vmatprep.subr.mxu1 %v2623_v24 }
 0x138   :  { %2282 = vmatprep.subr.mxu0 %v2623_v24 }
 0x19f   :  { %v789_v50 = vpop.permute.xlu1 %788 }
 0x1a3   :  { %v709_v51 = vpop.permute.xlu1 %708 }
 0x204   :  { %v458_v32 = vpop.f32.mrb[6].mxu1 }
 0x205   :  { %v459_v33 = vadd.f32 %v458_v32, %v2864_v31  ;;  %v2266_v34 = vpop.f32.mrb[7].mxu1 }
 0x207   :  { %v538_v35 = vsel %vm385_vm2, %v459_v33, -inf }
 0x208   :  { %539 = vmax.xlane.f32.xlu0 %v538_v35  ;;  %v534_v36 = vpop.f32.mrb[8].mxu1 }
 0x209   :  { %v535_v37 = vadd.f32 %v534_v36, %v2864_v31  ;;  %v2271_v38 = vpop.f32.mrb[9].mxu1 }
 0x20b   :  { %v541_v39 = vsel %vm385_vm2, %v535_v37, -inf }
 0x20c   :  { %542 = vmax.xlane.f32.xlu0 %v541_v39 }
 0x222   :  { %710 = vrot.lane.b32.xlu0 %v2835_v28, %s2625_s4 }
 0x295   :  { %v540_v40 = vpop.xlane.xlu0 %539 }
 0x296   :  { %v544_v41 = vsub.f32 %v459_v33, %v540_v40 }
 0x298   :  { %v546_v42 = vmul.f32 1.442695, %v544_v41 }
 0x299   :  { %v543_v43 = vpop.xlane.xlu0 %542 }
 0x29a   :  { %2484 = vpow2.f32 %v546_v42  ;;  %v545_v44 = vsub.f32 %v535_v37, %v543_v43 }
 0x29c   :  { %v548_v45 = vmul.f32 1.442695, %v545_v44 }
 0x29d   :  { %v711_v56 = vpop.permute.xlu0 %710 }
 0x29e   :  { %2486 = vpow2.f32 %v548_v45 }
 0x2a4   :  { %v2485_v46 = vpop.eup %2484 }
 0x2a5   :  { %v550_v47 = vsel %vm385_vm2, %v2485_v46, 0.0 }
 0x2a6   :  { %551 = vadd.xlane.f32.xlu1 %v550_v47 }
 0x2a8   :  { %v2487_v48 = vpop.eup %2486 }
 0x2a9   :  { %v553_v49 = vsel %vm385_vm2, %v2487_v48, 0.0 }
 0x2aa   :  { %554 = vadd.xlane.f32.xlu1 %v553_v49 }
 0x2bb   :  { %786 = vrot.lane.b32.xlu1 %v2827_v25, %s2625_s4 }
 0x333   :  { %v552_v52 = vpop.xlane.xlu1 %551 }
 0x334   :  { %2488 = vrcp.f32 %v552_v52 }
 0x337   :  { %v555_v53 = vpop.xlane.xlu1 %554 }
 0x338   :  { %2490 = vrcp.f32 %v555_v53 }
 0x33b   :  { %v787_v59 = vpop.permute.xlu1 %786 }
 0x33e   :  { %v2489_v54 = vpop.eup %2488 }
 0x33f   :  { %v557_v55 = vmul.f32 %v2489_v54, %v2485_v46 }
 0x341   :  { %2275 = vmatmul.mubr.msk.f32.vlgmr.msra.gmra.mrb[0].mxu0 %vm385_vm2, %v557_v55 }
 0x342   :  { %v2491_v57 = vpop.eup %2490  ;;  %2283 = vmatpush3.xpose.msk.msra.mxu0 %vm385_vm2, %v711_v56  ;;  %2284 = vmatprep.mubr.msk.f32.mxu0 %vm2624_vm1, %v2623_v24 }
 0x343   :  { %v559_v58 = vmul.f32 %v2491_v57, %v2487_v48  ;;  %2292 = vmatprep.subr.mxu0 %v2623_v24 }
 0x345   :  { %2280 = vmatmul.mubr.msk.f32.vlgmr.msra.gmra.mrb[10].mxu1 %vm385_vm2, %v559_v58  ;;  %2285 = vmatmul.mubr.msk.f32.vlgmr.msra.gmra.mrb[2].mxu0 %vm385_vm2, %v709_v51 }
 0x346   :  { %2288 = vmatpush3.xpose.msk.msra.mxu1 %vm385_vm2, %v789_v50  ;;  %2289 = vmatprep.mubr.msk.f32.mxu1 %vm2624_vm1, %v2623_v24 }
 0x347   :  { %2297 = vmatprep.subr.mxu1 %v2623_v24  ;;  %2294 = vmatprep.mubr.msk.f32.mxu0 %vm2624_vm1, %v2623_v24 }
 0x349   :  { %2290 = vmatmul.mubr.msk.f32.vlgmr.msra.gmra.mrb[12].mxu1 %vm385_vm2, %v787_v59 }
 0x34a   :  { %2299 = vmatprep.mubr.msk.f32.mxu1 %vm2624_vm1, %v2623_v24 }
 0x414   :  { %v629_v60 = vpop.f32.mrb[0].mxu0 }
 0x415   :  { %706 = vst.msk [vmem:[#allocation2] sm:$0xff] %vm385_vm2, %v629_v60  ;;  %v2276_v61 = vpop.f32.mrb[1].mxu0 }
 0x418   :  { %v702_v62 = vpop.f32.mrb[10].mxu1  ;;  %v782_v63 = vpop.f32.mrb[2].mxu0 }
 0x419   :  { %707 = vst.msk [vmem:[#allocation2 + $0x8] sm:$0xff] %vm385_vm2, %v702_v62  ;;  %v783_v0 = vadd.f32 %v782_v63, %v2864_v31  ;;  %v2281_v1 = vpop.f32.mrb[11].mxu1  ;;  %v2286_v2 = vpop.f32.mrb[3].mxu0 }
 0x41b   :  { %v864_v3 = vsel %vm385_vm2, %v783_v0, -inf }
 0x41c   :  { %865 = vmax.xlane.f32.xlu0 %v864_v3  ;;  %v860_v4 = vpop.f32.mrb[12].mxu1 }
 0x41d   :  { %v861_v6 = vadd.f32 %v860_v4, %v2864_v31  ;;  %v2291_v7 = vpop.f32.mrb[13].mxu1 }
 0x41f   :  { %v867_v8 = vsel %vm385_vm2, %v861_v6, -inf }
 0x420   :  { %868 = vmax.xlane.f32.xlu1 %v867_v8 }
 0x431   :  { %964 = vrot.lane.b32.xlu1 %v2853_v29, %s2625_s4 }
 0x432   :  { %887 = vrot.lane.b32.xlu0 %v2855_v30, %s2625_s4  ;;  %s2095_s4 = sshll.u32 %s2630_s19, 4  ;;  %s2096_s4 = int_to_ptr.vmem [resolvable:$true] %s2095_s4 }
 0x433   :  { %s2590_s2 = scalar_lea.vmem %s2096_s4, 256  ;;  %p2595_p11 = scmp.lt.s32.totalorder %s2096_s4, %s2096_s4 }
 0x434   :  { %p2591_p10 = scmp.ne.s32.totalorder %s2096_s4, %s2590_s2  ;;  %p2596_p12 = scmp.lt.s32.totalorder %s2590_s2, %s2590_s2 }
 0x435   :  { %1053 = vrot.lane.b32.xlu1 %v2835_v28, %s2626_s3 }
 0x436   :  { %p2597_p13 = por %p2596_p12, %p2595_p11 }
 0x438   :  { %p2598_p0 = pnand %p2597_p13, %p2591_p10 }
 0x439   :  { %1131 = vrot.lane.b32.xlu1 %v2831_v27, %s2626_s3 }
 0x43d   :  { %1129 = vrot.lane.b32.xlu1 %v2827_v25, %s2626_s3 }
 0x4a9   :  { %v866_v9 = vpop.xlane.xlu0 %865 }
 0x4aa   :  { %v870_v10 = vsub.f32 %v783_v0, %v866_v9 }
 0x4ac   :  { %v872_v11 = vmul.f32 1.442695, %v870_v10 }
 0x4ad   :  { %v888_v13 = vpop.permute.xlu0 %887  ;;  %v869_v14 = vpop.xlane.xlu1 %868 }
 0x4ae   :  { %2492 = vpow2.f32 %v872_v11  ;;  %v871_v15 = vsub.f32 %v861_v6, %v869_v14  ;;  %2293 = vmatpush3.msra.mxu0 %v888_v13 }
 0x4af   :  { %2302 = vmatprep.subr.mxu0 %v2623_v24 }
 0x4b0   :  { %v874_v16 = vmul.f32 1.442695, %v871_v15 }
 0x4b1   :  { %v965_v17 = vpop.permute.xlu1 %964 }
 0x4b2   :  { %2494 = vpow2.f32 %v874_v16  ;;  %2298 = vmatpush3.msra.mxu1 %v965_v17 }
 0x4b3   :  { %2307 = vmatprep.subr.mxu1 %v2623_v24 }
 0x4b5   :  { %v1054_v32 = vpop.permute.xlu1 %1053 }
 0x4b8   :  { %v2493_v18 = vpop.eup %2492 }
 0x4b9   :  { %v876_v19 = vsel %vm385_vm2, %v2493_v18, 0.0  ;;  %v1132_v36 = vpop.permute.xlu1 %1131 }
 0x4ba   :  { %877 = vadd.xlane.f32.xlu0 %v876_v19 }
 0x4bc   :  { %v2495_v20 = vpop.eup %2494 }
 0x4bd   :  { %v879_v21 = vsel %vm385_vm2, %v2495_v20, 0.0  ;;  %v1130_v39 = vpop.permute.xlu1 %1129 }
 0x4be   :  { %880 = vadd.xlane.f32.xlu0 %v879_v21 }
 0x4d4   :  { %1051 = vrot.lane.b32.xlu0 %v2829_v26, %s2626_s3 }
 0x547   :  { %v878_v22 = vpop.xlane.xlu0 %877 }
 0x548   :  { %2496 = vrcp.f32 %v878_v22 }
 0x54b   :  { %v881_v23 = vpop.xlane.xlu0 %880 }
 0x54c   :  { %2498 = vrcp.f32 %v881_v23 }
 0x54f   :  { %v1052_v38 = vpop.permute.xlu0 %1051 }
 0x552   :  { %v2497_v33 = vpop.eup %2496 }
 0x553   :  { %v883_v34 = vmul.f32 %v2497_v33, %v2493_v18 }
 0x555   :  { %2295 = vmatmul.mubr.msk.f32.vlgmr.msra.gmra.mrb[4].mxu0 %vm385_vm2, %v883_v34 }
 0x556   :  { %v2499_v35 = vpop.eup %2498  ;;  %2303 = vmatpush3.xpose.msk.msra.mxu0 %vm385_vm2, %v1054_v32  ;;  %2304 = vmatprep.mubr.msk.f32.mxu0 %vm2624_vm1, %v2623_v24 }
 0x557   :  { %v885_v37 = vmul.f32 %v2499_v35, %v2495_v20  ;;  %2312 = vmatprep.subr.mxu0 %v2623_v24 }
 0x559   :  { %2300 = vmatmul.mubr.msk.f32.vlgmr.msra.gmra.mrb[14].mxu1 %vm385_vm2, %v885_v37  ;;  %2305 = vmatmul.mubr.msk.f32.vlgmr.msra.gmra.mrb[6].mxu0 %vm385_vm2, %v1052_v38 }
 0x55a   :  { %2308 = vmatpush3.xpose.msk.msra.mxu1 %vm385_vm2, %v1132_v36  ;;  %2309 = vmatprep.mubr.msk.f32.mxu1 %vm2624_vm1, %v2623_v24 }
 0x55b   :  { %2317 = vmatprep.subr.mxu1 %v2623_v24  ;;  %2314 = vmatprep.mubr.msk.f32.mxu0 %vm2624_vm1, %v2623_v24 }
 0x55d   :  { %2310 = vmatmul.mubr.msk.f32.vlgmr.msra.gmra.mrb[16].mxu1 %vm385_vm2, %v1130_v39 }
 0x55e   :  { %2319 = vmatprep.mubr.msk.f32.mxu1 %vm2624_vm1, %v2623_v24 }
 0x628   :  { %v2930_v40 = vpop.f32.mrb[4].mxu0 }
 0x629   :  { %v2296_v41 = vpop.f32.mrb[5].mxu0 }
 0x62c   :  { %v2932_v42 = vpop.f32.mrb[14].mxu1  ;;  %v1125_v43 = vpop.f32.mrb[6].mxu0 }
 0x62d   :  { %v1126_v44 = vadd.f32 %v1125_v43, %v2864_v31  ;;  %v2301_v45 = vpop.f32.mrb[15].mxu1  ;;  %v2306_v46 = vpop.f32.mrb[7].mxu0 }
 0x62f   :  { %v1207_v47 = vsel %vm385_vm2, %v1126_v44, -inf }
 0x630   :  { %1208 = vmax.xlane.f32.xlu0 %v1207_v47  ;;  %v1203_v48 = vpop.f32.mrb[16].mxu1  ;;  %v111_v47 = vld [vmem:[%s3124_s7 + $0x8] sm:$0xff] }
 0x631   :  { %v1204_v49 = vadd.f32 %v1203_v48, %v2864_v31  ;;  %v2311_v50 = vpop.f32.mrb[17].mxu1 }
 0x632   :  { %v113_v50 = vld [vmem:[%s3124_s7 + $0x18] sm:$0xff] }
 0x633   :  { %v1210_v51 = vsel %vm385_vm2, %v1204_v49, -inf }
 0x634   :  { %1211 = vmax.xlane.f32.xlu1 %v1210_v51 }
 0x645   :  { %1305 = vrot.lane.b32.xlu1 %v2853_v29, %s2626_s3 }
 0x646   :  { %1229 = vrot.lane.b32.xlu0 %v2855_v30, %s2626_s3 }
 0x649   :  { %1394 = vrot.lane.b32.xlu1 %v2835_v28, %s2627_s17 }
 0x64d   :  { %1472 = vrot.lane.b32.xlu1 %v2831_v27, %s2627_s17 }
 0x651   :  { %1470 = vrot.lane.b32.xlu1 %v2827_v25, %s2627_s17 }
 0x6bd   :  { %v1209_v52 = vpop.xlane.xlu0 %1208 }
 0x6be   :  { %v1213_v53 = vsub.f32 %v1126_v44, %v1209_v52 }
 0x6c0   :  { %v1215_v54 = vmul.f32 1.442695, %v1213_v53 }
 0x6c1   :  { %v1230_v55 = vpop.permute.xlu0 %1229  ;;  %v1212_v56 = vpop.xlane.xlu1 %1211 }
 0x6c2   :  { %2500 = vpow2.f32 %v1215_v54  ;;  %v1214_v57 = vsub.f32 %v1204_v49, %v1212_v56  ;;  %2313 = vmatpush3.msra.mxu0 %v1230_v55  ;;  %v112_v49 = vld [vmem:[%s3124_s7 + $0x10] sm:$0xff] }
 0x6c3   :  { %2322 = vmatprep.subr.mxu0 %v2623_v24  ;;  %v2427_v51 = vpack.c.bf16 %v113_v50, %v112_v49  ;;  %v2141_v49 = vld [vmem:[%s3126_s9] ss:$0 sm:$0xff] }
 0x6c4   :  { %v1217_v58 = vmul.f32 1.442695, %v1214_v57 }
 0x6c5   :  { %v1306_v59 = vpop.permute.xlu1 %1305 }
 0x6c6   :  { %2502 = vpow2.f32 %v1217_v58  ;;  %2318 = vmatpush3.msra.mxu1 %v1306_v59 }
 0x6c7   :  { %2327 = vmatprep.subr.mxu1 %v2623_v24 }
 0x6c9   :  { %v1395_v63 = vpop.permute.xlu1 %1394 }
 0x6cc   :  { %v2501_v27 = vpop.eup %2500 }
 0x6cd   :  { %v1219_v28 = vsel %vm385_vm2, %v2501_v27, 0.0  ;;  %v1473_v3 = vpop.permute.xlu1 %1472 }
 0x6ce   :  { %1220 = vadd.xlane.f32.xlu0 %v1219_v28 }
 0x6d0   :  { %v2503_v25 = vpop.eup %2502 }
 0x6d1   :  { %v1222_v60 = vsel %vm385_vm2, %v2503_v25, 0.0  ;;  %v1471_v6 = vpop.permute.xlu1 %1470 }
 0x6d2   :  { %1223 = vadd.xlane.f32.xlu0 %v1222_v60 }
 0x6e8   :  { %1392 = vrot.lane.b32.xlu0 %v2829_v26, %s2627_s17 }
 0x75b   :  { %v1221_v61 = vpop.xlane.xlu0 %1220 }
 0x75c   :  { %2504 = vrcp.f32 %v1221_v61 }
 0x75f   :  { %v1224_v62 = vpop.xlane.xlu0 %1223 }
 0x760   :  { %2506 = vrcp.f32 %v1224_v62 }
 0x763   :  { %v1393_v26 = vpop.permute.xlu0 %1392 }
 0x766   :  { %v2505_v0 = vpop.eup %2504 }
 0x767   :  { %v1226_v1 = vmul.f32 %v2505_v0, %v2501_v27  ;;  %v2138_v27 = vld [vmem:[%s3125_s8] ss:$0 sm:$0xff] }
 0x769   :  { %2315 = vmatmul.mubr.msk.f32.vlgmr.msra.gmra.mrb[8].mxu0 %vm385_vm2, %v1226_v1 }
 0x76a   :  { %v2507_v2 = vpop.eup %2506  ;;  %2323 = vmatpush3.xpose.msk.msra.mxu0 %vm385_vm2, %v1395_v63  ;;  %2324 = vmatprep.mubr.msk.f32.mxu0 %vm2624_vm1, %v2623_v24 }
 0x76b   :  { %v1228_v4 = vmul.f32 %v2507_v2, %v2503_v25  ;;  %2332 = vmatprep.subr.mxu0 %v2623_v24 }
 0x76d   :  { %2320 = vmatmul.mubr.msk.f32.vlgmr.msra.gmra.mrb[18].mxu1 %vm385_vm2, %v1228_v4  ;;  %2325 = vmatmul.mubr.msk.f32.vlgmr.msra.gmra.mrb[10].mxu0 %vm385_vm2, %v1393_v26 }
 0x76e   :  { %2328 = vmatpush3.xpose.msk.msra.mxu1 %vm385_vm2, %v1473_v3  ;;  %2329 = vmatprep.mubr.msk.f32.mxu1 %vm2624_vm1, %v2623_v24 }
 0x76f   :  { %2337 = vmatprep.subr.mxu1 %v2623_v24  ;;  %2334 = vmatprep.mubr.msk.f32.mxu0 %vm2624_vm1, %v2623_v24 }
 0x771   :  { %2330 = vmatmul.mubr.msk.f32.vlgmr.msra.gmra.mrb[20].mxu1 %vm385_vm2, %v1471_v6 }
 0x772   :  { %2339 = vmatprep.mubr.msk.f32.mxu1 %vm2624_vm1, %v2623_v24 }
 0x83c   :  { %v1301_v7 = vpop.f32.mrb[8].mxu0 }
 0x83d   :  { %v2316_v8 = vpop.f32.mrb[9].mxu0 }
 0x840   :  { %v1377_v9 = vpop.f32.mrb[18].mxu1  ;;  %v1466_v10 = vpop.f32.mrb[10].mxu0 }
 0x841   :  { %v1467_v11 = vadd.f32 %v1466_v10, %v2864_v31  ;;  %v2321_v13 = vpop.f32.mrb[19].mxu1  ;;  %v2326_v14 = vpop.f32.mrb[11].mxu0  ;;  %v114_v10 = vld [vmem:[%s3130_s13] sm:$0xff] }
 0x842   :  { %v116_v14 = vld [vmem:[%s3130_s13 + $0x10] sm:$0xff] }
 0x843   :  { %v1548_v15 = vsel %vm385_vm2, %v1467_v11, -inf }
 0x844   :  { %1549 = vmax.xlane.f32.xlu0 %v1548_v15  ;;  %v1544_v16 = vpop.f32.mrb[20].mxu1  ;;  %v117_v15 = vld [vmem:[%s3130_s13 + $0x18] sm:$0xff] }
 0x845   :  { %v1545_v17 = vadd.f32 %v1544_v16, %v2864_v31  ;;  %v2331_v18 = vpop.f32.mrb[21].mxu1  ;;  %v2435_v16 = vpack.c.bf16 %v117_v15, %v116_v14 }
 0x846   :  { %v119_v18 = vld [vmem:[%s3132_s15 + $0x8] sm:$0xff] }
 0x847   :  { %v1551_v19 = vsel %vm385_vm2, %v1545_v17, -inf }
 0x848   :  { %1552 = vmax.xlane.f32.xlu1 %v1551_v19  ;;  %v120_v19 = vld [vmem:[%s3132_s15 + $0x10] sm:$0xff] }
 0x859   :  { %1646 = vrot.lane.b32.xlu1 %v2853_v29, %s2627_s17 }
 0x85d   :  { %1042 = vrot.lane.b32.xlu1 %v2930_v40, %s2621_s23 }
 0x861   :  { %1044 = vrot.lane.b32.xlu1 %v2932_v42, %s2621_s23 }
 0x865   :  { %1385 = vrot.lane.b32.xlu1 %v1377_v9, %s2628_s1 }
 0x8d1   :  { %v1550_v24 = vpop.xlane.xlu0 %1549 }
 0x8d2   :  { %v1554_v20 = vsub.f32 %v1467_v11, %v1550_v24  ;;  %v115_v11 = vld [vmem:[%s3130_s13 + $0x8] sm:$0xff] }
 0x8d3   :  { %v2431_v13 = vpack.c.bf16 %v115_v11, %v114_v10 }
 0x8d4   :  { %v1556_v21 = vmul.f32 1.442695, %v1554_v20  ;;  %v121_v20 = vld [vmem:[%s3132_s15 + $0x18] sm:$0xff] }
 0x8d5   :  { %v1553_v22 = vpop.xlane.xlu1 %1552 }
 0x8d6   :  { %2508 = vpow2.f32 %v1556_v21  ;;  %v1555_v31 = vsub.f32 %v1545_v17, %v1553_v22  ;;  %v118_v17 = vld [vmem:[%s3132_s15] sm:$0xff]  ;;  %v2443_v21 = vpack.c.bf16 %v121_v20, %v120_v19 }
 0x8d7   :  { %v2439_v24 = vpack.c.bf16 %v119_v18, %v118_v17  ;;  %v122_v22 = vld [vmem:[%s3132_s15 + $0x20] sm:$0xff] }
 0x8d8   :  { %v1558_v23 = vmul.f32 1.442695, %v1555_v31  ;;  %v123_v31 = vld [vmem:[%s3132_s15 + $0x28] sm:$0xff] }
 0x8d9   :  { %v1647_v32 = vpop.permute.xlu1 %1646 }
 0x8da   :  { %2510 = vpow2.f32 %v1558_v23  ;;  %2338 = vmatpush3.msra.mxu1 %v1647_v32  ;;  %v2447_v23 = vpack.c.bf16 %v123_v31, %v122_v22  ;;  %v124_v32 = vld [vmem:[%s3132_s15 + $0x30] sm:$0xff] }
 0x8db   :  { %2432 = vmatprep.subr.bf16.mxu1 %v2431_v13 }
 0x8dd   :  { %v1043_v29 = vpop.permute.xlu1 %1042 }
 0x8de   :  { %1049 = vst.msk [vmem:[#allocation2] sm:$0xff] %vm1048_vm3, %v1043_v29  ;;  %v125_v29 = vld [vmem:[%s3132_s15 + $0x38] sm:$0xff] }
 0x8e0   :  { %v2509_v33 = vpop.eup %2508 }
 0x8e1   :  { %v1045_v34 = vpop.permute.xlu1 %1044  ;;  %v1560_v35 = vsel %vm385_vm2, %v2509_v33, 0.0 }
 0x8e2   :  { %1050 = vst.msk [vmem:[#allocation2 + $0x8] sm:$0xff] %vm1048_vm3, %v1045_v34  ;;  %1561 = vadd.xlane.f32.xlu0 %v1560_v35  ;;  %v126_v34 = vld [vmem:[%s3132_s15 + $0x40] sm:$0xff]  ;;  %v127_v35 = vld [vmem:[%s3132_s15 + $0x48] sm:$0xff] }
 0x8e4   :  { %v2511_v36 = vpop.eup %2510 }
 0x8e5   :  { %v1386_v37 = vpop.permute.xlu1 %1385  ;;  %v1563_v38 = vsel %vm385_vm2, %v2511_v36, 0.0 }
 0x8e6   :  { %1391 = vst.msk [vmem:[#allocation2 + $0x8] sm:$0xff] %vm1389_vm4, %v1386_v37  ;;  %1564 = vadd.xlane.f32.xlu0 %v1563_v38  ;;  %v128_v37 = vld [vmem:[%s3132_s15 + $0x50] sm:$0xff]  ;;  %v129_v38 = vld [vmem:[%s3132_s15 + $0x58] sm:$0xff] }
 0x8fc   :  { %1570 = vrot.lane.b32.xlu0 %v2855_v30, %s2627_s17  ;;  %v110_v30 = vld [vmem:[%s3124_s7] sm:$0xff] }
 0x8fd   :  { %v2423_v48 = vpack.c.bf16 %v111_v47, %v110_v30 }
 0x900   :  { %1383 = vrot.lane.b32.xlu0 %v1301_v7, %s2628_s1 }
 0x96f   :  { %v1562_v39 = vpop.xlane.xlu0 %1561 }
 0x970   :  { %2512 = vrcp.f32 %v1562_v39  ;;  %v2459_v39 = vpack.c.bf16 %v129_v38, %v128_v37 }
 0x973   :  { %v1565_v40 = vpop.xlane.xlu0 %1564 }
 0x974   :  { %2514 = vrcp.f32 %v1565_v40  ;;  %v130_v40 = vld [vmem:[%s3132_s15 + $0x60] sm:$0xff] }
 0x977   :  { %v1571_v41 = vpop.permute.xlu0 %1570 }
 0x978   :  { %2333 = vmatpush3.msra.mxu0 %v1571_v41  ;;  %v131_v41 = vld [vmem:[%s3132_s15 + $0x68] sm:$0xff] }
 0x979   :  { %2424 = vmatprep.subr.bf16.mxu0 %v2423_v48 }
 0x97a   :  { %v2513_v42 = vpop.eup %2512 }
 0x97b   :  { %v1567_v43 = vmul.f32 %v2513_v42, %v2509_v33  ;;  %v1384_v44 = vpop.permute.xlu0 %1383  ;;  %v2451_v33 = vpack.c.bf16 %v125_v29, %v124_v32  ;;  %v2463_v42 = vpack.c.bf16 %v131_v41, %v130_v40  ;;  %v2147_v32 = vld [vmem:[%s3128_s11] ss:$0 sm:$0xff] }
 0x97c   :  { %1390 = vst.msk [vmem:[#allocation2] sm:$0xff] %vm1389_vm4, %v1384_v44 }
 0x97d   :  { %2335 = vmatmul.mubr.msk.f32.vlgmr.msra.gmra.mrb[12].mxu0 %vm385_vm2, %v1567_v43 }
 0x97e   :  { %v2515_v45 = vpop.eup %2514  ;;  %2426 = vmatpush3.bf16.msra.mxu0 %v2423_v48 }
 0x97f   :  { %v1569_v46 = vmul.f32 %v2515_v45, %v2511_v36  ;;  %2428 = vmatprep.subr.bf16.mxu0 %v2427_v51  ;;  %v2455_v36 = vpack.c.bf16 %v127_v35, %v126_v34  ;;  %v2148_v35 = vld [vmem:[%s3129_s12] ss:$0 sm:$0xff] }
 0x981   :  { %2340 = vmatmul.mubr.msk.f32.vlgmr.msra.gmra.mrb[22].mxu1 %vm385_vm2, %v1569_v46 }
 0x982   :  { %2430 = vmatpush3.bf16.msra.mxu0 %v2427_v51  ;;  %2434 = vmatpush3.bf16.msra.mxu1 %v2431_v13  ;;  %v2142_v51 = vld [vmem:[%s3127_s10] ss:$0 sm:$0xff] }
 0x983   :  { %2436 = vmatprep.subr.bf16.mxu1 %v2435_v16  ;;  %2440 = vmatprep.subr.bf16.mxu0 %v2439_v24 }
 0x986   :  { %2438 = vmatpush3.bf16.msra.mxu1 %v2435_v16 }
 0xa50   :  { %v1642_v52 = vpop.f32.mrb[12].mxu0 }
 0xa51   :  { %1724 = vrot.lane.b32.xlu0 %v1642_v52, %s2629_s28  ;;  %v2336_v53 = vpop.f32.mrb[13].mxu0 }
 0xa54   :  { %v1718_v54 = vpop.f32.mrb[22].mxu1 }
 0xa55   :  { %1726 = vrot.lane.b32.xlu1 %v1718_v54, %s2629_s28  ;;  %v2341_v55 = vpop.f32.mrb[23].mxu1 }
 0xac3   :  { %v1725_v56 = vpop.permute.xlu0 %1724 }
 0xac4   :  { %1731 = vst.msk [vmem:[#allocation2] sm:$0xff] %vm1730_vm5, %v1725_v56 }
 0xac7   :  { %v1727_v57 = vpop.permute.xlu1 %1726 }
 0xac8   :  { %1732 = vst.msk [vmem:[#allocation2 + $0x8] sm:$0xff] %vm1730_vm5, %v1727_v57 }
 0xacb   :  { %v1733_v58 = vld [vmem:[#allocation2] sm:$0xff] }
 0xacc   :  { %2350 = vmatprep.mubr.msk.f32.mxu0 %vm141_vm0, %v1733_v58  ;;  %v132_v58 = vld [vmem:[%s3132_s15 + $0x70] sm:$0xff] }
 0xacf   :  { %v1734_v59 = vld [vmem:[#allocation2 + $0x8] sm:$0xff] }
 0xad0   :  { %2351 = vmatmul.mubr.msk.f32.vlgmr.msra.gmra.mrb[14].mxu0 %vm141_vm0, %v1734_v59  ;;  %v133_v59 = vld [vmem:[%s3132_s15 + $0x78] sm:$0xff] }
 0xad1   :  { %2442 = vmatpush3.bf16.msra.mxu0 %v2439_v24 }
 0xad2   :  { %2444 = vmatprep.subr.bf16.mxu0 %v2443_v21 }
 0xad5   :  { %2446 = vmatpush3.bf16.msra.mxu0 %v2443_v21 }
 0xad6   :  { %2448 = vmatprep.subr.bf16.mxu0 %v2447_v23 }
 0xad9   :  { %2450 = vmatpush3.bf16.msra.mxu0 %v2447_v23 }
 0xada   :  { %2452 = vmatprep.subr.bf16.mxu0 %v2451_v33 }
 0xadd   :  { %2454 = vmatpush3.bf16.msra.mxu0 %v2451_v33 }
 0xade   :  { %2456 = vmatprep.subr.bf16.mxu0 %v2455_v36 }
 0xae1   :  { %2458 = vmatpush3.bf16.msra.mxu0 %v2455_v36 }
 0xae2   :  { %2460 = vmatprep.subr.bf16.mxu0 %v2459_v39 }
 0xae5   :  { %2462 = vmatpush3.bf16.msra.mxu0 %v2459_v39 }
 0xae6   :  { %2464 = vmatprep.subr.bf16.mxu0 %v2463_v42 }
 0xae9   :  { %2466 = vmatpush3.bf16.msra.mxu0 %v2463_v42 }
 0xba3   :  { %v2352_v28 = vpop.f32.mrb[14].mxu0 }
 0xba4   :  { %v1820_v25 = vadd.f32 %v2352_v28, %v2138_v27  ;;  %v1814_v60 = vpop.f32.mrb[15].mxu0  ;;  %v2143_v28 = vld [vmem:[%s3131_s14] ss:$0 sm:$0xff] }
 0xba5   :  { %v1815_v61 = vadd.f32 %v2138_v27, %v1814_v60  ;;  %v2467_v27 = vpack.c.bf16 %v133_v59, %v132_v58 }
 0xba6   :  { %v1824_v62 = vadd.f32 %v1820_v25, %v2801_v12 }
 0xba7   :  { %v1823_v63 = vadd.f32 %v1815_v61, %v2785_v5  ;;  %2468 = vmatprep.subr.bf16.mxu0 %v2467_v27 }
 0xba8   :  { %v1830_v0 = vsel %vm141_vm0, %v1824_v62, 0.0  ;;  %2470 = vmatpush3.bf16.msra.mxu0 %v2467_v27 }
 0xba9   :  { %1831 = vadd.xlane.f32.xlu1 %v1830_v0  ;;  %v1827_v1 = vsel %vm141_vm0, %v1823_v63, 0.0 }
 0xbaa   :  { %1828 = vadd.xlane.f32.xlu0 %v1827_v1  ;;  %v2146_v1 = vld [vmem:[%s3133_s16] ss:$0 sm:$0xff] }
 0xc36   :  { %v1832_v2 = vpop.xlane.xlu1 %1831 }
 0xc37   :  { %v1835_v3 = vmul.f32 0.03125, %v1832_v2  ;;  %v1829_v4 = vpop.xlane.xlu0 %1828 }
 0xc38   :  { %v1834_v26 = vmul.f32 0.03125, %v1829_v4 }
 0xc39   :  { %v3009_v6 = vsub.f32 %v1824_v62, %v1835_v3 }
 0xc3a   :  { %v1836_v7 = vsub.f32 %v1823_v63, %v1834_v26 }
 0xc3b   :  { %v1839_v12 = vmul.f32 %v3009_v6, %v3009_v6 }
 0xc3c   :  { %v1838_v8 = vmul.f32 %v1836_v7, %v1836_v7 }
 0xc3d   :  { %v1843_v5 = vsel %vm141_vm0, %v1839_v12, 0.0 }
 0xc3e   :  { %v1840_v9 = vsel %vm141_vm0, %v1838_v8, 0.0 }
 0xc3f   :  { %1841 = vadd.xlane.f32.xlu0 %v1840_v9 }
 0xc43   :  { %1844 = vadd.xlane.f32.xlu0 %v1843_v5 }
 0xccc   :  { %v1842_v43 = vpop.xlane.xlu0 %1841 }
 0xccd   :  { %v1846_v44 = vmul.f32 0.03125, %v1842_v43 }
 0xccf   :  { %v1848_v45 = vadd.f32 1e-05, %v1846_v44 }
 0xcd0   :  { %v1845_v46 = vpop.xlane.xlu0 %1844 }
 0xcd1   :  { %2516 = vrsqrt.f32 %v1848_v45  ;;  %v1847_v30 = vmul.f32 0.03125, %v1845_v46 }
 0xcd3   :  { %v1849_v47 = vadd.f32 1e-05, %v1847_v30 }
 0xcd5   :  { %2518 = vrsqrt.f32 %v1849_v47 }
 0xcdb   :  { %v2517_v48 = vpop.eup %2516 }
 0xcdc   :  { %v1852_v50 = vmul.f32 %v2517_v48, %v1836_v7 }
 0xcde   :  { %v1860_v52 = vmul.f32 %v2141_v49, %v1852_v50 }
 0xcdf   :  { %v2519_v53 = vpop.eup %2518 }
 0xce0   :  { %v1853_v54 = vmul.f32 %v2519_v53, %v3009_v6  ;;  %v1868_v55 = vadd.f32 %v2142_v51, %v1860_v52 }
 0xce2   :  { %v1861_v56 = vmul.f32 %v2141_v49, %v1853_v54  ;;  %2361 = vmatprep.mubr.msk.f32.mxu1 %vm141_vm0, %v1868_v55 }
 0xce4   :  { %v1869_v57 = vadd.f32 %v2142_v51, %v1861_v56 }
 0xce6   :  { %2362 = vmatmul.mubr.msk.f32.vlgmr.msra.gmra.mrb[24].mxu1 %vm141_vm0, %v1869_v57 }
 0xdb9   :  { %v2363_v25 = vpop.f32.mrb[24].mxu1 }
 0xdba   :  { %v1955_v60 = vadd.f32 %v2363_v25, %v2143_v28  ;;  %v1949_v61 = vpop.f32.mrb[25].mxu1 }
 0xdbb   :  { %v1950_v62 = vadd.f32 %v2143_v28, %v1949_v61 }
 0xdbc   :  { %v1959_v0 = vmax.f32 %v1955_v60, 0.0 }
 0xdbd   :  { %v1958_v63 = vmax.f32 %v1950_v62, 0.0 }
 0xdbf   :  { %2396 = vmatprep.mubr.f32.mxu0 %v1958_v63 }
 0xdc0   :  { %2397 = vmatmul.mubr.f32.vlgmr.msra.gmra.mrb[16].mxu0 %v1959_v0 }
 0xe93   :  { %v2398_v2 = vpop.f32.mrb[16].mxu0 }
 0xe94   :  { %v2039_v3 = vadd.f32 %v2398_v2, %v2146_v1  ;;  %v2033_v4 = vpop.f32.mrb[17].mxu0 }
 0xe95   :  { %v2034_v26 = vadd.f32 %v2146_v1, %v2033_v4 }
 0xe96   :  { %v2043_v6 = vadd.f32 %v2039_v3, %v1869_v57 }
 0xe97   :  { %v2042_v7 = vadd.f32 %v2034_v26, %v1868_v55 }
 0xe98   :  { %v2049_v8 = vsel %vm141_vm0, %v2043_v6, 0.0 }
 0xe99   :  { %2050 = vadd.xlane.f32.xlu1 %v2049_v8  ;;  %v2046_v9 = vsel %vm141_vm0, %v2042_v7, 0.0 }
 0xe9a   :  { %2047 = vadd.xlane.f32.xlu0 %v2046_v9 }
 0xf26   :  { %v2051_v12 = vpop.xlane.xlu1 %2050 }
 0xf27   :  { %v2053_v5 = vmul.f32 0.03125, %v2051_v12  ;;  %v2048_v10 = vpop.xlane.xlu0 %2047 }
 0xf28   :  { %v2052_v11 = vmul.f32 0.03125, %v2048_v10 }
 0xf29   :  { %v2055_v13 = vsub.f32 %v2043_v6, %v2053_v5 }
 0xf2a   :  { %v2054_v14 = vsub.f32 %v2042_v7, %v2052_v11 }
 0xf2b   :  { %v2057_v15 = vmul.f32 %v2055_v13, %v2055_v13 }
 0xf2c   :  { %v2056_v16 = vmul.f32 %v2054_v14, %v2054_v14 }
 0xf2d   :  { %v2061_v17 = vsel %vm141_vm0, %v2057_v15, 0.0 }
 0xf2e   :  { %2062 = vadd.xlane.f32.xlu1 %v2061_v17  ;;  %v2058_v18 = vsel %vm141_vm0, %v2056_v16, 0.0 }
 0xf2f   :  { %2059 = vadd.xlane.f32.xlu0 %v2058_v18 }
 0xfbb   :  { %v2063_v19 = vpop.xlane.xlu1 %2062 }
 0xfbc   :  { %v2065_v24 = vmul.f32 0.03125, %v2063_v19  ;;  %v2060_v20 = vpop.xlane.xlu0 %2059 }
 0xfbd   :  { %v2064_v21 = vmul.f32 0.03125, %v2060_v20 }
 0xfbe   :  { %v2067_v22 = vadd.f32 1e-05, %v2065_v24 }
 0xfbf   :  { %v2066_v31 = vadd.f32 1e-05, %v2064_v21 }
 0xfc0   :  { %2520 = vrsqrt.f32 %v2067_v22 }
 0xfc1   :  { %2522 = vrsqrt.f32 %v2066_v31 }
 0xfca   :  { %v2521_v23 = vpop.eup %2520 }
 0xfcb   :  { %v2523_v29 = vpop.eup %2522  ;;  %v2071_v33 = vmul.f32 %v2521_v23, %v2055_v13 }
 0xfcc   :  { %v2070_v34 = vmul.f32 %v2523_v29, %v2054_v14 }
 0xfcd   :  { %v2079_v36 = vmul.f32 %v2147_v32, %v2071_v33 }
 0xfce   :  { %v2078_v37 = vmul.f32 %v2147_v32, %v2070_v34 }
 0xfcf   :  { %v2087_v38 = vadd.f32 %v2148_v35, %v2079_v36 }
 0xfd0   :  { %v2086_v39 = vadd.f32 %v2148_v35, %v2078_v37 }
 0xfd1   :  { %2089 = vst.msk [vmem:[#allocation9 + $0x8] sm:$0xff] %vm141_vm0, %v2087_v38 }
 0xfd2   :  { %2088 = vst.msk [vmem:[#allocation9] sm:$0xff] %vm141_vm0, %v2086_v39 }
 0xfd3   :  { %2601 = shalt.err (!%p2598_p0)
}
 0xfd4   :  { %s3143_s26 = sld [smem:[#allocation15_spill]] }
 0xfda   :  { %s2602_s3 = scalar_lea.hbm %s3143_s26, 256 }
 0xfdb   :  { %p2603_p1 = scmp.ne.s32.totalorder %s3143_s26, %s2602_s3  ;;  %p2606_p2 = scmp.lt.u32.totalorder %s2602_s3, %s3143_s26 }
 0xfdd   :  { %p2608_p3 = pnand %p2606_p2, %p2603_p1 }
 0xfdf   :  { %2611 = shalt.err (!%p2608_p3)
}
 0xfe0   :  { %2101 = dma.vmem_to_hbm [thread:$0]  %s2096_s4, 256, %s3143_s26, [#allocation5], %s2620_s22, %s2620_s22, %s2621_s23  }
 0xfe1   :  { %2616 = dma.done.wait [#allocation5], 256  }
 0xfe2   :  { %2617 = vsyncadd [#allocation5], 4294967040 }
 0xfe3   :  { %2105 = vsyncpa [#allocation4], 1 }
 0xfe4   :  { %2106 = vsyncpa [#allocation7], 1 }
 0xfe5   :  { %2107 = vsyncpa [#allocation5], 1 }

</bundles_post_ra>
